<compile_context>
chip_gen: v6e
topology: v6e:2x2x1
jax: 0.10.0
libtpu: 0.0.40
codegen_flags: <defaults>
</compile_context>

<pallas_src>
import jax
import jax.numpy as jnp
from jax import lax
from jax.experimental import pallas as pl
from jax.experimental.pallas import tpu as pltpu

# ---------------- model sizes (small, deterministic) ----------------
INPUT_DICT = 32      # encoder vocab
OUTPUT_DICT = 40     # decoder vocab
MAX_OUT_LEN = 4
EMBED = 16
HIDDEN = 32
ATTN = 16
BATCH = 2
SEQ = 8
START_TOKEN = 1      # stand-in for TOKEN.START

BPAD = 8             # sublane fill: pad batch 2 -> 8
VPAD = 128           # lane-dense logp output: pad vocab 40 -> 128
NEG = -1e30          # pad-lane logit bias (excluded from max / exp / argmax)

F32 = jnp.float32


def _vmem():
    return pl.BlockSpec(memory_space=pltpu.MemorySpace.VMEM)


def _gru_from_gates(gi, gh, h, H):
    """torch GRU cell given stacked gate pre-activations (lanes ordered r|z|n)."""
    r = jax.nn.sigmoid(gi[:, 0:H] + gh[:, 0:H])
    z = jax.nn.sigmoid(gi[:, H:2 * H] + gh[:, H:2 * H])
    n = jnp.tanh(gi[:, 2 * H:3 * H] + r * gh[:, 2 * H:3 * H])
    return (1.0 - z) * n + z * h


# ===================== single fused encoder + greedy-decode kernel =====================

def seq2seq_kernel(emb_ref,
                   ewih_f_ref, ewhh_f_ref, ebih_f_ref, ebhh_f_ref,
                   ewih_b_ref, ewhh_b_ref, ebih_b_ref, ebhh_b_ref,
                   demb_ref,
                   wah_ref, wae_f_ref, wae_b_ref, ab_ref, ac_ref,
                   dwih_e_ref, dwih_cf_ref, dwih_cb_ref,
                   dwhh_ref, dbih_ref, dbhh_ref,
                   outw_ref, outb_ref,
                   logp_ref):
    S, B, _ = emb_ref.shape
    H = ewhh_f_ref.shape[0]
    Vd = demb_ref.shape[0]
    Vp = outw_ref.shape[1]
    T = logp_ref.shape[0]

    # ---------------- encoder: bidirectional GRU, fully unrolled ----------------
    wih_f = ewih_f_ref[...]; whh_f = ewhh_f_ref[...]
    bih_f = ebih_f_ref[...]; bhh_f = ebhh_f_ref[...]
    wih_b = ewih_b_ref[...]; whh_b = ewhh_b_ref[...]
    bih_b = ebih_b_ref[...]; bhh_b = ebhh_b_ref[...]

    hf = jnp.zeros((B, H), F32)
    fwd = []
    for s in range(S):
        x = emb_ref[s]
        gi = jnp.dot(x, wih_f, preferred_element_type=F32) + bih_f
        gh = jnp.dot(hf, whh_f, preferred_element_type=F32) + bhh_f
        hf = _gru_from_gates(gi, gh, hf, H)
        fwd.append(hf)

    hb = jnp.zeros((B, H), F32)
    bwd = [None] * S
    for s in range(S - 1, -1, -1):
        x = emb_ref[s]
        gi = jnp.dot(x, wih_b, preferred_element_type=F32) + bih_b
        gh = jnp.dot(hb, whh_b, preferred_element_type=F32) + bhh_b
        hb = _gru_from_gates(gi, gh, hb, H)
        bwd[s] = hb

    hidden = hb                                   # == encoder_hidden[1]

    # sequence-major flat slabs: sublane stacking only, no lane concatenates
    fwd_flat = jnp.concatenate(fwd, axis=0)       # (S*B, H)
    bwd_flat = jnp.concatenate(bwd, axis=0)       # (S*B, H)

    # ---------------- decoder prologue (hoisted out of the decode loop) ---------
    # additive-attention encoder-side projection: [h; fwd_s; bwd_s] @ W_attn
    # split column-wise; attention bias folded in here once.
    eproj = (jnp.dot(fwd_flat, wae_f_ref[...], preferred_element_type=F32)
             + jnp.dot(bwd_flat, wae_b_ref[...], preferred_element_type=F32)
             + ab_ref[...])                                            # (S*B, A)
    # encoder contribution to the GRU input gates: ctx @ W_ih_ctx is linear in
    # the attention weights, so (enc_s @ W_ih_ctx) is precomputed here and the
    # per-step matmul is replaced by a weighted sublane-tile sum.  Includes the
    # 1/S factor of torch.mean.
    enc_gates = (jnp.dot(fwd_flat, dwih_cf_ref[...], preferred_element_type=F32)
                 + jnp.dot(bwd_flat, dwih_cb_ref[...], preferred_element_type=F32))
    enc_gates = enc_gates * (1.0 / S)                                  # (S*B, 3H)

    demb = demb_ref[...]
    wah = wah_ref[...]
    ac = ac_ref[...]                              # (1, A): attn_c as a row
    wih_e = dwih_e_ref[...]; whh = dwhh_ref[...]
    bih = dbih_ref[...]; bhh = dbhh_ref[...]
    outw = outw_ref[...]; outb = outb_ref[...]

    tok = jnp.full((B, 1), START_TOKEN, jnp.int32)

    # ---------------- greedy decode loop (targets=None -> no teacher forcing) ---
    for t in range(T):
        # embedding lookup via one-hot matmul (greedy feedback stays in-kernel)
        onehot = (lax.broadcasted_iota(jnp.int32, (B, Vd), 1) == tok).astype(F32)
        emb = jnp.dot(onehot, demb, preferred_element_type=F32)        # (B, E)
        # TODO(synk): dropout(p=0.1) on the embedding is identity in eval mode.

        # additive attention scores for all S positions at once (flat layout)
        hproj = jnp.dot(hidden, wah, preferred_element_type=F32)       # (B, A)
        hrep = jnp.concatenate([hproj] * S, axis=0)                    # (S*B, A)
        tnh = jnp.tanh(eproj + hrep)                                   # (S*B, A)
        sc = jnp.sum(tnh * ac, axis=1, keepdims=True)                  # (S*B, 1)

        # softmax over the S axis (per batch row); exact divide (parity concern)
        m = sc[0:B]
        for s in range(1, S):
            m = jnp.maximum(m, sc[s * B:(s + 1) * B])
        ex = jnp.exp(sc - jnp.concatenate([m] * S, axis=0))            # (S*B, 1)
        den = ex[0:B]
        for s in range(1, S):
            den = den + ex[s * B:(s + 1) * B]
        attw = ex / jnp.concatenate([den] * S, axis=0)                 # (S*B, 1)

        # context -> GRU input gates: one broadcast-multiply over the flat slab
        # plus a sublane-tile reduction (no per-s sliced lane broadcasts).
        wg = attw * enc_gates                                          # (S*B, 3H)
        gi_ctx = wg[0:B]
        for s in range(1, S):
            gi_ctx = gi_ctx + wg[s * B:(s + 1) * B]                    # (B, 3H)

        # decoder GRU cell ([embed ; ctx] concat folded into split input weights)
        gi = jnp.dot(emb, wih_e, preferred_element_type=F32) + gi_ctx + bih
        gh = jnp.dot(hidden, whh, preferred_element_type=F32) + bhh
        hidden = _gru_from_gates(gi, gh, hidden, H)

        # output projection (vocab padded to 128 lanes) + exact log_softmax
        logits = jnp.dot(hidden, outw, preferred_element_type=F32) + outb
        lm = jnp.max(logits, axis=1, keepdims=True)
        lse = jnp.log(jnp.sum(jnp.exp(logits - lm), axis=1, keepdims=True))
        logp_ref[t] = logits - lm - lse                                # lane-dense store

        # greedy argmax (first max index, matches topk(1)) -> next token
        iota = lax.broadcasted_iota(jnp.int32, (B, Vp), 1)
        tok = jnp.min(jnp.where(logits == lm, iota, Vp), axis=1, keepdims=True)


def run_seq2seq(emb_slab, p, max_len):
    _, B, _ = emb_slab.shape
    return pl.pallas_call(
        seq2seq_kernel,
        out_shape=jax.ShapeDtypeStruct((max_len, B, VPAD), F32),
        in_specs=[_vmem() for _ in range(23)],
        out_specs=_vmem(),
    )(emb_slab,
      p["enc_wih_f"], p["enc_whh_f"], p["enc_bih_f"], p["enc_bhh_f"],
      p["enc_wih_b"], p["enc_whh_b"], p["enc_bih_b"], p["enc_bhh_b"],
      p["dec_emb"],
      p["attn_wh"], p["attn_we_f"], p["attn_we_b"], p["attn_b"], p["attn_c"],
      p["dec_wih_e"], p["dec_wih_cf"], p["dec_wih_cb"],
      p["dec_whh"], p["dec_bih"], p["dec_bhh"],
      p["out_w_pad"], p["out_b_pad"])


# ============================ parameters ============================

def xavier_uniform(key, shape):
    fan_in, fan_out = shape[-2], shape[-1]
    bound = (6.0 / (fan_in + fan_out)) ** 0.5
    return jax.random.uniform(key, shape, F32, -bound, bound)


def init_params(key):
    ks = jax.random.split(key, 23)
    s = 0.1

    def nrm(k, shape):
        return s * jax.random.normal(k, shape, F32)

    p = {}
    p["enc_emb"] = xavier_uniform(ks[0], (INPUT_DICT, EMBED))
    # bidirectional encoder GRU; fused gate weights (in, 3H), columns r|z|n
    p["enc_wih_f"] = nrm(ks[1], (EMBED, 3 * HIDDEN))
    p["enc_whh_f"] = nrm(ks[2], (HIDDEN, 3 * HIDDEN))
    p["enc_bih_f"] = nrm(ks[3], (1, 3 * HIDDEN))
    p["enc_bhh_f"] = nrm(ks[4], (1, 3 * HIDDEN))
    p["enc_wih_b"] = nrm(ks[5], (EMBED, 3 * HIDDEN))
    p["enc_whh_b"] = nrm(ks[6], (HIDDEN, 3 * HIDDEN))
    p["enc_bih_b"] = nrm(ks[7], (1, 3 * HIDDEN))
    p["enc_bhh_b"] = nrm(ks[8], (1, 3 * HIDDEN))
    # decoder
    p["dec_emb"] = xavier_uniform(ks[9], (OUTPUT_DICT, EMBED))
    # attn Linear(3H -> A) split column-wise: hidden (H,A), enc fwd (H,A), enc bwd (H,A)
    p["attn_wh"] = nrm(ks[10], (HIDDEN, ATTN))
    p["attn_we_f"] = nrm(ks[11], (HIDDEN, ATTN))
    p["attn_we_b"] = nrm(ks[12], (HIDDEN, ATTN))
    p["attn_b"] = nrm(ks[13], (1, ATTN))
    p["attn_c"] = nrm(ks[14], (1, ATTN))          # Linear(A -> 1, bias=False), row form
    # decoder GRU input = [embed ; ctx_fwd ; ctx_bwd]; input weight pre-split
    p["dec_wih_e"] = nrm(ks[15], (EMBED, 3 * HIDDEN))
    p["dec_wih_cf"] = nrm(ks[16], (HIDDEN, 3 * HIDDEN))
    p["dec_wih_cb"] = nrm(ks[17], (HIDDEN, 3 * HIDDEN))
    p["dec_whh"] = nrm(ks[18], (HIDDEN, 3 * HIDDEN))
    p["dec_bih"] = nrm(ks[19], (1, 3 * HIDDEN))
    p["dec_bhh"] = nrm(ks[20], (1, 3 * HIDDEN))
    # output Linear(H -> V), padded once (lane-dense stores; pad lanes masked
    # out of max/softmax/argmax via a -1e30 bias).
    out_w = nrm(ks[21], (HIDDEN, OUTPUT_DICT))
    out_b = nrm(ks[22], (1, OUTPUT_DICT))
    p["out_w_pad"] = jnp.zeros((HIDDEN, VPAD), F32).at[:, :OUTPUT_DICT].set(out_w)
    p["out_b_pad"] = jnp.full((1, VPAD), NEG, F32).at[:, :OUTPUT_DICT].set(out_b)
    return p


# ============================ model glue ============================

@jax.jit
def seq2seq_forward(token_ids, params):
    B, S = token_ids.shape
    # sublane fill: pad batch to 8 rows (padded rows run on token 0, sliced off)
    ids = jnp.pad(token_ids, ((0, BPAD - B), (0, 0)))
    # encoder embedding gather (one XLA gather), then time-major slab (S, BPAD, E)
    emb = jnp.take(params["enc_emb"], ids, axis=0)               # (BPAD, S, E)
    emb = jnp.transpose(emb, (1, 0, 2)).astype(F32)              # (S, BPAD, E)
    # TODO(synk): encoder dropout(p=0.1) is identity in eval mode; not modeled.
    logp = run_seq2seq(emb, params, MAX_OUT_LEN)                 # (T, BPAD, VPAD)
    # targets=None -> no teacher forcing (greedy decode), matching the reference.
    return logp[:, :B, :OUTPUT_DICT]


# ============================ main ============================

if __name__ == "__main__":
    key = jax.random.PRNGKey(0)
    k_param, k_in = jax.random.split(key)
    params = init_params(k_param)
    inputs = jax.random.randint(k_in, (BATCH, SEQ), 0, INPUT_DICT, dtype=jnp.int32)

    out = seq2seq_forward(inputs, params)
    out = jax.block_until_ready(out)

    assert out.shape == (MAX_OUT_LEN, BATCH, OUTPUT_DICT)
    assert bool(jnp.all(jnp.isfinite(out)))
    # log-softmax rows must sum to ~1 in prob space
    probs_sum = jnp.sum(jnp.exp(out), axis=-1)
    assert bool(jnp.all(jnp.abs(probs_sum - 1.0) < 1e-3))
    print("KERNEL_OK")
</pallas_src>

<mosaic_0001>
module attributes {stable_mosaic.version = 11 : i64} {
  func.func @seq2seq_kernel(%arg0: memref<8x8x16xf32, #tpu.memory_space<vmem>>, %arg1: memref<16x96xf32, #tpu.memory_space<vmem>>, %arg2: memref<32x96xf32, #tpu.memory_space<vmem>>, %arg3: memref<1x96xf32, #tpu.memory_space<vmem>>, %arg4: memref<1x96xf32, #tpu.memory_space<vmem>>, %arg5: memref<16x96xf32, #tpu.memory_space<vmem>>, %arg6: memref<32x96xf32, #tpu.memory_space<vmem>>, %arg7: memref<1x96xf32, #tpu.memory_space<vmem>>, %arg8: memref<1x96xf32, #tpu.memory_space<vmem>>, %arg9: memref<40x16xf32, #tpu.memory_space<vmem>>, %arg10: memref<32x16xf32, #tpu.memory_space<vmem>>, %arg11: memref<32x16xf32, #tpu.memory_space<vmem>>, %arg12: memref<32x16xf32, #tpu.memory_space<vmem>>, %arg13: memref<1x16xf32, #tpu.memory_space<vmem>>, %arg14: memref<1x16xf32, #tpu.memory_space<vmem>>, %arg15: memref<16x96xf32, #tpu.memory_space<vmem>>, %arg16: memref<32x96xf32, #tpu.memory_space<vmem>>, %arg17: memref<32x96xf32, #tpu.memory_space<vmem>>, %arg18: memref<32x96xf32, #tpu.memory_space<vmem>>, %arg19: memref<1x96xf32, #tpu.memory_space<vmem>>, %arg20: memref<1x96xf32, #tpu.memory_space<vmem>>, %arg21: memref<32x128xf32, #tpu.memory_space<vmem>>, %arg22: memref<1x128xf32, #tpu.memory_space<vmem>>, %arg23: memref<4x8x128xf32, #tpu.memory_space<vmem>>) attributes {dimension_semantics = [], scalar_prefetch = 0 : i64, scratch_operands = 0 : i64, tpu.core_type = #tpu.core_type<tc>} {
    %c0 = arith.constant 0 : index
    %c0_0 = arith.constant 0 : index
    %0 = vector.load %arg1[%c0, %c0_0] : memref<16x96xf32, #tpu.memory_space<vmem>>, vector<16x96xf32>
    %c0_1 = arith.constant 0 : index
    %c0_2 = arith.constant 0 : index
    %1 = vector.load %arg2[%c0_1, %c0_2] : memref<32x96xf32, #tpu.memory_space<vmem>>, vector<32x96xf32>
    %c0_3 = arith.constant 0 : index
    %c0_4 = arith.constant 0 : index
    %2 = vector.load %arg3[%c0_3, %c0_4] : memref<1x96xf32, #tpu.memory_space<vmem>>, vector<1x96xf32>
    %c0_5 = arith.constant 0 : index
    %c0_6 = arith.constant 0 : index
    %3 = vector.load %arg4[%c0_5, %c0_6] : memref<1x96xf32, #tpu.memory_space<vmem>>, vector<1x96xf32>
    %c0_7 = arith.constant 0 : index
    %c0_8 = arith.constant 0 : index
    %4 = vector.load %arg5[%c0_7, %c0_8] : memref<16x96xf32, #tpu.memory_space<vmem>>, vector<16x96xf32>
    %c0_9 = arith.constant 0 : index
    %c0_10 = arith.constant 0 : index
    %5 = vector.load %arg6[%c0_9, %c0_10] : memref<32x96xf32, #tpu.memory_space<vmem>>, vector<32x96xf32>
    %c0_11 = arith.constant 0 : index
    %c0_12 = arith.constant 0 : index
    %6 = vector.load %arg7[%c0_11, %c0_12] : memref<1x96xf32, #tpu.memory_space<vmem>>, vector<1x96xf32>
    %c0_13 = arith.constant 0 : index
    %c0_14 = arith.constant 0 : index
    %7 = vector.load %arg8[%c0_13, %c0_14] : memref<1x96xf32, #tpu.memory_space<vmem>>, vector<1x96xf32>
    %cst = arith.constant 0.000000e+00 : f32
    %8 = vector.broadcast %cst : f32 to vector<8x32xf32>
    %c0_15 = arith.constant 0 : index
    %c0_16 = arith.constant 0 : index
    %c0_17 = arith.constant 0 : index
    %9 = vector.load %arg0[%c0_15, %c0_16, %c0_17] : memref<8x8x16xf32, #tpu.memory_space<vmem>>, vector<1x8x16xf32>
    %10 = vector.shape_cast %9 : vector<1x8x16xf32> to vector<8x16xf32>
    %cst_18 = arith.constant dense<0.000000e+00> : vector<8x96xf32>
    %11 = tpu.matmul %10, %0, %cst_18 {dimension_numbers = #tpu.dot_dimension_numbers<[1], [0], [0], [1], [0, 0, 1, 1], [], []>} : vector<8x16xf32>, vector<16x96xf32>, vector<8x96xf32> -> vector<8x96xf32>
    %12 = vector.broadcast %2 : vector<1x96xf32> to vector<8x96xf32>
    %13 = arith.addf %11, %12 : vector<8x96xf32>
    %cst_19 = arith.constant dense<0.000000e+00> : vector<8x96xf32>
    %14 = tpu.matmul %8, %1, %cst_19 {dimension_numbers = #tpu.dot_dimension_numbers<[1], [0], [0], [1], [0, 0, 1, 1], [], []>} : vector<8x32xf32>, vector<32x96xf32>, vector<8x96xf32> -> vector<8x96xf32>
    %15 = vector.broadcast %3 : vector<1x96xf32> to vector<8x96xf32>
    %16 = arith.addf %14, %15 : vector<8x96xf32>
    %17 = vector.extract_strided_slice %13 {offsets = [0, 0], sizes = [8, 32], strides = [1, 1]} : vector<8x96xf32> to vector<8x32xf32>
    %18 = vector.extract_strided_slice %16 {offsets = [0, 0], sizes = [8, 32], strides = [1, 1]} : vector<8x96xf32> to vector<8x32xf32>
    %19 = arith.addf %17, %18 : vector<8x32xf32>
    %20 = arith.negf %19 : vector<8x32xf32>
    %21 = math.exp %20 : vector<8x32xf32>
    %cst_20 = arith.constant 1.000000e+00 : f32
    %22 = vector.broadcast %cst_20 : f32 to vector<8x32xf32>
    %23 = arith.addf %22, %21 : vector<8x32xf32>
    %24 = arith.divf %22, %23 : vector<8x32xf32>
    %25 = vector.extract_strided_slice %13 {offsets = [0, 32], sizes = [8, 32], strides = [1, 1]} : vector<8x96xf32> to vector<8x32xf32>
    %26 = vector.extract_strided_slice %16 {offsets = [0, 32], sizes = [8, 32], strides = [1, 1]} : vector<8x96xf32> to vector<8x32xf32>
    %27 = arith.addf %25, %26 : vector<8x32xf32>
    %28 = arith.negf %27 : vector<8x32xf32>
    %29 = math.exp %28 : vector<8x32xf32>
    %cst_21 = arith.constant 1.000000e+00 : f32
    %30 = vector.broadcast %cst_21 : f32 to vector<8x32xf32>
    %31 = arith.addf %30, %29 : vector<8x32xf32>
    %32 = arith.divf %30, %31 : vector<8x32xf32>
    %33 = vector.extract_strided_slice %13 {offsets = [0, 64], sizes = [8, 32], strides = [1, 1]} : vector<8x96xf32> to vector<8x32xf32>
    %34 = vector.extract_strided_slice %16 {offsets = [0, 64], sizes = [8, 32], strides = [1, 1]} : vector<8x96xf32> to vector<8x32xf32>
    %35 = arith.mulf %24, %34 : vector<8x32xf32>
    %36 = arith.addf %33, %35 : vector<8x32xf32>
    %37 = math.tanh %36 : vector<8x32xf32>
    %cst_22 = arith.constant 1.000000e+00 : f32
    %38 = vector.broadcast %cst_22 : f32 to vector<8x32xf32>
    %39 = arith.subf %38, %32 : vector<8x32xf32>
    %40 = arith.mulf %39, %37 : vector<8x32xf32>
    %41 = arith.mulf %32, %8 : vector<8x32xf32>
    %42 = arith.addf %40, %41 : vector<8x32xf32>
    %c1 = arith.constant 1 : index
    %c0_23 = arith.constant 0 : index
    %c0_24 = arith.constant 0 : index
    %43 = vector.load %arg0[%c1, %c0_23, %c0_24] : memref<8x8x16xf32, #tpu.memory_space<vmem>>, vector<1x8x16xf32>
    %44 = vector.shape_cast %43 : vector<1x8x16xf32> to vector<8x16xf32>
    %cst_25 = arith.constant dense<0.000000e+00> : vector<8x96xf32>
    %45 = tpu.matmul %44, %0, %cst_25 {dimension_numbers = #tpu.dot_dimension_numbers<[1], [0], [0], [1], [0, 0, 1, 1], [], []>} : vector<8x16xf32>, vector<16x96xf32>, vector<8x96xf32> -> vector<8x96xf32>
    %46 = vector.broadcast %2 : vector<1x96xf32> to vector<8x96xf32>
    %47 = arith.addf %45, %46 : vector<8x96xf32>
    %cst_26 = arith.constant dense<0.000000e+00> : vector<8x96xf32>
    %48 = tpu.matmul %42, %1, %cst_26 {dimension_numbers = #tpu.dot_dimension_numbers<[1], [0], [0], [1], [0, 0, 1, 1], [], []>} : vector<8x32xf32>, vector<32x96xf32>, vector<8x96xf32> -> vector<8x96xf32>
    %49 = vector.broadcast %3 : vector<1x96xf32> to vector<8x96xf32>
    %50 = arith.addf %48, %49 : vector<8x96xf32>
    %51 = vector.extract_strided_slice %47 {offsets = [0, 0], sizes = [8, 32], strides = [1, 1]} : vector<8x96xf32> to vector<8x32xf32>
    %52 = vector.extract_strided_slice %50 {offsets = [0, 0], sizes = [8, 32], strides = [1, 1]} : vector<8x96xf32> to vector<8x32xf32>
    %53 = arith.addf %51, %52 : vector<8x32xf32>
    %54 = arith.negf %53 : vector<8x32xf32>
    %55 = math.exp %54 : vector<8x32xf32>
    %cst_27 = arith.constant 1.000000e+00 : f32
    %56 = vector.broadcast %cst_27 : f32 to vector<8x32xf32>
    %57 = arith.addf %56, %55 : vector<8x32xf32>
    %58 = arith.divf %56, %57 : vector<8x32xf32>
    %59 = vector.extract_strided_slice %47 {offsets = [0, 32], sizes = [8, 32], strides = [1, 1]} : vector<8x96xf32> to vector<8x32xf32>
    %60 = vector.extract_strided_slice %50 {offsets = [0, 32], sizes = [8, 32], strides = [1, 1]} : vector<8x96xf32> to vector<8x32xf32>
    %61 = arith.addf %59, %60 : vector<8x32xf32>
    %62 = arith.negf %61 : vector<8x32xf32>
    %63 = math.exp %62 : vector<8x32xf32>
    %cst_28 = arith.constant 1.000000e+00 : f32
    %64 = vector.broadcast %cst_28 : f32 to vector<8x32xf32>
    %65 = arith.addf %64, %63 : vector<8x32xf32>
    %66 = arith.divf %64, %65 : vector<8x32xf32>
    %67 = vector.extract_strided_slice %47 {offsets = [0, 64], sizes = [8, 32], strides = [1, 1]} : vector<8x96xf32> to vector<8x32xf32>
    %68 = vector.extract_strided_slice %50 {offsets = [0, 64], sizes = [8, 32], strides = [1, 1]} : vector<8x96xf32> to vector<8x32xf32>
    %69 = arith.mulf %58, %68 : vector<8x32xf32>
    %70 = arith.addf %67, %69 : vector<8x32xf32>
    %71 = math.tanh %70 : vector<8x32xf32>
    %cst_29 = arith.constant 1.000000e+00 : f32
    %72 = vector.broadcast %cst_29 : f32 to vector<8x32xf32>
    %73 = arith.subf %72, %66 : vector<8x32xf32>
    %74 = arith.mulf %73, %71 : vector<8x32xf32>
    %75 = arith.mulf %66, %42 : vector<8x32xf32>
    %76 = arith.addf %74, %75 : vector<8x32xf32>
    %c2 = arith.constant 2 : index
    %c0_30 = arith.constant 0 : index
    %c0_31 = arith.constant 0 : index
    %77 = vector.load %arg0[%c2, %c0_30, %c0_31] : memref<8x8x16xf32, #tpu.memory_space<vmem>>, vector<1x8x16xf32>
    %78 = vector.shape_cast %77 : vector<1x8x16xf32> to vector<8x16xf32>
    %cst_32 = arith.constant dense<0.000000e+00> : vector<8x96xf32>
    %79 = tpu.matmul %78, %0, %cst_32 {dimension_numbers = #tpu.dot_dimension_numbers<[1], [0], [0], [1], [0, 0, 1, 1], [], []>} : vector<8x16xf32>, vector<16x96xf32>, vector<8x96xf32> -> vector<8x96xf32>
    %80 = vector.broadcast %2 : vector<1x96xf32> to vector<8x96xf32>
    %81 = arith.addf %79, %80 : vector<8x96xf32>
    %cst_33 = arith.constant dense<0.000000e+00> : vector<8x96xf32>
    %82 = tpu.matmul %76, %1, %cst_33 {dimension_numbers = #tpu.dot_dimension_numbers<[1], [0], [0], [1], [0, 0, 1, 1], [], []>} : vector<8x32xf32>, vector<32x96xf32>, vector<8x96xf32> -> vector<8x96xf32>
    %83 = vector.broadcast %3 : vector<1x96xf32> to vector<8x96xf32>
    %84 = arith.addf %82, %83 : vector<8x96xf32>
    %85 = vector.extract_strided_slice %81 {offsets = [0, 0], sizes = [8, 32], strides = [1, 1]} : vector<8x96xf32> to vector<8x32xf32>
    %86 = vector.extract_strided_slice %84 {offsets = [0, 0], sizes = [8, 32], strides = [1, 1]} : vector<8x96xf32> to vector<8x32xf32>
    %87 = arith.addf %85, %86 : vector<8x32xf32>
    %88 = arith.negf %87 : vector<8x32xf32>
    %89 = math.exp %88 : vector<8x32xf32>
    %cst_34 = arith.constant 1.000000e+00 : f32
    %90 = vector.broadcast %cst_34 : f32 to vector<8x32xf32>
    %91 = arith.addf %90, %89 : vector<8x32xf32>
    %92 = arith.divf %90, %91 : vector<8x32xf32>
    %93 = vector.extract_strided_slice %81 {offsets = [0, 32], sizes = [8, 32], strides = [1, 1]} : vector<8x96xf32> to vector<8x32xf32>
    %94 = vector.extract_strided_slice %84 {offsets = [0, 32], sizes = [8, 32], strides = [1, 1]} : vector<8x96xf32> to vector<8x32xf32>
    %95 = arith.addf %93, %94 : vector<8x32xf32>
    %96 = arith.negf %95 : vector<8x32xf32>
    %97 = math.exp %96 : vector<8x32xf32>
    %cst_35 = arith.constant 1.000000e+00 : f32
    %98 = vector.broadcast %cst_35 : f32 to vector<8x32xf32>
    %99 = arith.addf %98, %97 : vector<8x32xf32>
    %100 = arith.divf %98, %99 : vector<8x32xf32>
    %101 = vector.extract_strided_slice %81 {offsets = [0, 64], sizes = [8, 32], strides = [1, 1]} : vector<8x96xf32> to vector<8x32xf32>
    %102 = vector.extract_strided_slice %84 {offsets = [0, 64], sizes = [8, 32], strides = [1, 1]} : vector<8x96xf32> to vector<8x32xf32>
    %103 = arith.mulf %92, %102 : vector<8x32xf32>
    %104 = arith.addf %101, %103 : vector<8x32xf32>
    %105 = math.tanh %104 : vector<8x32xf32>
    %cst_36 = arith.constant 1.000000e+00 : f32
    %106 = vector.broadcast %cst_36 : f32 to vector<8x32xf32>
    %107 = arith.subf %106, %100 : vector<8x32xf32>
    %108 = arith.mulf %107, %105 : vector<8x32xf32>
    %109 = arith.mulf %100, %76 : vector<8x32xf32>
    %110 = arith.addf %108, %109 : vector<8x32xf32>
    %c3 = arith.constant 3 : index
    %c0_37 = arith.constant 0 : index
    %c0_38 = arith.constant 0 : index
    %111 = vector.load %arg0[%c3, %c0_37, %c0_38] : memref<8x8x16xf32, #tpu.memory_space<vmem>>, vector<1x8x16xf32>
    %112 = vector.shape_cast %111 : vector<1x8x16xf32> to vector<8x16xf32>
    %cst_39 = arith.constant dense<0.000000e+00> : vector<8x96xf32>
    %113 = tpu.matmul %112, %0, %cst_39 {dimension_numbers = #tpu.dot_dimension_numbers<[1], [0], [0], [1], [0, 0, 1, 1], [], []>} : vector<8x16xf32>, vector<16x96xf32>, vector<8x96xf32> -> vector<8x96xf32>
    %114 = vector.broadcast %2 : vector<1x96xf32> to vector<8x96xf32>
    %115 = arith.addf %113, %114 : vector<8x96xf32>
    %cst_40 = arith.constant dense<0.000000e+00> : vector<8x96xf32>
    %116 = tpu.matmul %110, %1, %cst_40 {dimension_numbers = #tpu.dot_dimension_numbers<[1], [0], [0], [1], [0, 0, 1, 1], [], []>} : vector<8x32xf32>, vector<32x96xf32>, vector<8x96xf32> -> vector<8x96xf32>
    %117 = vector.broadcast %3 : vector<1x96xf32> to vector<8x96xf32>
    %118 = arith.addf %116, %117 : vector<8x96xf32>
    %119 = vector.extract_strided_slice %115 {offsets = [0, 0], sizes = [8, 32], strides = [1, 1]} : vector<8x96xf32> to vector<8x32xf32>
    %120 = vector.extract_strided_slice %118 {offsets = [0, 0], sizes = [8, 32], strides = [1, 1]} : vector<8x96xf32> to vector<8x32xf32>
    %121 = arith.addf %119, %120 : vector<8x32xf32>
    %122 = arith.negf %121 : vector<8x32xf32>
    %123 = math.exp %122 : vector<8x32xf32>
    %cst_41 = arith.constant 1.000000e+00 : f32
    %124 = vector.broadcast %cst_41 : f32 to vector<8x32xf32>
    %125 = arith.addf %124, %123 : vector<8x32xf32>
    %126 = arith.divf %124, %125 : vector<8x32xf32>
    %127 = vector.extract_strided_slice %115 {offsets = [0, 32], sizes = [8, 32], strides = [1, 1]} : vector<8x96xf32> to vector<8x32xf32>
    %128 = vector.extract_strided_slice %118 {offsets = [0, 32], sizes = [8, 32], strides = [1, 1]} : vector<8x96xf32> to vector<8x32xf32>
    %129 = arith.addf %127, %128 : vector<8x32xf32>
    %130 = arith.negf %129 : vector<8x32xf32>
    %131 = math.exp %130 : vector<8x32xf32>
    %cst_42 = arith.constant 1.000000e+00 : f32
    %132 = vector.broadcast %cst_42 : f32 to vector<8x32xf32>
    %133 = arith.addf %132, %131 : vector<8x32xf32>
    %134 = arith.divf %132, %133 : vector<8x32xf32>
    %135 = vector.extract_strided_slice %115 {offsets = [0, 64], sizes = [8, 32], strides = [1, 1]} : vector<8x96xf32> to vector<8x32xf32>
    %136 = vector.extract_strided_slice %118 {offsets = [0, 64], sizes = [8, 32], strides = [1, 1]} : vector<8x96xf32> to vector<8x32xf32>
    %137 = arith.mulf %126, %136 : vector<8x32xf32>
    %138 = arith.addf %135, %137 : vector<8x32xf32>
    %139 = math.tanh %138 : vector<8x32xf32>
    %cst_43 = arith.constant 1.000000e+00 : f32
    %140 = vector.broadcast %cst_43 : f32 to vector<8x32xf32>
    %141 = arith.subf %140, %134 : vector<8x32xf32>
    %142 = arith.mulf %141, %139 : vector<8x32xf32>
    %143 = arith.mulf %134, %110 : vector<8x32xf32>
    %144 = arith.addf %142, %143 : vector<8x32xf32>
    %c4 = arith.constant 4 : index
    %c0_44 = arith.constant 0 : index
    %c0_45 = arith.constant 0 : index
    %145 = vector.load %arg0[%c4, %c0_44, %c0_45] : memref<8x8x16xf32, #tpu.memory_space<vmem>>, vector<1x8x16xf32>
    %146 = vector.shape_cast %145 : vector<1x8x16xf32> to vector<8x16xf32>
    %cst_46 = arith.constant dense<0.000000e+00> : vector<8x96xf32>
    %147 = tpu.matmul %146, %0, %cst_46 {dimension_numbers = #tpu.dot_dimension_numbers<[1], [0], [0], [1], [0, 0, 1, 1], [], []>} : vector<8x16xf32>, vector<16x96xf32>, vector<8x96xf32> -> vector<8x96xf32>
    %148 = vector.broadcast %2 : vector<1x96xf32> to vector<8x96xf32>
    %149 = arith.addf %147, %148 : vector<8x96xf32>
    %cst_47 = arith.constant dense<0.000000e+00> : vector<8x96xf32>
    %150 = tpu.matmul %144, %1, %cst_47 {dimension_numbers = #tpu.dot_dimension_numbers<[1], [0], [0], [1], [0, 0, 1, 1], [], []>} : vector<8x32xf32>, vector<32x96xf32>, vector<8x96xf32> -> vector<8x96xf32>
    %151 = vector.broadcast %3 : vector<1x96xf32> to vector<8x96xf32>
    %152 = arith.addf %150, %151 : vector<8x96xf32>
    %153 = vector.extract_strided_slice %149 {offsets = [0, 0], sizes = [8, 32], strides = [1, 1]} : vector<8x96xf32> to vector<8x32xf32>
    %154 = vector.extract_strided_slice %152 {offsets = [0, 0], sizes = [8, 32], strides = [1, 1]} : vector<8x96xf32> to vector<8x32xf32>
    %155 = arith.addf %153, %154 : vector<8x32xf32>
    %156 = arith.negf %155 : vector<8x32xf32>
    %157 = math.exp %156 : vector<8x32xf32>
    %cst_48 = arith.constant 1.000000e+00 : f32
    %158 = vector.broadcast %cst_48 : f32 to vector<8x32xf32>
    %159 = arith.addf %158, %157 : vector<8x32xf32>
    %160 = arith.divf %158, %159 : vector<8x32xf32>
    %161 = vector.extract_strided_slice %149 {offsets = [0, 32], sizes = [8, 32], strides = [1, 1]} : vector<8x96xf32> to vector<8x32xf32>
    %162 = vector.extract_strided_slice %152 {offsets = [0, 32], sizes = [8, 32], strides = [1, 1]} : vector<8x96xf32> to vector<8x32xf32>
    %163 = arith.addf %161, %162 : vector<8x32xf32>
    %164 = arith.negf %163 : vector<8x32xf32>
    %165 = math.exp %164 : vector<8x32xf32>
    %cst_49 = arith.constant 1.000000e+00 : f32
    %166 = vector.broadcast %cst_49 : f32 to vector<8x32xf32>
    %167 = arith.addf %166, %165 : vector<8x32xf32>
    %168 = arith.divf %166, %167 : vector<8x32xf32>
    %169 = vector.extract_strided_slice %149 {offsets = [0, 64], sizes = [8, 32], strides = [1, 1]} : vector<8x96xf32> to vector<8x32xf32>
    %170 = vector.extract_strided_slice %152 {offsets = [0, 64], sizes = [8, 32], strides = [1, 1]} : vector<8x96xf32> to vector<8x32xf32>
    %171 = arith.mulf %160, %170 : vector<8x32xf32>
    %172 = arith.addf %169, %171 : vector<8x32xf32>
    %173 = math.tanh %172 : vector<8x32xf32>
    %cst_50 = arith.constant 1.000000e+00 : f32
    %174 = vector.broadcast %cst_50 : f32 to vector<8x32xf32>
    %175 = arith.subf %174, %168 : vector<8x32xf32>
    %176 = arith.mulf %175, %173 : vector<8x32xf32>
    %177 = arith.mulf %168, %144 : vector<8x32xf32>
    %178 = arith.addf %176, %177 : vector<8x32xf32>
    %c5 = arith.constant 5 : index
    %c0_51 = arith.constant 0 : index
    %c0_52 = arith.constant 0 : index
    %179 = vector.load %arg0[%c5, %c0_51, %c0_52] : memref<8x8x16xf32, #tpu.memory_space<vmem>>, vector<1x8x16xf32>
    %180 = vector.shape_cast %179 : vector<1x8x16xf32> to vector<8x16xf32>
    %cst_53 = arith.constant dense<0.000000e+00> : vector<8x96xf32>
    %181 = tpu.matmul %180, %0, %cst_53 {dimension_numbers = #tpu.dot_dimension_numbers<[1], [0], [0], [1], [0, 0, 1, 1], [], []>} : vector<8x16xf32>, vector<16x96xf32>, vector<8x96xf32> -> vector<8x96xf32>
    %182 = vector.broadcast %2 : vector<1x96xf32> to vector<8x96xf32>
    %183 = arith.addf %181, %182 : vector<8x96xf32>
    %cst_54 = arith.constant dense<0.000000e+00> : vector<8x96xf32>
    %184 = tpu.matmul %178, %1, %cst_54 {dimension_numbers = #tpu.dot_dimension_numbers<[1], [0], [0], [1], [0, 0, 1, 1], [], []>} : vector<8x32xf32>, vector<32x96xf32>, vector<8x96xf32> -> vector<8x96xf32>
    %185 = vector.broadcast %3 : vector<1x96xf32> to vector<8x96xf32>
    %186 = arith.addf %184, %185 : vector<8x96xf32>
    %187 = vector.extract_strided_slice %183 {offsets = [0, 0], sizes = [8, 32], strides = [1, 1]} : vector<8x96xf32> to vector<8x32xf32>
    %188 = vector.extract_strided_slice %186 {offsets = [0, 0], sizes = [8, 32], strides = [1, 1]} : vector<8x96xf32> to vector<8x32xf32>
    %189 = arith.addf %187, %188 : vector<8x32xf32>
    %190 = arith.negf %189 : vector<8x32xf32>
    %191 = math.exp %190 : vector<8x32xf32>
    %cst_55 = arith.constant 1.000000e+00 : f32
    %192 = vector.broadcast %cst_55 : f32 to vector<8x32xf32>
    %193 = arith.addf %192, %191 : vector<8x32xf32>
    %194 = arith.divf %192, %193 : vector<8x32xf32>
    %195 = vector.extract_strided_slice %183 {offsets = [0, 32], sizes = [8, 32], strides = [1, 1]} : vector<8x96xf32> to vector<8x32xf32>
    %196 = vector.extract_strided_slice %186 {offsets = [0, 32], sizes = [8, 32], strides = [1, 1]} : vector<8x96xf32> to vector<8x32xf32>
    %197 = arith.addf %195, %196 : vector<8x32xf32>
    %198 = arith.negf %197 : vector<8x32xf32>
    %199 = math.exp %198 : vector<8x32xf32>
    %cst_56 = arith.constant 1.000000e+00 : f32
    %200 = vector.broadcast %cst_56 : f32 to vector<8x32xf32>
    %201 = arith.addf %200, %199 : vector<8x32xf32>
    %202 = arith.divf %200, %201 : vector<8x32xf32>
    %203 = vector.extract_strided_slice %183 {offsets = [0, 64], sizes = [8, 32], strides = [1, 1]} : vector<8x96xf32> to vector<8x32xf32>
    %204 = vector.extract_strided_slice %186 {offsets = [0, 64], sizes = [8, 32], strides = [1, 1]} : vector<8x96xf32> to vector<8x32xf32>
    %205 = arith.mulf %194, %204 : vector<8x32xf32>
    %206 = arith.addf %203, %205 : vector<8x32xf32>
    %207 = math.tanh %206 : vector<8x32xf32>
    %cst_57 = arith.constant 1.000000e+00 : f32
    %208 = vector.broadcast %cst_57 : f32 to vector<8x32xf32>
    %209 = arith.subf %208, %202 : vector<8x32xf32>
    %210 = arith.mulf %209, %207 : vector<8x32xf32>
    %211 = arith.mulf %202, %178 : vector<8x32xf32>
    %212 = arith.addf %210, %211 : vector<8x32xf32>
    %c6 = arith.constant 6 : index
    %c0_58 = arith.constant 0 : index
    %c0_59 = arith.constant 0 : index
    %213 = vector.load %arg0[%c6, %c0_58, %c0_59] : memref<8x8x16xf32, #tpu.memory_space<vmem>>, vector<1x8x16xf32>
    %214 = vector.shape_cast %213 : vector<1x8x16xf32> to vector<8x16xf32>
    %cst_60 = arith.constant dense<0.000000e+00> : vector<8x96xf32>
    %215 = tpu.matmul %214, %0, %cst_60 {dimension_numbers = #tpu.dot_dimension_numbers<[1], [0], [0], [1], [0, 0, 1, 1], [], []>} : vector<8x16xf32>, vector<16x96xf32>, vector<8x96xf32> -> vector<8x96xf32>
    %216 = vector.broadcast %2 : vector<1x96xf32> to vector<8x96xf32>
    %217 = arith.addf %215, %216 : vector<8x96xf32>
    %cst_61 = arith.constant dense<0.000000e+00> : vector<8x96xf32>
    %218 = tpu.matmul %212, %1, %cst_61 {dimension_numbers = #tpu.dot_dimension_numbers<[1], [0], [0], [1], [0, 0, 1, 1], [], []>} : vector<8x32xf32>, vector<32x96xf32>, vector<8x96xf32> -> vector<8x96xf32>
    %219 = vector.broadcast %3 : vector<1x96xf32> to vector<8x96xf32>
    %220 = arith.addf %218, %219 : vector<8x96xf32>
    %221 = vector.extract_strided_slice %217 {offsets = [0, 0], sizes = [8, 32], strides = [1, 1]} : vector<8x96xf32> to vector<8x32xf32>
    %222 = vector.extract_strided_slice %220 {offsets = [0, 0], sizes = [8, 32], strides = [1, 1]} : vector<8x96xf32> to vector<8x32xf32>
    %223 = arith.addf %221, %222 : vector<8x32xf32>
    %224 = arith.negf %223 : vector<8x32xf32>
    %225 = math.exp %224 : vector<8x32xf32>
    %cst_62 = arith.constant 1.000000e+00 : f32
    %226 = vector.broadcast %cst_62 : f32 to vector<8x32xf32>
    %227 = arith.addf %226, %225 : vector<8x32xf32>
    %228 = arith.divf %226, %227 : vector<8x32xf32>
    %229 = vector.extract_strided_slice %217 {offsets = [0, 32], sizes = [8, 32], strides = [1, 1]} : vector<8x96xf32> to vector<8x32xf32>
    %230 = vector.extract_strided_slice %220 {offsets = [0, 32], sizes = [8, 32], strides = [1, 1]} : vector<8x96xf32> to vector<8x32xf32>
    %231 = arith.addf %229, %230 : vector<8x32xf32>
    %232 = arith.negf %231 : vector<8x32xf32>
    %233 = math.exp %232 : vector<8x32xf32>
    %cst_63 = arith.constant 1.000000e+00 : f32
    %234 = vector.broadcast %cst_63 : f32 to vector<8x32xf32>
    %235 = arith.addf %234, %233 : vector<8x32xf32>
    %236 = arith.divf %234, %235 : vector<8x32xf32>
    %237 = vector.extract_strided_slice %217 {offsets = [0, 64], sizes = [8, 32], strides = [1, 1]} : vector<8x96xf32> to vector<8x32xf32>
    %238 = vector.extract_strided_slice %220 {offsets = [0, 64], sizes = [8, 32], strides = [1, 1]} : vector<8x96xf32> to vector<8x32xf32>
    %239 = arith.mulf %228, %238 : vector<8x32xf32>
    %240 = arith.addf %237, %239 : vector<8x32xf32>
    %241 = math.tanh %240 : vector<8x32xf32>
    %cst_64 = arith.constant 1.000000e+00 : f32
    %242 = vector.broadcast %cst_64 : f32 to vector<8x32xf32>
    %243 = arith.subf %242, %236 : vector<8x32xf32>
    %244 = arith.mulf %243, %241 : vector<8x32xf32>
    %245 = arith.mulf %236, %212 : vector<8x32xf32>
    %246 = arith.addf %244, %245 : vector<8x32xf32>
    %c7 = arith.constant 7 : index
    %c0_65 = arith.constant 0 : index
    %c0_66 = arith.constant 0 : index
    %247 = vector.load %arg0[%c7, %c0_65, %c0_66] : memref<8x8x16xf32, #tpu.memory_space<vmem>>, vector<1x8x16xf32>
    %248 = vector.shape_cast %247 : vector<1x8x16xf32> to vector<8x16xf32>
    %cst_67 = arith.constant dense<0.000000e+00> : vector<8x96xf32>
    %249 = tpu.matmul %248, %0, %cst_67 {dimension_numbers = #tpu.dot_dimension_numbers<[1], [0], [0], [1], [0, 0, 1, 1], [], []>} : vector<8x16xf32>, vector<16x96xf32>, vector<8x96xf32> -> vector<8x96xf32>
    %250 = vector.broadcast %2 : vector<1x96xf32> to vector<8x96xf32>
    %251 = arith.addf %249, %250 : vector<8x96xf32>
    %cst_68 = arith.constant dense<0.000000e+00> : vector<8x96xf32>
    %252 = tpu.matmul %246, %1, %cst_68 {dimension_numbers = #tpu.dot_dimension_numbers<[1], [0], [0], [1], [0, 0, 1, 1], [], []>} : vector<8x32xf32>, vector<32x96xf32>, vector<8x96xf32> -> vector<8x96xf32>
    %253 = vector.broadcast %3 : vector<1x96xf32> to vector<8x96xf32>
    %254 = arith.addf %252, %253 : vector<8x96xf32>
    %255 = vector.extract_strided_slice %251 {offsets = [0, 0], sizes = [8, 32], strides = [1, 1]} : vector<8x96xf32> to vector<8x32xf32>
    %256 = vector.extract_strided_slice %254 {offsets = [0, 0], sizes = [8, 32], strides = [1, 1]} : vector<8x96xf32> to vector<8x32xf32>
    %257 = arith.addf %255, %256 : vector<8x32xf32>
    %258 = arith.negf %257 : vector<8x32xf32>
    %259 = math.exp %258 : vector<8x32xf32>
    %cst_69 = arith.constant 1.000000e+00 : f32
    %260 = vector.broadcast %cst_69 : f32 to vector<8x32xf32>
    %261 = arith.addf %260, %259 : vector<8x32xf32>
    %262 = arith.divf %260, %261 : vector<8x32xf32>
    %263 = vector.extract_strided_slice %251 {offsets = [0, 32], sizes = [8, 32], strides = [1, 1]} : vector<8x96xf32> to vector<8x32xf32>
    %264 = vector.extract_strided_slice %254 {offsets = [0, 32], sizes = [8, 32], strides = [1, 1]} : vector<8x96xf32> to vector<8x32xf32>
    %265 = arith.addf %263, %264 : vector<8x32xf32>
    %266 = arith.negf %265 : vector<8x32xf32>
    %267 = math.exp %266 : vector<8x32xf32>
    %cst_70 = arith.constant 1.000000e+00 : f32
    %268 = vector.broadcast %cst_70 : f32 to vector<8x32xf32>
    %269 = arith.addf %268, %267 : vector<8x32xf32>
    %270 = arith.divf %268, %269 : vector<8x32xf32>
    %271 = vector.extract_strided_slice %251 {offsets = [0, 64], sizes = [8, 32], strides = [1, 1]} : vector<8x96xf32> to vector<8x32xf32>
    %272 = vector.extract_strided_slice %254 {offsets = [0, 64], sizes = [8, 32], strides = [1, 1]} : vector<8x96xf32> to vector<8x32xf32>
    %273 = arith.mulf %262, %272 : vector<8x32xf32>
    %274 = arith.addf %271, %273 : vector<8x32xf32>
    %275 = math.tanh %274 : vector<8x32xf32>
    %cst_71 = arith.constant 1.000000e+00 : f32
    %276 = vector.broadcast %cst_71 : f32 to vector<8x32xf32>
    %277 = arith.subf %276, %270 : vector<8x32xf32>
    %278 = arith.mulf %277, %275 : vector<8x32xf32>
    %279 = arith.mulf %270, %246 : vector<8x32xf32>
    %280 = arith.addf %278, %279 : vector<8x32xf32>
    %cst_72 = arith.constant 0.000000e+00 : f32
    %281 = vector.broadcast %cst_72 : f32 to vector<8x32xf32>
    %c7_73 = arith.constant 7 : index
    %c0_74 = arith.constant 0 : index
    %c0_75 = arith.constant 0 : index
    %282 = vector.load %arg0[%c7_73, %c0_74, %c0_75] : memref<8x8x16xf32, #tpu.memory_space<vmem>>, vector<1x8x16xf32>
    %283 = vector.shape_cast %282 : vector<1x8x16xf32> to vector<8x16xf32>
    %cst_76 = arith.constant dense<0.000000e+00> : vector<8x96xf32>
    %284 = tpu.matmul %283, %4, %cst_76 {dimension_numbers = #tpu.dot_dimension_numbers<[1], [0], [0], [1], [0, 0, 1, 1], [], []>} : vector<8x16xf32>, vector<16x96xf32>, vector<8x96xf32> -> vector<8x96xf32>
    %285 = vector.broadcast %6 : vector<1x96xf32> to vector<8x96xf32>
    %286 = arith.addf %284, %285 : vector<8x96xf32>
    %cst_77 = arith.constant dense<0.000000e+00> : vector<8x96xf32>
    %287 = tpu.matmul %281, %5, %cst_77 {dimension_numbers = #tpu.dot_dimension_numbers<[1], [0], [0], [1], [0, 0, 1, 1], [], []>} : vector<8x32xf32>, vector<32x96xf32>, vector<8x96xf32> -> vector<8x96xf32>
    %288 = vector.broadcast %7 : vector<1x96xf32> to vector<8x96xf32>
    %289 = arith.addf %287, %288 : vector<8x96xf32>
    %290 = vector.extract_strided_slice %286 {offsets = [0, 0], sizes = [8, 32], strides = [1, 1]} : vector<8x96xf32> to vector<8x32xf32>
    %291 = vector.extract_strided_slice %289 {offsets = [0, 0], sizes = [8, 32], strides = [1, 1]} : vector<8x96xf32> to vector<8x32xf32>
    %292 = arith.addf %290, %291 : vector<8x32xf32>
    %293 = arith.negf %292 : vector<8x32xf32>
    %294 = math.exp %293 : vector<8x32xf32>
    %cst_78 = arith.constant 1.000000e+00 : f32
    %295 = vector.broadcast %cst_78 : f32 to vector<8x32xf32>
    %296 = arith.addf %295, %294 : vector<8x32xf32>
    %297 = arith.divf %295, %296 : vector<8x32xf32>
    %298 = vector.extract_strided_slice %286 {offsets = [0, 32], sizes = [8, 32], strides = [1, 1]} : vector<8x96xf32> to vector<8x32xf32>
    %299 = vector.extract_strided_slice %289 {offsets = [0, 32], sizes = [8, 32], strides = [1, 1]} : vector<8x96xf32> to vector<8x32xf32>
    %300 = arith.addf %298, %299 : vector<8x32xf32>
    %301 = arith.negf %300 : vector<8x32xf32>
    %302 = math.exp %301 : vector<8x32xf32>
    %cst_79 = arith.constant 1.000000e+00 : f32
    %303 = vector.broadcast %cst_79 : f32 to vector<8x32xf32>
    %304 = arith.addf %303, %302 : vector<8x32xf32>
    %305 = arith.divf %303, %304 : vector<8x32xf32>
    %306 = vector.extract_strided_slice %286 {offsets = [0, 64], sizes = [8, 32], strides = [1, 1]} : vector<8x96xf32> to vector<8x32xf32>
    %307 = vector.extract_strided_slice %289 {offsets = [0, 64], sizes = [8, 32], strides = [1, 1]} : vector<8x96xf32> to vector<8x32xf32>
    %308 = arith.mulf %297, %307 : vector<8x32xf32>
    %309 = arith.addf %306, %308 : vector<8x32xf32>
    %310 = math.tanh %309 : vector<8x32xf32>
    %cst_80 = arith.constant 1.000000e+00 : f32
    %311 = vector.broadcast %cst_80 : f32 to vector<8x32xf32>
    %312 = arith.subf %311, %305 : vector<8x32xf32>
    %313 = arith.mulf %312, %310 : vector<8x32xf32>
    %314 = arith.mulf %305, %281 : vector<8x32xf32>
    %315 = arith.addf %313, %314 : vector<8x32xf32>
    %c6_81 = arith.constant 6 : index
    %c0_82 = arith.constant 0 : index
    %c0_83 = arith.constant 0 : index
    %316 = vector.load %arg0[%c6_81, %c0_82, %c0_83] : memref<8x8x16xf32, #tpu.memory_space<vmem>>, vector<1x8x16xf32>
    %317 = vector.shape_cast %316 : vector<1x8x16xf32> to vector<8x16xf32>
    %cst_84 = arith.constant dense<0.000000e+00> : vector<8x96xf32>
    %318 = tpu.matmul %317, %4, %cst_84 {dimension_numbers = #tpu.dot_dimension_numbers<[1], [0], [0], [1], [0, 0, 1, 1], [], []>} : vector<8x16xf32>, vector<16x96xf32>, vector<8x96xf32> -> vector<8x96xf32>
    %319 = vector.broadcast %6 : vector<1x96xf32> to vector<8x96xf32>
    %320 = arith.addf %318, %319 : vector<8x96xf32>
    %cst_85 = arith.constant dense<0.000000e+00> : vector<8x96xf32>
    %321 = tpu.matmul %315, %5, %cst_85 {dimension_numbers = #tpu.dot_dimension_numbers<[1], [0], [0], [1], [0, 0, 1, 1], [], []>} : vector<8x32xf32>, vector<32x96xf32>, vector<8x96xf32> -> vector<8x96xf32>
    %322 = vector.broadcast %7 : vector<1x96xf32> to vector<8x96xf32>
    %323 = arith.addf %321, %322 : vector<8x96xf32>
    %324 = vector.extract_strided_slice %320 {offsets = [0, 0], sizes = [8, 32], strides = [1, 1]} : vector<8x96xf32> to vector<8x32xf32>
    %325 = vector.extract_strided_slice %323 {offsets = [0, 0], sizes = [8, 32], strides = [1, 1]} : vector<8x96xf32> to vector<8x32xf32>
    %326 = arith.addf %324, %325 : vector<8x32xf32>
    %327 = arith.negf %326 : vector<8x32xf32>
    %328 = math.exp %327 : vector<8x32xf32>
    %cst_86 = arith.constant 1.000000e+00 : f32
    %329 = vector.broadcast %cst_86 : f32 to vector<8x32xf32>
    %330 = arith.addf %329, %328 : vector<8x32xf32>
    %331 = arith.divf %329, %330 : vector<8x32xf32>
    %332 = vector.extract_strided_slice %320 {offsets = [0, 32], sizes = [8, 32], strides = [1, 1]} : vector<8x96xf32> to vector<8x32xf32>
    %333 = vector.extract_strided_slice %323 {offsets = [0, 32], sizes = [8, 32], strides = [1, 1]} : vector<8x96xf32> to vector<8x32xf32>
    %334 = arith.addf %332, %333 : vector<8x32xf32>
    %335 = arith.negf %334 : vector<8x32xf32>
    %336 = math.exp %335 : vector<8x32xf32>
    %cst_87 = arith.constant 1.000000e+00 : f32
    %337 = vector.broadcast %cst_87 : f32 to vector<8x32xf32>
    %338 = arith.addf %337, %336 : vector<8x32xf32>
    %339 = arith.divf %337, %338 : vector<8x32xf32>
    %340 = vector.extract_strided_slice %320 {offsets = [0, 64], sizes = [8, 32], strides = [1, 1]} : vector<8x96xf32> to vector<8x32xf32>
    %341 = vector.extract_strided_slice %323 {offsets = [0, 64], sizes = [8, 32], strides = [1, 1]} : vector<8x96xf32> to vector<8x32xf32>
    %342 = arith.mulf %331, %341 : vector<8x32xf32>
    %343 = arith.addf %340, %342 : vector<8x32xf32>
    %344 = math.tanh %343 : vector<8x32xf32>
    %cst_88 = arith.constant 1.000000e+00 : f32
    %345 = vector.broadcast %cst_88 : f32 to vector<8x32xf32>
    %346 = arith.subf %345, %339 : vector<8x32xf32>
    %347 = arith.mulf %346, %344 : vector<8x32xf32>
    %348 = arith.mulf %339, %315 : vector<8x32xf32>
    %349 = arith.addf %347, %348 : vector<8x32xf32>
    %c5_89 = arith.constant 5 : index
    %c0_90 = arith.constant 0 : index
    %c0_91 = arith.constant 0 : index
    %350 = vector.load %arg0[%c5_89, %c0_90, %c0_91] : memref<8x8x16xf32, #tpu.memory_space<vmem>>, vector<1x8x16xf32>
    %351 = vector.shape_cast %350 : vector<1x8x16xf32> to vector<8x16xf32>
    %cst_92 = arith.constant dense<0.000000e+00> : vector<8x96xf32>
    %352 = tpu.matmul %351, %4, %cst_92 {dimension_numbers = #tpu.dot_dimension_numbers<[1], [0], [0], [1], [0, 0, 1, 1], [], []>} : vector<8x16xf32>, vector<16x96xf32>, vector<8x96xf32> -> vector<8x96xf32>
    %353 = vector.broadcast %6 : vector<1x96xf32> to vector<8x96xf32>
    %354 = arith.addf %352, %353 : vector<8x96xf32>
    %cst_93 = arith.constant dense<0.000000e+00> : vector<8x96xf32>
    %355 = tpu.matmul %349, %5, %cst_93 {dimension_numbers = #tpu.dot_dimension_numbers<[1], [0], [0], [1], [0, 0, 1, 1], [], []>} : vector<8x32xf32>, vector<32x96xf32>, vector<8x96xf32> -> vector<8x96xf32>
    %356 = vector.broadcast %7 : vector<1x96xf32> to vector<8x96xf32>
    %357 = arith.addf %355, %356 : vector<8x96xf32>
    %358 = vector.extract_strided_slice %354 {offsets = [0, 0], sizes = [8, 32], strides = [1, 1]} : vector<8x96xf32> to vector<8x32xf32>
    %359 = vector.extract_strided_slice %357 {offsets = [0, 0], sizes = [8, 32], strides = [1, 1]} : vector<8x96xf32> to vector<8x32xf32>
    %360 = arith.addf %358, %359 : vector<8x32xf32>
    %361 = arith.negf %360 : vector<8x32xf32>
    %362 = math.exp %361 : vector<8x32xf32>
    %cst_94 = arith.constant 1.000000e+00 : f32
    %363 = vector.broadcast %cst_94 : f32 to vector<8x32xf32>
    %364 = arith.addf %363, %362 : vector<8x32xf32>
    %365 = arith.divf %363, %364 : vector<8x32xf32>
    %366 = vector.extract_strided_slice %354 {offsets = [0, 32], sizes = [8, 32], strides = [1, 1]} : vector<8x96xf32> to vector<8x32xf32>
    %367 = vector.extract_strided_slice %357 {offsets = [0, 32], sizes = [8, 32], strides = [1, 1]} : vector<8x96xf32> to vector<8x32xf32>
    %368 = arith.addf %366, %367 : vector<8x32xf32>
    %369 = arith.negf %368 : vector<8x32xf32>
    %370 = math.exp %369 : vector<8x32xf32>
    %cst_95 = arith.constant 1.000000e+00 : f32
    %371 = vector.broadcast %cst_95 : f32 to vector<8x32xf32>
    %372 = arith.addf %371, %370 : vector<8x32xf32>
    %373 = arith.divf %371, %372 : vector<8x32xf32>
    %374 = vector.extract_strided_slice %354 {offsets = [0, 64], sizes = [8, 32], strides = [1, 1]} : vector<8x96xf32> to vector<8x32xf32>
    %375 = vector.extract_strided_slice %357 {offsets = [0, 64], sizes = [8, 32], strides = [1, 1]} : vector<8x96xf32> to vector<8x32xf32>
    %376 = arith.mulf %365, %375 : vector<8x32xf32>
    %377 = arith.addf %374, %376 : vector<8x32xf32>
    %378 = math.tanh %377 : vector<8x32xf32>
    %cst_96 = arith.constant 1.000000e+00 : f32
    %379 = vector.broadcast %cst_96 : f32 to vector<8x32xf32>
    %380 = arith.subf %379, %373 : vector<8x32xf32>
    %381 = arith.mulf %380, %378 : vector<8x32xf32>
    %382 = arith.mulf %373, %349 : vector<8x32xf32>
    %383 = arith.addf %381, %382 : vector<8x32xf32>
    %c4_97 = arith.constant 4 : index
    %c0_98 = arith.constant 0 : index
    %c0_99 = arith.constant 0 : index
    %384 = vector.load %arg0[%c4_97, %c0_98, %c0_99] : memref<8x8x16xf32, #tpu.memory_space<vmem>>, vector<1x8x16xf32>
    %385 = vector.shape_cast %384 : vector<1x8x16xf32> to vector<8x16xf32>
    %cst_100 = arith.constant dense<0.000000e+00> : vector<8x96xf32>
    %386 = tpu.matmul %385, %4, %cst_100 {dimension_numbers = #tpu.dot_dimension_numbers<[1], [0], [0], [1], [0, 0, 1, 1], [], []>} : vector<8x16xf32>, vector<16x96xf32>, vector<8x96xf32> -> vector<8x96xf32>
    %387 = vector.broadcast %6 : vector<1x96xf32> to vector<8x96xf32>
    %388 = arith.addf %386, %387 : vector<8x96xf32>
    %cst_101 = arith.constant dense<0.000000e+00> : vector<8x96xf32>
    %389 = tpu.matmul %383, %5, %cst_101 {dimension_numbers = #tpu.dot_dimension_numbers<[1], [0], [0], [1], [0, 0, 1, 1], [], []>} : vector<8x32xf32>, vector<32x96xf32>, vector<8x96xf32> -> vector<8x96xf32>
    %390 = vector.broadcast %7 : vector<1x96xf32> to vector<8x96xf32>
    %391 = arith.addf %389, %390 : vector<8x96xf32>
    %392 = vector.extract_strided_slice %388 {offsets = [0, 0], sizes = [8, 32], strides = [1, 1]} : vector<8x96xf32> to vector<8x32xf32>
    %393 = vector.extract_strided_slice %391 {offsets = [0, 0], sizes = [8, 32], strides = [1, 1]} : vector<8x96xf32> to vector<8x32xf32>
    %394 = arith.addf %392, %393 : vector<8x32xf32>
    %395 = arith.negf %394 : vector<8x32xf32>
    %396 = math.exp %395 : vector<8x32xf32>
    %cst_102 = arith.constant 1.000000e+00 : f32
    %397 = vector.broadcast %cst_102 : f32 to vector<8x32xf32>
    %398 = arith.addf %397, %396 : vector<8x32xf32>
    %399 = arith.divf %397, %398 : vector<8x32xf32>
    %400 = vector.extract_strided_slice %388 {offsets = [0, 32], sizes = [8, 32], strides = [1, 1]} : vector<8x96xf32> to vector<8x32xf32>
    %401 = vector.extract_strided_slice %391 {offsets = [0, 32], sizes = [8, 32], strides = [1, 1]} : vector<8x96xf32> to vector<8x32xf32>
    %402 = arith.addf %400, %401 : vector<8x32xf32>
    %403 = arith.negf %402 : vector<8x32xf32>
    %404 = math.exp %403 : vector<8x32xf32>
    %cst_103 = arith.constant 1.000000e+00 : f32
    %405 = vector.broadcast %cst_103 : f32 to vector<8x32xf32>
    %406 = arith.addf %405, %404 : vector<8x32xf32>
    %407 = arith.divf %405, %406 : vector<8x32xf32>
    %408 = vector.extract_strided_slice %388 {offsets = [0, 64], sizes = [8, 32], strides = [1, 1]} : vector<8x96xf32> to vector<8x32xf32>
    %409 = vector.extract_strided_slice %391 {offsets = [0, 64], sizes = [8, 32], strides = [1, 1]} : vector<8x96xf32> to vector<8x32xf32>
    %410 = arith.mulf %399, %409 : vector<8x32xf32>
    %411 = arith.addf %408, %410 : vector<8x32xf32>
    %412 = math.tanh %411 : vector<8x32xf32>
    %cst_104 = arith.constant 1.000000e+00 : f32
    %413 = vector.broadcast %cst_104 : f32 to vector<8x32xf32>
    %414 = arith.subf %413, %407 : vector<8x32xf32>
    %415 = arith.mulf %414, %412 : vector<8x32xf32>
    %416 = arith.mulf %407, %383 : vector<8x32xf32>
    %417 = arith.addf %415, %416 : vector<8x32xf32>
    %c3_105 = arith.constant 3 : index
    %c0_106 = arith.constant 0 : index
    %c0_107 = arith.constant 0 : index
    %418 = vector.load %arg0[%c3_105, %c0_106, %c0_107] : memref<8x8x16xf32, #tpu.memory_space<vmem>>, vector<1x8x16xf32>
    %419 = vector.shape_cast %418 : vector<1x8x16xf32> to vector<8x16xf32>
    %cst_108 = arith.constant dense<0.000000e+00> : vector<8x96xf32>
    %420 = tpu.matmul %419, %4, %cst_108 {dimension_numbers = #tpu.dot_dimension_numbers<[1], [0], [0], [1], [0, 0, 1, 1], [], []>} : vector<8x16xf32>, vector<16x96xf32>, vector<8x96xf32> -> vector<8x96xf32>
    %421 = vector.broadcast %6 : vector<1x96xf32> to vector<8x96xf32>
    %422 = arith.addf %420, %421 : vector<8x96xf32>
    %cst_109 = arith.constant dense<0.000000e+00> : vector<8x96xf32>
    %423 = tpu.matmul %417, %5, %cst_109 {dimension_numbers = #tpu.dot_dimension_numbers<[1], [0], [0], [1], [0, 0, 1, 1], [], []>} : vector<8x32xf32>, vector<32x96xf32>, vector<8x96xf32> -> vector<8x96xf32>
    %424 = vector.broadcast %7 : vector<1x96xf32> to vector<8x96xf32>
    %425 = arith.addf %423, %424 : vector<8x96xf32>
    %426 = vector.extract_strided_slice %422 {offsets = [0, 0], sizes = [8, 32], strides = [1, 1]} : vector<8x96xf32> to vector<8x32xf32>
    %427 = vector.extract_strided_slice %425 {offsets = [0, 0], sizes = [8, 32], strides = [1, 1]} : vector<8x96xf32> to vector<8x32xf32>
    %428 = arith.addf %426, %427 : vector<8x32xf32>
    %429 = arith.negf %428 : vector<8x32xf32>
    %430 = math.exp %429 : vector<8x32xf32>
    %cst_110 = arith.constant 1.000000e+00 : f32
    %431 = vector.broadcast %cst_110 : f32 to vector<8x32xf32>
    %432 = arith.addf %431, %430 : vector<8x32xf32>
    %433 = arith.divf %431, %432 : vector<8x32xf32>
    %434 = vector.extract_strided_slice %422 {offsets = [0, 32], sizes = [8, 32], strides = [1, 1]} : vector<8x96xf32> to vector<8x32xf32>
    %435 = vector.extract_strided_slice %425 {offsets = [0, 32], sizes = [8, 32], strides = [1, 1]} : vector<8x96xf32> to vector<8x32xf32>
    %436 = arith.addf %434, %435 : vector<8x32xf32>
    %437 = arith.negf %436 : vector<8x32xf32>
    %438 = math.exp %437 : vector<8x32xf32>
    %cst_111 = arith.constant 1.000000e+00 : f32
    %439 = vector.broadcast %cst_111 : f32 to vector<8x32xf32>
    %440 = arith.addf %439, %438 : vector<8x32xf32>
    %441 = arith.divf %439, %440 : vector<8x32xf32>
    %442 = vector.extract_strided_slice %422 {offsets = [0, 64], sizes = [8, 32], strides = [1, 1]} : vector<8x96xf32> to vector<8x32xf32>
    %443 = vector.extract_strided_slice %425 {offsets = [0, 64], sizes = [8, 32], strides = [1, 1]} : vector<8x96xf32> to vector<8x32xf32>
    %444 = arith.mulf %433, %443 : vector<8x32xf32>
    %445 = arith.addf %442, %444 : vector<8x32xf32>
    %446 = math.tanh %445 : vector<8x32xf32>
    %cst_112 = arith.constant 1.000000e+00 : f32
    %447 = vector.broadcast %cst_112 : f32 to vector<8x32xf32>
    %448 = arith.subf %447, %441 : vector<8x32xf32>
    %449 = arith.mulf %448, %446 : vector<8x32xf32>
    %450 = arith.mulf %441, %417 : vector<8x32xf32>
    %451 = arith.addf %449, %450 : vector<8x32xf32>
    %c2_113 = arith.constant 2 : index
    %c0_114 = arith.constant 0 : index
    %c0_115 = arith.constant 0 : index
    %452 = vector.load %arg0[%c2_113, %c0_114, %c0_115] : memref<8x8x16xf32, #tpu.memory_space<vmem>>, vector<1x8x16xf32>
    %453 = vector.shape_cast %452 : vector<1x8x16xf32> to vector<8x16xf32>
    %cst_116 = arith.constant dense<0.000000e+00> : vector<8x96xf32>
    %454 = tpu.matmul %453, %4, %cst_116 {dimension_numbers = #tpu.dot_dimension_numbers<[1], [0], [0], [1], [0, 0, 1, 1], [], []>} : vector<8x16xf32>, vector<16x96xf32>, vector<8x96xf32> -> vector<8x96xf32>
    %455 = vector.broadcast %6 : vector<1x96xf32> to vector<8x96xf32>
    %456 = arith.addf %454, %455 : vector<8x96xf32>
    %cst_117 = arith.constant dense<0.000000e+00> : vector<8x96xf32>
    %457 = tpu.matmul %451, %5, %cst_117 {dimension_numbers = #tpu.dot_dimension_numbers<[1], [0], [0], [1], [0, 0, 1, 1], [], []>} : vector<8x32xf32>, vector<32x96xf32>, vector<8x96xf32> -> vector<8x96xf32>
    %458 = vector.broadcast %7 : vector<1x96xf32> to vector<8x96xf32>
    %459 = arith.addf %457, %458 : vector<8x96xf32>
    %460 = vector.extract_strided_slice %456 {offsets = [0, 0], sizes = [8, 32], strides = [1, 1]} : vector<8x96xf32> to vector<8x32xf32>
    %461 = vector.extract_strided_slice %459 {offsets = [0, 0], sizes = [8, 32], strides = [1, 1]} : vector<8x96xf32> to vector<8x32xf32>
    %462 = arith.addf %460, %461 : vector<8x32xf32>
    %463 = arith.negf %462 : vector<8x32xf32>
    %464 = math.exp %463 : vector<8x32xf32>
    %cst_118 = arith.constant 1.000000e+00 : f32
    %465 = vector.broadcast %cst_118 : f32 to vector<8x32xf32>
    %466 = arith.addf %465, %464 : vector<8x32xf32>
    %467 = arith.divf %465, %466 : vector<8x32xf32>
    %468 = vector.extract_strided_slice %456 {offsets = [0, 32], sizes = [8, 32], strides = [1, 1]} : vector<8x96xf32> to vector<8x32xf32>
    %469 = vector.extract_strided_slice %459 {offsets = [0, 32], sizes = [8, 32], strides = [1, 1]} : vector<8x96xf32> to vector<8x32xf32>
    %470 = arith.addf %468, %469 : vector<8x32xf32>
    %471 = arith.negf %470 : vector<8x32xf32>
    %472 = math.exp %471 : vector<8x32xf32>
    %cst_119 = arith.constant 1.000000e+00 : f32
    %473 = vector.broadcast %cst_119 : f32 to vector<8x32xf32>
    %474 = arith.addf %473, %472 : vector<8x32xf32>
    %475 = arith.divf %473, %474 : vector<8x32xf32>
    %476 = vector.extract_strided_slice %456 {offsets = [0, 64], sizes = [8, 32], strides = [1, 1]} : vector<8x96xf32> to vector<8x32xf32>
    %477 = vector.extract_strided_slice %459 {offsets = [0, 64], sizes = [8, 32], strides = [1, 1]} : vector<8x96xf32> to vector<8x32xf32>
    %478 = arith.mulf %467, %477 : vector<8x32xf32>
    %479 = arith.addf %476, %478 : vector<8x32xf32>
    %480 = math.tanh %479 : vector<8x32xf32>
    %cst_120 = arith.constant 1.000000e+00 : f32
    %481 = vector.broadcast %cst_120 : f32 to vector<8x32xf32>
    %482 = arith.subf %481, %475 : vector<8x32xf32>
    %483 = arith.mulf %482, %480 : vector<8x32xf32>
    %484 = arith.mulf %475, %451 : vector<8x32xf32>
    %485 = arith.addf %483, %484 : vector<8x32xf32>
    %c1_121 = arith.constant 1 : index
    %c0_122 = arith.constant 0 : index
    %c0_123 = arith.constant 0 : index
    %486 = vector.load %arg0[%c1_121, %c0_122, %c0_123] : memref<8x8x16xf32, #tpu.memory_space<vmem>>, vector<1x8x16xf32>
    %487 = vector.shape_cast %486 : vector<1x8x16xf32> to vector<8x16xf32>
    %cst_124 = arith.constant dense<0.000000e+00> : vector<8x96xf32>
    %488 = tpu.matmul %487, %4, %cst_124 {dimension_numbers = #tpu.dot_dimension_numbers<[1], [0], [0], [1], [0, 0, 1, 1], [], []>} : vector<8x16xf32>, vector<16x96xf32>, vector<8x96xf32> -> vector<8x96xf32>
    %489 = vector.broadcast %6 : vector<1x96xf32> to vector<8x96xf32>
    %490 = arith.addf %488, %489 : vector<8x96xf32>
    %cst_125 = arith.constant dense<0.000000e+00> : vector<8x96xf32>
    %491 = tpu.matmul %485, %5, %cst_125 {dimension_numbers = #tpu.dot_dimension_numbers<[1], [0], [0], [1], [0, 0, 1, 1], [], []>} : vector<8x32xf32>, vector<32x96xf32>, vector<8x96xf32> -> vector<8x96xf32>
    %492 = vector.broadcast %7 : vector<1x96xf32> to vector<8x96xf32>
    %493 = arith.addf %491, %492 : vector<8x96xf32>
    %494 = vector.extract_strided_slice %490 {offsets = [0, 0], sizes = [8, 32], strides = [1, 1]} : vector<8x96xf32> to vector<8x32xf32>
    %495 = vector.extract_strided_slice %493 {offsets = [0, 0], sizes = [8, 32], strides = [1, 1]} : vector<8x96xf32> to vector<8x32xf32>
    %496 = arith.addf %494, %495 : vector<8x32xf32>
    %497 = arith.negf %496 : vector<8x32xf32>
    %498 = math.exp %497 : vector<8x32xf32>
    %cst_126 = arith.constant 1.000000e+00 : f32
    %499 = vector.broadcast %cst_126 : f32 to vector<8x32xf32>
    %500 = arith.addf %499, %498 : vector<8x32xf32>
    %501 = arith.divf %499, %500 : vector<8x32xf32>
    %502 = vector.extract_strided_slice %490 {offsets = [0, 32], sizes = [8, 32], strides = [1, 1]} : vector<8x96xf32> to vector<8x32xf32>
    %503 = vector.extract_strided_slice %493 {offsets = [0, 32], sizes = [8, 32], strides = [1, 1]} : vector<8x96xf32> to vector<8x32xf32>
    %504 = arith.addf %502, %503 : vector<8x32xf32>
    %505 = arith.negf %504 : vector<8x32xf32>
    %506 = math.exp %505 : vector<8x32xf32>
    %cst_127 = arith.constant 1.000000e+00 : f32
    %507 = vector.broadcast %cst_127 : f32 to vector<8x32xf32>
    %508 = arith.addf %507, %506 : vector<8x32xf32>
    %509 = arith.divf %507, %508 : vector<8x32xf32>
    %510 = vector.extract_strided_slice %490 {offsets = [0, 64], sizes = [8, 32], strides = [1, 1]} : vector<8x96xf32> to vector<8x32xf32>
    %511 = vector.extract_strided_slice %493 {offsets = [0, 64], sizes = [8, 32], strides = [1, 1]} : vector<8x96xf32> to vector<8x32xf32>
    %512 = arith.mulf %501, %511 : vector<8x32xf32>
    %513 = arith.addf %510, %512 : vector<8x32xf32>
    %514 = math.tanh %513 : vector<8x32xf32>
    %cst_128 = arith.constant 1.000000e+00 : f32
    %515 = vector.broadcast %cst_128 : f32 to vector<8x32xf32>
    %516 = arith.subf %515, %509 : vector<8x32xf32>
    %517 = arith.mulf %516, %514 : vector<8x32xf32>
    %518 = arith.mulf %509, %485 : vector<8x32xf32>
    %519 = arith.addf %517, %518 : vector<8x32xf32>
    %c0_129 = arith.constant 0 : index
    %c0_130 = arith.constant 0 : index
    %c0_131 = arith.constant 0 : index
    %520 = vector.load %arg0[%c0_129, %c0_130, %c0_131] : memref<8x8x16xf32, #tpu.memory_space<vmem>>, vector<1x8x16xf32>
    %521 = vector.shape_cast %520 : vector<1x8x16xf32> to vector<8x16xf32>
    %cst_132 = arith.constant dense<0.000000e+00> : vector<8x96xf32>
    %522 = tpu.matmul %521, %4, %cst_132 {dimension_numbers = #tpu.dot_dimension_numbers<[1], [0], [0], [1], [0, 0, 1, 1], [], []>} : vector<8x16xf32>, vector<16x96xf32>, vector<8x96xf32> -> vector<8x96xf32>
    %523 = vector.broadcast %6 : vector<1x96xf32> to vector<8x96xf32>
    %524 = arith.addf %522, %523 : vector<8x96xf32>
    %cst_133 = arith.constant dense<0.000000e+00> : vector<8x96xf32>
    %525 = tpu.matmul %519, %5, %cst_133 {dimension_numbers = #tpu.dot_dimension_numbers<[1], [0], [0], [1], [0, 0, 1, 1], [], []>} : vector<8x32xf32>, vector<32x96xf32>, vector<8x96xf32> -> vector<8x96xf32>
    %526 = vector.broadcast %7 : vector<1x96xf32> to vector<8x96xf32>
    %527 = arith.addf %525, %526 : vector<8x96xf32>
    %528 = vector.extract_strided_slice %524 {offsets = [0, 0], sizes = [8, 32], strides = [1, 1]} : vector<8x96xf32> to vector<8x32xf32>
    %529 = vector.extract_strided_slice %527 {offsets = [0, 0], sizes = [8, 32], strides = [1, 1]} : vector<8x96xf32> to vector<8x32xf32>
    %530 = arith.addf %528, %529 : vector<8x32xf32>
    %531 = arith.negf %530 : vector<8x32xf32>
    %532 = math.exp %531 : vector<8x32xf32>
    %cst_134 = arith.constant 1.000000e+00 : f32
    %533 = vector.broadcast %cst_134 : f32 to vector<8x32xf32>
    %534 = arith.addf %533, %532 : vector<8x32xf32>
    %535 = arith.divf %533, %534 : vector<8x32xf32>
    %536 = vector.extract_strided_slice %524 {offsets = [0, 32], sizes = [8, 32], strides = [1, 1]} : vector<8x96xf32> to vector<8x32xf32>
    %537 = vector.extract_strided_slice %527 {offsets = [0, 32], sizes = [8, 32], strides = [1, 1]} : vector<8x96xf32> to vector<8x32xf32>
    %538 = arith.addf %536, %537 : vector<8x32xf32>
    %539 = arith.negf %538 : vector<8x32xf32>
    %540 = math.exp %539 : vector<8x32xf32>
    %cst_135 = arith.constant 1.000000e+00 : f32
    %541 = vector.broadcast %cst_135 : f32 to vector<8x32xf32>
    %542 = arith.addf %541, %540 : vector<8x32xf32>
    %543 = arith.divf %541, %542 : vector<8x32xf32>
    %544 = vector.extract_strided_slice %524 {offsets = [0, 64], sizes = [8, 32], strides = [1, 1]} : vector<8x96xf32> to vector<8x32xf32>
    %545 = vector.extract_strided_slice %527 {offsets = [0, 64], sizes = [8, 32], strides = [1, 1]} : vector<8x96xf32> to vector<8x32xf32>
    %546 = arith.mulf %535, %545 : vector<8x32xf32>
    %547 = arith.addf %544, %546 : vector<8x32xf32>
    %548 = math.tanh %547 : vector<8x32xf32>
    %cst_136 = arith.constant 1.000000e+00 : f32
    %549 = vector.broadcast %cst_136 : f32 to vector<8x32xf32>
    %550 = arith.subf %549, %543 : vector<8x32xf32>
    %551 = arith.mulf %550, %548 : vector<8x32xf32>
    %552 = arith.mulf %543, %519 : vector<8x32xf32>
    %553 = arith.addf %551, %552 : vector<8x32xf32>
    %554 = tpu.concatenate %42, %76, %110, %144, %178, %212, %246, %280 in 0 : vector<8x32xf32>, vector<8x32xf32>, vector<8x32xf32>, vector<8x32xf32>, vector<8x32xf32>, vector<8x32xf32>, vector<8x32xf32>, vector<8x32xf32> -> vector<64x32xf32>
    %555 = tpu.concatenate %553, %519, %485, %451, %417, %383, %349, %315 in 0 : vector<8x32xf32>, vector<8x32xf32>, vector<8x32xf32>, vector<8x32xf32>, vector<8x32xf32>, vector<8x32xf32>, vector<8x32xf32>, vector<8x32xf32> -> vector<64x32xf32>
    %c0_137 = arith.constant 0 : index
    %c0_138 = arith.constant 0 : index
    %556 = vector.load %arg11[%c0_137, %c0_138] : memref<32x16xf32, #tpu.memory_space<vmem>>, vector<32x16xf32>
    %cst_139 = arith.constant dense<0.000000e+00> : vector<64x16xf32>
    %557 = tpu.matmul %554, %556, %cst_139 {dimension_numbers = #tpu.dot_dimension_numbers<[1], [0], [0], [1], [0, 0, 1, 1], [], []>} : vector<64x32xf32>, vector<32x16xf32>, vector<64x16xf32> -> vector<64x16xf32>
    %c0_140 = arith.constant 0 : index
    %c0_141 = arith.constant 0 : index
    %558 = vector.load %arg12[%c0_140, %c0_141] : memref<32x16xf32, #tpu.memory_space<vmem>>, vector<32x16xf32>
    %cst_142 = arith.constant dense<0.000000e+00> : vector<64x16xf32>
    %559 = tpu.matmul %555, %558, %cst_142 {dimension_numbers = #tpu.dot_dimension_numbers<[1], [0], [0], [1], [0, 0, 1, 1], [], []>} : vector<64x32xf32>, vector<32x16xf32>, vector<64x16xf32> -> vector<64x16xf32>
    %560 = arith.addf %557, %559 : vector<64x16xf32>
    %c0_143 = arith.constant 0 : index
    %c0_144 = arith.constant 0 : index
    %561 = vector.load %arg13[%c0_143, %c0_144] : memref<1x16xf32, #tpu.memory_space<vmem>>, vector<1x16xf32>
    %562 = vector.broadcast %561 : vector<1x16xf32> to vector<64x16xf32>
    %563 = arith.addf %560, %562 : vector<64x16xf32>
    %c0_145 = arith.constant 0 : index
    %c0_146 = arith.constant 0 : index
    %564 = vector.load %arg16[%c0_145, %c0_146] : memref<32x96xf32, #tpu.memory_space<vmem>>, vector<32x96xf32>
    %cst_147 = arith.constant dense<0.000000e+00> : vector<64x96xf32>
    %565 = tpu.matmul %554, %564, %cst_147 {dimension_numbers = #tpu.dot_dimension_numbers<[1], [0], [0], [1], [0, 0, 1, 1], [], []>} : vector<64x32xf32>, vector<32x96xf32>, vector<64x96xf32> -> vector<64x96xf32>
    %c0_148 = arith.constant 0 : index
    %c0_149 = arith.constant 0 : index
    %566 = vector.load %arg17[%c0_148, %c0_149] : memref<32x96xf32, #tpu.memory_space<vmem>>, vector<32x96xf32>
    %cst_150 = arith.constant dense<0.000000e+00> : vector<64x96xf32>
    %567 = tpu.matmul %555, %566, %cst_150 {dimension_numbers = #tpu.dot_dimension_numbers<[1], [0], [0], [1], [0, 0, 1, 1], [], []>} : vector<64x32xf32>, vector<32x96xf32>, vector<64x96xf32> -> vector<64x96xf32>
    %568 = arith.addf %565, %567 : vector<64x96xf32>
    %cst_151 = arith.constant 1.250000e-01 : f32
    %569 = vector.broadcast %cst_151 : f32 to vector<64x96xf32>
    %570 = arith.mulf %568, %569 : vector<64x96xf32>
    %c0_152 = arith.constant 0 : index
    %c0_153 = arith.constant 0 : index
    %571 = vector.load %arg9[%c0_152, %c0_153] : memref<40x16xf32, #tpu.memory_space<vmem>>, vector<40x16xf32>
    %c0_154 = arith.constant 0 : index
    %c0_155 = arith.constant 0 : index
    %572 = vector.load %arg10[%c0_154, %c0_155] : memref<32x16xf32, #tpu.memory_space<vmem>>, vector<32x16xf32>
    %c0_156 = arith.constant 0 : index
    %c0_157 = arith.constant 0 : index
    %573 = vector.load %arg14[%c0_156, %c0_157] : memref<1x16xf32, #tpu.memory_space<vmem>>, vector<1x16xf32>
    %c0_158 = arith.constant 0 : index
    %c0_159 = arith.constant 0 : index
    %574 = vector.load %arg15[%c0_158, %c0_159] : memref<16x96xf32, #tpu.memory_space<vmem>>, vector<16x96xf32>
    %c0_160 = arith.constant 0 : index
    %c0_161 = arith.constant 0 : index
    %575 = vector.load %arg18[%c0_160, %c0_161] : memref<32x96xf32, #tpu.memory_space<vmem>>, vector<32x96xf32>
    %c0_162 = arith.constant 0 : index
    %c0_163 = arith.constant 0 : index
    %576 = vector.load %arg19[%c0_162, %c0_163] : memref<1x96xf32, #tpu.memory_space<vmem>>, vector<1x96xf32>
    %c0_164 = arith.constant 0 : index
    %c0_165 = arith.constant 0 : index
    %577 = vector.load %arg20[%c0_164, %c0_165] : memref<1x96xf32, #tpu.memory_space<vmem>>, vector<1x96xf32>
    %c0_166 = arith.constant 0 : index
    %c0_167 = arith.constant 0 : index
    %578 = vector.load %arg21[%c0_166, %c0_167] : memref<32x128xf32, #tpu.memory_space<vmem>>, vector<32x128xf32>
    %c0_168 = arith.constant 0 : index
    %c0_169 = arith.constant 0 : index
    %579 = vector.load %arg22[%c0_168, %c0_169] : memref<1x128xf32, #tpu.memory_space<vmem>>, vector<1x128xf32>
    %c1_i32 = arith.constant 1 : i32
    %580 = vector.broadcast %c1_i32 : i32 to vector<8x1xi32>
    %581 = tpu.iota {dimensions = array<i32: 1>} : vector<8x40xi32>
    %582 = vector.broadcast %580 : vector<8x1xi32> to vector<8x40xi32>
    %583 = arith.cmpi eq, %581, %582 : vector<8x40xi32>
    %584 = arith.extui %583 : vector<8x40xi1> to vector<8x40xi32>
    %585 = arith.sitofp %584 : vector<8x40xi32> to vector<8x40xf32>
    %cst_170 = arith.constant dense<0.000000e+00> : vector<8x16xf32>
    %586 = tpu.matmul %585, %571, %cst_170 {dimension_numbers = #tpu.dot_dimension_numbers<[1], [0], [0], [1], [0, 0, 1, 1], [], []>} : vector<8x40xf32>, vector<40x16xf32>, vector<8x16xf32> -> vector<8x16xf32>
    %cst_171 = arith.constant dense<0.000000e+00> : vector<8x16xf32>
    %587 = tpu.matmul %553, %572, %cst_171 {dimension_numbers = #tpu.dot_dimension_numbers<[1], [0], [0], [1], [0, 0, 1, 1], [], []>} : vector<8x32xf32>, vector<32x16xf32>, vector<8x16xf32> -> vector<8x16xf32>
    %588 = tpu.concatenate %587, %587, %587, %587, %587, %587, %587, %587 in 0 : vector<8x16xf32>, vector<8x16xf32>, vector<8x16xf32>, vector<8x16xf32>, vector<8x16xf32>, vector<8x16xf32>, vector<8x16xf32>, vector<8x16xf32> -> vector<64x16xf32>
    %589 = arith.addf %563, %588 : vector<64x16xf32>
    %590 = math.tanh %589 : vector<64x16xf32>
    %591 = vector.broadcast %573 : vector<1x16xf32> to vector<64x16xf32>
    %592 = arith.mulf %590, %591 : vector<64x16xf32>
    %cst_172 = arith.constant dense<0.000000e+00> : vector<64xf32>
    %593 = vector.multi_reduction <add>, %592, %cst_172 [1] : vector<64x16xf32> to vector<64xf32>
    %594 = vector.shape_cast %593 : vector<64xf32> to vector<64x1xf32>
    %595 = vector.extract_strided_slice %594 {offsets = [0, 0], sizes = [8, 1], strides = [1, 1]} : vector<64x1xf32> to vector<8x1xf32>
    %596 = vector.extract_strided_slice %594 {offsets = [8, 0], sizes = [8, 1], strides = [1, 1]} : vector<64x1xf32> to vector<8x1xf32>
    %597 = arith.maximumf %595, %596 : vector<8x1xf32>
    %598 = vector.extract_strided_slice %594 {offsets = [16, 0], sizes = [8, 1], strides = [1, 1]} : vector<64x1xf32> to vector<8x1xf32>
    %599 = arith.maximumf %597, %598 : vector<8x1xf32>
    %600 = vector.extract_strided_slice %594 {offsets = [24, 0], sizes = [8, 1], strides = [1, 1]} : vector<64x1xf32> to vector<8x1xf32>
    %601 = arith.maximumf %599, %600 : vector<8x1xf32>
    %602 = vector.extract_strided_slice %594 {offsets = [32, 0], sizes = [8, 1], strides = [1, 1]} : vector<64x1xf32> to vector<8x1xf32>
    %603 = arith.maximumf %601, %602 : vector<8x1xf32>
    %604 = vector.extract_strided_slice %594 {offsets = [40, 0], sizes = [8, 1], strides = [1, 1]} : vector<64x1xf32> to vector<8x1xf32>
    %605 = arith.maximumf %603, %604 : vector<8x1xf32>
    %606 = vector.extract_strided_slice %594 {offsets = [48, 0], sizes = [8, 1], strides = [1, 1]} : vector<64x1xf32> to vector<8x1xf32>
    %607 = arith.maximumf %605, %606 : vector<8x1xf32>
    %608 = vector.extract_strided_slice %594 {offsets = [56, 0], sizes = [8, 1], strides = [1, 1]} : vector<64x1xf32> to vector<8x1xf32>
    %609 = arith.maximumf %607, %608 : vector<8x1xf32>
    %610 = tpu.concatenate %609, %609, %609, %609, %609, %609, %609, %609 in 0 : vector<8x1xf32>, vector<8x1xf32>, vector<8x1xf32>, vector<8x1xf32>, vector<8x1xf32>, vector<8x1xf32>, vector<8x1xf32>, vector<8x1xf32> -> vector<64x1xf32>
    %611 = arith.subf %594, %610 : vector<64x1xf32>
    %612 = math.exp %611 : vector<64x1xf32>
    %613 = vector.extract_strided_slice %612 {offsets = [0, 0], sizes = [8, 1], strides = [1, 1]} : vector<64x1xf32> to vector<8x1xf32>
    %614 = vector.extract_strided_slice %612 {offsets = [8, 0], sizes = [8, 1], strides = [1, 1]} : vector<64x1xf32> to vector<8x1xf32>
    %615 = arith.addf %613, %614 : vector<8x1xf32>
    %616 = vector.extract_strided_slice %612 {offsets = [16, 0], sizes = [8, 1], strides = [1, 1]} : vector<64x1xf32> to vector<8x1xf32>
    %617 = arith.addf %615, %616 : vector<8x1xf32>
    %618 = vector.extract_strided_slice %612 {offsets = [24, 0], sizes = [8, 1], strides = [1, 1]} : vector<64x1xf32> to vector<8x1xf32>
    %619 = arith.addf %617, %618 : vector<8x1xf32>
    %620 = vector.extract_strided_slice %612 {offsets = [32, 0], sizes = [8, 1], strides = [1, 1]} : vector<64x1xf32> to vector<8x1xf32>
    %621 = arith.addf %619, %620 : vector<8x1xf32>
    %622 = vector.extract_strided_slice %612 {offsets = [40, 0], sizes = [8, 1], strides = [1, 1]} : vector<64x1xf32> to vector<8x1xf32>
    %623 = arith.addf %621, %622 : vector<8x1xf32>
    %624 = vector.extract_strided_slice %612 {offsets = [48, 0], sizes = [8, 1], strides = [1, 1]} : vector<64x1xf32> to vector<8x1xf32>
    %625 = arith.addf %623, %624 : vector<8x1xf32>
    %626 = vector.extract_strided_slice %612 {offsets = [56, 0], sizes = [8, 1], strides = [1, 1]} : vector<64x1xf32> to vector<8x1xf32>
    %627 = arith.addf %625, %626 : vector<8x1xf32>
    %628 = tpu.concatenate %627, %627, %627, %627, %627, %627, %627, %627 in 0 : vector<8x1xf32>, vector<8x1xf32>, vector<8x1xf32>, vector<8x1xf32>, vector<8x1xf32>, vector<8x1xf32>, vector<8x1xf32>, vector<8x1xf32> -> vector<64x1xf32>
    %629 = arith.divf %612, %628 : vector<64x1xf32>
    %630 = vector.broadcast %629 : vector<64x1xf32> to vector<64x96xf32>
    %631 = arith.mulf %630, %570 : vector<64x96xf32>
    %632 = vector.extract_strided_slice %631 {offsets = [0, 0], sizes = [8, 96], strides = [1, 1]} : vector<64x96xf32> to vector<8x96xf32>
    %633 = vector.extract_strided_slice %631 {offsets = [8, 0], sizes = [8, 96], strides = [1, 1]} : vector<64x96xf32> to vector<8x96xf32>
    %634 = arith.addf %632, %633 : vector<8x96xf32>
    %635 = vector.extract_strided_slice %631 {offsets = [16, 0], sizes = [8, 96], strides = [1, 1]} : vector<64x96xf32> to vector<8x96xf32>
    %636 = arith.addf %634, %635 : vector<8x96xf32>
    %637 = vector.extract_strided_slice %631 {offsets = [24, 0], sizes = [8, 96], strides = [1, 1]} : vector<64x96xf32> to vector<8x96xf32>
    %638 = arith.addf %636, %637 : vector<8x96xf32>
    %639 = vector.extract_strided_slice %631 {offsets = [32, 0], sizes = [8, 96], strides = [1, 1]} : vector<64x96xf32> to vector<8x96xf32>
    %640 = arith.addf %638, %639 : vector<8x96xf32>
    %641 = vector.extract_strided_slice %631 {offsets = [40, 0], sizes = [8, 96], strides = [1, 1]} : vector<64x96xf32> to vector<8x96xf32>
    %642 = arith.addf %640, %641 : vector<8x96xf32>
    %643 = vector.extract_strided_slice %631 {offsets = [48, 0], sizes = [8, 96], strides = [1, 1]} : vector<64x96xf32> to vector<8x96xf32>
    %644 = arith.addf %642, %643 : vector<8x96xf32>
    %645 = vector.extract_strided_slice %631 {offsets = [56, 0], sizes = [8, 96], strides = [1, 1]} : vector<64x96xf32> to vector<8x96xf32>
    %646 = arith.addf %644, %645 : vector<8x96xf32>
    %cst_173 = arith.constant dense<0.000000e+00> : vector<8x96xf32>
    %647 = tpu.matmul %586, %574, %cst_173 {dimension_numbers = #tpu.dot_dimension_numbers<[1], [0], [0], [1], [0, 0, 1, 1], [], []>} : vector<8x16xf32>, vector<16x96xf32>, vector<8x96xf32> -> vector<8x96xf32>
    %648 = arith.addf %647, %646 : vector<8x96xf32>
    %649 = vector.broadcast %576 : vector<1x96xf32> to vector<8x96xf32>
    %650 = arith.addf %648, %649 : vector<8x96xf32>
    %cst_174 = arith.constant dense<0.000000e+00> : vector<8x96xf32>
    %651 = tpu.matmul %553, %575, %cst_174 {dimension_numbers = #tpu.dot_dimension_numbers<[1], [0], [0], [1], [0, 0, 1, 1], [], []>} : vector<8x32xf32>, vector<32x96xf32>, vector<8x96xf32> -> vector<8x96xf32>
    %652 = vector.broadcast %577 : vector<1x96xf32> to vector<8x96xf32>
    %653 = arith.addf %651, %652 : vector<8x96xf32>
    %654 = vector.extract_strided_slice %650 {offsets = [0, 0], sizes = [8, 32], strides = [1, 1]} : vector<8x96xf32> to vector<8x32xf32>
    %655 = vector.extract_strided_slice %653 {offsets = [0, 0], sizes = [8, 32], strides = [1, 1]} : vector<8x96xf32> to vector<8x32xf32>
    %656 = arith.addf %654, %655 : vector<8x32xf32>
    %657 = arith.negf %656 : vector<8x32xf32>
    %658 = math.exp %657 : vector<8x32xf32>
    %cst_175 = arith.constant 1.000000e+00 : f32
    %659 = vector.broadcast %cst_175 : f32 to vector<8x32xf32>
    %660 = arith.addf %659, %658 : vector<8x32xf32>
    %661 = arith.divf %659, %660 : vector<8x32xf32>
    %662 = vector.extract_strided_slice %650 {offsets = [0, 32], sizes = [8, 32], strides = [1, 1]} : vector<8x96xf32> to vector<8x32xf32>
    %663 = vector.extract_strided_slice %653 {offsets = [0, 32], sizes = [8, 32], strides = [1, 1]} : vector<8x96xf32> to vector<8x32xf32>
    %664 = arith.addf %662, %663 : vector<8x32xf32>
    %665 = arith.negf %664 : vector<8x32xf32>
    %666 = math.exp %665 : vector<8x32xf32>
    %cst_176 = arith.constant 1.000000e+00 : f32
    %667 = vector.broadcast %cst_176 : f32 to vector<8x32xf32>
    %668 = arith.addf %667, %666 : vector<8x32xf32>
    %669 = arith.divf %667, %668 : vector<8x32xf32>
    %670 = vector.extract_strided_slice %650 {offsets = [0, 64], sizes = [8, 32], strides = [1, 1]} : vector<8x96xf32> to vector<8x32xf32>
    %671 = vector.extract_strided_slice %653 {offsets = [0, 64], sizes = [8, 32], strides = [1, 1]} : vector<8x96xf32> to vector<8x32xf32>
    %672 = arith.mulf %661, %671 : vector<8x32xf32>
    %673 = arith.addf %670, %672 : vector<8x32xf32>
    %674 = math.tanh %673 : vector<8x32xf32>
    %cst_177 = arith.constant 1.000000e+00 : f32
    %675 = vector.broadcast %cst_177 : f32 to vector<8x32xf32>
    %676 = arith.subf %675, %669 : vector<8x32xf32>
    %677 = arith.mulf %676, %674 : vector<8x32xf32>
    %678 = arith.mulf %669, %553 : vector<8x32xf32>
    %679 = arith.addf %677, %678 : vector<8x32xf32>
    %cst_178 = arith.constant dense<0.000000e+00> : vector<8x128xf32>
    %680 = tpu.matmul %679, %578, %cst_178 {dimension_numbers = #tpu.dot_dimension_numbers<[1], [0], [0], [1], [0, 0, 1, 1], [], []>} : vector<8x32xf32>, vector<32x128xf32>, vector<8x128xf32> -> vector<8x128xf32>
    %681 = vector.broadcast %579 : vector<1x128xf32> to vector<8x128xf32>
    %682 = arith.addf %680, %681 : vector<8x128xf32>
    %cst_179 = arith.constant dense<0xFF800000> : vector<8xf32>
    %683 = vector.multi_reduction <maximumf>, %682, %cst_179 [1] : vector<8x128xf32> to vector<8xf32>
    %684 = vector.shape_cast %683 : vector<8xf32> to vector<8x1xf32>
    %685 = vector.broadcast %684 : vector<8x1xf32> to vector<8x128xf32>
    %686 = arith.subf %682, %685 : vector<8x128xf32>
    %687 = math.exp %686 : vector<8x128xf32>
    %cst_180 = arith.constant dense<0.000000e+00> : vector<8xf32>
    %688 = vector.multi_reduction <add>, %687, %cst_180 [1] : vector<8x128xf32> to vector<8xf32>
    %689 = vector.shape_cast %688 : vector<8xf32> to vector<8x1xf32>
    %690 = math.log %689 : vector<8x1xf32>
    %691 = vector.broadcast %684 : vector<8x1xf32> to vector<8x128xf32>
    %692 = arith.subf %682, %691 : vector<8x128xf32>
    %693 = vector.broadcast %690 : vector<8x1xf32> to vector<8x128xf32>
    %694 = arith.subf %692, %693 : vector<8x128xf32>
    %c0_181 = arith.constant 0 : index
    %c0_182 = arith.constant 0 : index
    %c0_183 = arith.constant 0 : index
    %695 = vector.load %arg23[%c0_181, %c0_182, %c0_183] : memref<4x8x128xf32, #tpu.memory_space<vmem>>, vector<1x8x128xf32>
    %696 = vector.shape_cast %695 : vector<1x8x128xf32> to vector<8x128xf32>
    %697 = vector.shape_cast %694 : vector<8x128xf32> to vector<1x8x128xf32>
    tpu.vector_store %arg23[%c0_181, %c0_182, %c0_183], %697 {strides = array<i32>} : memref<4x8x128xf32, #tpu.memory_space<vmem>>, vector<1x8x128xf32>,
    %698 = tpu.iota {dimensions = array<i32: 1>} : vector<8x128xi32>
    %699 = vector.broadcast %684 : vector<8x1xf32> to vector<8x128xf32>
    %700 = arith.cmpf oeq, %682, %699 : vector<8x128xf32>
    %c128_i32 = arith.constant 128 : i32
    %701 = vector.broadcast %c128_i32 : i32 to vector<8x128xi32>
    %702 = arith.select %700, %698, %701 : vector<8x128xi1>, vector<8x128xi32>
    %cst_184 = arith.constant dense<2147483647> : vector<8xi32>
    %703 = vector.multi_reduction <minsi>, %702, %cst_184 [1] : vector<8x128xi32> to vector<8xi32>
    %704 = vector.shape_cast %703 : vector<8xi32> to vector<8x1xi32>
    %705 = tpu.iota {dimensions = array<i32: 1>} : vector<8x40xi32>
    %706 = vector.broadcast %704 : vector<8x1xi32> to vector<8x40xi32>
    %707 = arith.cmpi eq, %705, %706 : vector<8x40xi32>
    %708 = arith.extui %707 : vector<8x40xi1> to vector<8x40xi32>
    %709 = arith.sitofp %708 : vector<8x40xi32> to vector<8x40xf32>
    %cst_185 = arith.constant dense<0.000000e+00> : vector<8x16xf32>
    %710 = tpu.matmul %709, %571, %cst_185 {dimension_numbers = #tpu.dot_dimension_numbers<[1], [0], [0], [1], [0, 0, 1, 1], [], []>} : vector<8x40xf32>, vector<40x16xf32>, vector<8x16xf32> -> vector<8x16xf32>
    %cst_186 = arith.constant dense<0.000000e+00> : vector<8x16xf32>
    %711 = tpu.matmul %679, %572, %cst_186 {dimension_numbers = #tpu.dot_dimension_numbers<[1], [0], [0], [1], [0, 0, 1, 1], [], []>} : vector<8x32xf32>, vector<32x16xf32>, vector<8x16xf32> -> vector<8x16xf32>
    %712 = tpu.concatenate %711, %711, %711, %711, %711, %711, %711, %711 in 0 : vector<8x16xf32>, vector<8x16xf32>, vector<8x16xf32>, vector<8x16xf32>, vector<8x16xf32>, vector<8x16xf32>, vector<8x16xf32>, vector<8x16xf32> -> vector<64x16xf32>
    %713 = arith.addf %563, %712 : vector<64x16xf32>
    %714 = math.tanh %713 : vector<64x16xf32>
    %715 = vector.broadcast %573 : vector<1x16xf32> to vector<64x16xf32>
    %716 = arith.mulf %714, %715 : vector<64x16xf32>
    %cst_187 = arith.constant dense<0.000000e+00> : vector<64xf32>
    %717 = vector.multi_reduction <add>, %716, %cst_187 [1] : vector<64x16xf32> to vector<64xf32>
    %718 = vector.shape_cast %717 : vector<64xf32> to vector<64x1xf32>
    %719 = vector.extract_strided_slice %718 {offsets = [0, 0], sizes = [8, 1], strides = [1, 1]} : vector<64x1xf32> to vector<8x1xf32>
    %720 = vector.extract_strided_slice %718 {offsets = [8, 0], sizes = [8, 1], strides = [1, 1]} : vector<64x1xf32> to vector<8x1xf32>
    %721 = arith.maximumf %719, %720 : vector<8x1xf32>
    %722 = vector.extract_strided_slice %718 {offsets = [16, 0], sizes = [8, 1], strides = [1, 1]} : vector<64x1xf32> to vector<8x1xf32>
    %723 = arith.maximumf %721, %722 : vector<8x1xf32>
    %724 = vector.extract_strided_slice %718 {offsets = [24, 0], sizes = [8, 1], strides = [1, 1]} : vector<64x1xf32> to vector<8x1xf32>
    %725 = arith.maximumf %723, %724 : vector<8x1xf32>
    %726 = vector.extract_strided_slice %718 {offsets = [32, 0], sizes = [8, 1], strides = [1, 1]} : vector<64x1xf32> to vector<8x1xf32>
    %727 = arith.maximumf %725, %726 : vector<8x1xf32>
    %728 = vector.extract_strided_slice %718 {offsets = [40, 0], sizes = [8, 1], strides = [1, 1]} : vector<64x1xf32> to vector<8x1xf32>
    %729 = arith.maximumf %727, %728 : vector<8x1xf32>
    %730 = vector.extract_strided_slice %718 {offsets = [48, 0], sizes = [8, 1], strides = [1, 1]} : vector<64x1xf32> to vector<8x1xf32>
    %731 = arith.maximumf %729, %730 : vector<8x1xf32>
    %732 = vector.extract_strided_slice %718 {offsets = [56, 0], sizes = [8, 1], strides = [1, 1]} : vector<64x1xf32> to vector<8x1xf32>
    %733 = arith.maximumf %731, %732 : vector<8x1xf32>
    %734 = tpu.concatenate %733, %733, %733, %733, %733, %733, %733, %733 in 0 : vector<8x1xf32>, vector<8x1xf32>, vector<8x1xf32>, vector<8x1xf32>, vector<8x1xf32>, vector<8x1xf32>, vector<8x1xf32>, vector<8x1xf32> -> vector<64x1xf32>
    %735 = arith.subf %718, %734 : vector<64x1xf32>
    %736 = math.exp %735 : vector<64x1xf32>
    %737 = vector.extract_strided_slice %736 {offsets = [0, 0], sizes = [8, 1], strides = [1, 1]} : vector<64x1xf32> to vector<8x1xf32>
    %738 = vector.extract_strided_slice %736 {offsets = [8, 0], sizes = [8, 1], strides = [1, 1]} : vector<64x1xf32> to vector<8x1xf32>
    %739 = arith.addf %737, %738 : vector<8x1xf32>
    %740 = vector.extract_strided_slice %736 {offsets = [16, 0], sizes = [8, 1], strides = [1, 1]} : vector<64x1xf32> to vector<8x1xf32>
    %741 = arith.addf %739, %740 : vector<8x1xf32>
    %742 = vector.extract_strided_slice %736 {offsets = [24, 0], sizes = [8, 1], strides = [1, 1]} : vector<64x1xf32> to vector<8x1xf32>
    %743 = arith.addf %741, %742 : vector<8x1xf32>
    %744 = vector.extract_strided_slice %736 {offsets = [32, 0], sizes = [8, 1], strides = [1, 1]} : vector<64x1xf32> to vector<8x1xf32>
    %745 = arith.addf %743, %744 : vector<8x1xf32>
    %746 = vector.extract_strided_slice %736 {offsets = [40, 0], sizes = [8, 1], strides = [1, 1]} : vector<64x1xf32> to vector<8x1xf32>
    %747 = arith.addf %745, %746 : vector<8x1xf32>
    %748 = vector.extract_strided_slice %736 {offsets = [48, 0], sizes = [8, 1], strides = [1, 1]} : vector<64x1xf32> to vector<8x1xf32>
    %749 = arith.addf %747, %748 : vector<8x1xf32>
    %750 = vector.extract_strided_slice %736 {offsets = [56, 0], sizes = [8, 1], strides = [1, 1]} : vector<64x1xf32> to vector<8x1xf32>
    %751 = arith.addf %749, %750 : vector<8x1xf32>
    %752 = tpu.concatenate %751, %751, %751, %751, %751, %751, %751, %751 in 0 : vector<8x1xf32>, vector<8x1xf32>, vector<8x1xf32>, vector<8x1xf32>, vector<8x1xf32>, vector<8x1xf32>, vector<8x1xf32>, vector<8x1xf32> -> vector<64x1xf32>
    %753 = arith.divf %736, %752 : vector<64x1xf32>
    %754 = vector.broadcast %753 : vector<64x1xf32> to vector<64x96xf32>
    %755 = arith.mulf %754, %570 : vector<64x96xf32>
    %756 = vector.extract_strided_slice %755 {offsets = [0, 0], sizes = [8, 96], strides = [1, 1]} : vector<64x96xf32> to vector<8x96xf32>
    %757 = vector.extract_strided_slice %755 {offsets = [8, 0], sizes = [8, 96], strides = [1, 1]} : vector<64x96xf32> to vector<8x96xf32>
    %758 = arith.addf %756, %757 : vector<8x96xf32>
    %759 = vector.extract_strided_slice %755 {offsets = [16, 0], sizes = [8, 96], strides = [1, 1]} : vector<64x96xf32> to vector<8x96xf32>
    %760 = arith.addf %758, %759 : vector<8x96xf32>
    %761 = vector.extract_strided_slice %755 {offsets = [24, 0], sizes = [8, 96], strides = [1, 1]} : vector<64x96xf32> to vector<8x96xf32>
    %762 = arith.addf %760, %761 : vector<8x96xf32>
    %763 = vector.extract_strided_slice %755 {offsets = [32, 0], sizes = [8, 96], strides = [1, 1]} : vector<64x96xf32> to vector<8x96xf32>
    %764 = arith.addf %762, %763 : vector<8x96xf32>
    %765 = vector.extract_strided_slice %755 {offsets = [40, 0], sizes = [8, 96], strides = [1, 1]} : vector<64x96xf32> to vector<8x96xf32>
    %766 = arith.addf %764, %765 : vector<8x96xf32>
    %767 = vector.extract_strided_slice %755 {offsets = [48, 0], sizes = [8, 96], strides = [1, 1]} : vector<64x96xf32> to vector<8x96xf32>
    %768 = arith.addf %766, %767 : vector<8x96xf32>
    %769 = vector.extract_strided_slice %755 {offsets = [56, 0], sizes = [8, 96], strides = [1, 1]} : vector<64x96xf32> to vector<8x96xf32>
    %770 = arith.addf %768, %769 : vector<8x96xf32>
    %cst_188 = arith.constant dense<0.000000e+00> : vector<8x96xf32>
    %771 = tpu.matmul %710, %574, %cst_188 {dimension_numbers = #tpu.dot_dimension_numbers<[1], [0], [0], [1], [0, 0, 1, 1], [], []>} : vector<8x16xf32>, vector<16x96xf32>, vector<8x96xf32> -> vector<8x96xf32>
    %772 = arith.addf %771, %770 : vector<8x96xf32>
    %773 = vector.broadcast %576 : vector<1x96xf32> to vector<8x96xf32>
    %774 = arith.addf %772, %773 : vector<8x96xf32>
    %cst_189 = arith.constant dense<0.000000e+00> : vector<8x96xf32>
    %775 = tpu.matmul %679, %575, %cst_189 {dimension_numbers = #tpu.dot_dimension_numbers<[1], [0], [0], [1], [0, 0, 1, 1], [], []>} : vector<8x32xf32>, vector<32x96xf32>, vector<8x96xf32> -> vector<8x96xf32>
    %776 = vector.broadcast %577 : vector<1x96xf32> to vector<8x96xf32>
    %777 = arith.addf %775, %776 : vector<8x96xf32>
    %778 = vector.extract_strided_slice %774 {offsets = [0, 0], sizes = [8, 32], strides = [1, 1]} : vector<8x96xf32> to vector<8x32xf32>
    %779 = vector.extract_strided_slice %777 {offsets = [0, 0], sizes = [8, 32], strides = [1, 1]} : vector<8x96xf32> to vector<8x32xf32>
    %780 = arith.addf %778, %779 : vector<8x32xf32>
    %781 = arith.negf %780 : vector<8x32xf32>
    %782 = math.exp %781 : vector<8x32xf32>
    %cst_190 = arith.constant 1.000000e+00 : f32
    %783 = vector.broadcast %cst_190 : f32 to vector<8x32xf32>
    %784 = arith.addf %783, %782 : vector<8x32xf32>
    %785 = arith.divf %783, %784 : vector<8x32xf32>
    %786 = vector.extract_strided_slice %774 {offsets = [0, 32], sizes = [8, 32], strides = [1, 1]} : vector<8x96xf32> to vector<8x32xf32>
    %787 = vector.extract_strided_slice %777 {offsets = [0, 32], sizes = [8, 32], strides = [1, 1]} : vector<8x96xf32> to vector<8x32xf32>
    %788 = arith.addf %786, %787 : vector<8x32xf32>
    %789 = arith.negf %788 : vector<8x32xf32>
    %790 = math.exp %789 : vector<8x32xf32>
    %cst_191 = arith.constant 1.000000e+00 : f32
    %791 = vector.broadcast %cst_191 : f32 to vector<8x32xf32>
    %792 = arith.addf %791, %790 : vector<8x32xf32>
    %793 = arith.divf %791, %792 : vector<8x32xf32>
    %794 = vector.extract_strided_slice %774 {offsets = [0, 64], sizes = [8, 32], strides = [1, 1]} : vector<8x96xf32> to vector<8x32xf32>
    %795 = vector.extract_strided_slice %777 {offsets = [0, 64], sizes = [8, 32], strides = [1, 1]} : vector<8x96xf32> to vector<8x32xf32>
    %796 = arith.mulf %785, %795 : vector<8x32xf32>
    %797 = arith.addf %794, %796 : vector<8x32xf32>
    %798 = math.tanh %797 : vector<8x32xf32>
    %cst_192 = arith.constant 1.000000e+00 : f32
    %799 = vector.broadcast %cst_192 : f32 to vector<8x32xf32>
    %800 = arith.subf %799, %793 : vector<8x32xf32>
    %801 = arith.mulf %800, %798 : vector<8x32xf32>
    %802 = arith.mulf %793, %679 : vector<8x32xf32>
    %803 = arith.addf %801, %802 : vector<8x32xf32>
    %cst_193 = arith.constant dense<0.000000e+00> : vector<8x128xf32>
    %804 = tpu.matmul %803, %578, %cst_193 {dimension_numbers = #tpu.dot_dimension_numbers<[1], [0], [0], [1], [0, 0, 1, 1], [], []>} : vector<8x32xf32>, vector<32x128xf32>, vector<8x128xf32> -> vector<8x128xf32>
    %805 = vector.broadcast %579 : vector<1x128xf32> to vector<8x128xf32>
    %806 = arith.addf %804, %805 : vector<8x128xf32>
    %cst_194 = arith.constant dense<0xFF800000> : vector<8xf32>
    %807 = vector.multi_reduction <maximumf>, %806, %cst_194 [1] : vector<8x128xf32> to vector<8xf32>
    %808 = vector.shape_cast %807 : vector<8xf32> to vector<8x1xf32>
    %809 = vector.broadcast %808 : vector<8x1xf32> to vector<8x128xf32>
    %810 = arith.subf %806, %809 : vector<8x128xf32>
    %811 = math.exp %810 : vector<8x128xf32>
    %cst_195 = arith.constant dense<0.000000e+00> : vector<8xf32>
    %812 = vector.multi_reduction <add>, %811, %cst_195 [1] : vector<8x128xf32> to vector<8xf32>
    %813 = vector.shape_cast %812 : vector<8xf32> to vector<8x1xf32>
    %814 = math.log %813 : vector<8x1xf32>
    %815 = vector.broadcast %808 : vector<8x1xf32> to vector<8x128xf32>
    %816 = arith.subf %806, %815 : vector<8x128xf32>
    %817 = vector.broadcast %814 : vector<8x1xf32> to vector<8x128xf32>
    %818 = arith.subf %816, %817 : vector<8x128xf32>
    %c1_196 = arith.constant 1 : index
    %c0_197 = arith.constant 0 : index
    %c0_198 = arith.constant 0 : index
    %819 = vector.load %arg23[%c1_196, %c0_197, %c0_198] : memref<4x8x128xf32, #tpu.memory_space<vmem>>, vector<1x8x128xf32>
    %820 = vector.shape_cast %819 : vector<1x8x128xf32> to vector<8x128xf32>
    %821 = vector.shape_cast %818 : vector<8x128xf32> to vector<1x8x128xf32>
    tpu.vector_store %arg23[%c1_196, %c0_197, %c0_198], %821 {strides = array<i32>} : memref<4x8x128xf32, #tpu.memory_space<vmem>>, vector<1x8x128xf32>,
    %822 = tpu.iota {dimensions = array<i32: 1>} : vector<8x128xi32>
    %823 = vector.broadcast %808 : vector<8x1xf32> to vector<8x128xf32>
    %824 = arith.cmpf oeq, %806, %823 : vector<8x128xf32>
    %c128_i32_199 = arith.constant 128 : i32
    %825 = vector.broadcast %c128_i32_199 : i32 to vector<8x128xi32>
    %826 = arith.select %824, %822, %825 : vector<8x128xi1>, vector<8x128xi32>
    %cst_200 = arith.constant dense<2147483647> : vector<8xi32>
    %827 = vector.multi_reduction <minsi>, %826, %cst_200 [1] : vector<8x128xi32> to vector<8xi32>
    %828 = vector.shape_cast %827 : vector<8xi32> to vector<8x1xi32>
    %829 = tpu.iota {dimensions = array<i32: 1>} : vector<8x40xi32>
    %830 = vector.broadcast %828 : vector<8x1xi32> to vector<8x40xi32>
    %831 = arith.cmpi eq, %829, %830 : vector<8x40xi32>
    %832 = arith.extui %831 : vector<8x40xi1> to vector<8x40xi32>
    %833 = arith.sitofp %832 : vector<8x40xi32> to vector<8x40xf32>
    %cst_201 = arith.constant dense<0.000000e+00> : vector<8x16xf32>
    %834 = tpu.matmul %833, %571, %cst_201 {dimension_numbers = #tpu.dot_dimension_numbers<[1], [0], [0], [1], [0, 0, 1, 1], [], []>} : vector<8x40xf32>, vector<40x16xf32>, vector<8x16xf32> -> vector<8x16xf32>
    %cst_202 = arith.constant dense<0.000000e+00> : vector<8x16xf32>
    %835 = tpu.matmul %803, %572, %cst_202 {dimension_numbers = #tpu.dot_dimension_numbers<[1], [0], [0], [1], [0, 0, 1, 1], [], []>} : vector<8x32xf32>, vector<32x16xf32>, vector<8x16xf32> -> vector<8x16xf32>
    %836 = tpu.concatenate %835, %835, %835, %835, %835, %835, %835, %835 in 0 : vector<8x16xf32>, vector<8x16xf32>, vector<8x16xf32>, vector<8x16xf32>, vector<8x16xf32>, vector<8x16xf32>, vector<8x16xf32>, vector<8x16xf32> -> vector<64x16xf32>
    %837 = arith.addf %563, %836 : vector<64x16xf32>
    %838 = math.tanh %837 : vector<64x16xf32>
    %839 = vector.broadcast %573 : vector<1x16xf32> to vector<64x16xf32>
    %840 = arith.mulf %838, %839 : vector<64x16xf32>
    %cst_203 = arith.constant dense<0.000000e+00> : vector<64xf32>
    %841 = vector.multi_reduction <add>, %840, %cst_203 [1] : vector<64x16xf32> to vector<64xf32>
    %842 = vector.shape_cast %841 : vector<64xf32> to vector<64x1xf32>
    %843 = vector.extract_strided_slice %842 {offsets = [0, 0], sizes = [8, 1], strides = [1, 1]} : vector<64x1xf32> to vector<8x1xf32>
    %844 = vector.extract_strided_slice %842 {offsets = [8, 0], sizes = [8, 1], strides = [1, 1]} : vector<64x1xf32> to vector<8x1xf32>
    %845 = arith.maximumf %843, %844 : vector<8x1xf32>
    %846 = vector.extract_strided_slice %842 {offsets = [16, 0], sizes = [8, 1], strides = [1, 1]} : vector<64x1xf32> to vector<8x1xf32>
    %847 = arith.maximumf %845, %846 : vector<8x1xf32>
    %848 = vector.extract_strided_slice %842 {offsets = [24, 0], sizes = [8, 1], strides = [1, 1]} : vector<64x1xf32> to vector<8x1xf32>
    %849 = arith.maximumf %847, %848 : vector<8x1xf32>
    %850 = vector.extract_strided_slice %842 {offsets = [32, 0], sizes = [8, 1], strides = [1, 1]} : vector<64x1xf32> to vector<8x1xf32>
    %851 = arith.maximumf %849, %850 : vector<8x1xf32>
    %852 = vector.extract_strided_slice %842 {offsets = [40, 0], sizes = [8, 1], strides = [1, 1]} : vector<64x1xf32> to vector<8x1xf32>
    %853 = arith.maximumf %851, %852 : vector<8x1xf32>
    %854 = vector.extract_strided_slice %842 {offsets = [48, 0], sizes = [8, 1], strides = [1, 1]} : vector<64x1xf32> to vector<8x1xf32>
    %855 = arith.maximumf %853, %854 : vector<8x1xf32>
    %856 = vector.extract_strided_slice %842 {offsets = [56, 0], sizes = [8, 1], strides = [1, 1]} : vector<64x1xf32> to vector<8x1xf32>
    %857 = arith.maximumf %855, %856 : vector<8x1xf32>
    %858 = tpu.concatenate %857, %857, %857, %857, %857, %857, %857, %857 in 0 : vector<8x1xf32>, vector<8x1xf32>, vector<8x1xf32>, vector<8x1xf32>, vector<8x1xf32>, vector<8x1xf32>, vector<8x1xf32>, vector<8x1xf32> -> vector<64x1xf32>
    %859 = arith.subf %842, %858 : vector<64x1xf32>
    %860 = math.exp %859 : vector<64x1xf32>
    %861 = vector.extract_strided_slice %860 {offsets = [0, 0], sizes = [8, 1], strides = [1, 1]} : vector<64x1xf32> to vector<8x1xf32>
    %862 = vector.extract_strided_slice %860 {offsets = [8, 0], sizes = [8, 1], strides = [1, 1]} : vector<64x1xf32> to vector<8x1xf32>
    %863 = arith.addf %861, %862 : vector<8x1xf32>
    %864 = vector.extract_strided_slice %860 {offsets = [16, 0], sizes = [8, 1], strides = [1, 1]} : vector<64x1xf32> to vector<8x1xf32>
    %865 = arith.addf %863, %864 : vector<8x1xf32>
    %866 = vector.extract_strided_slice %860 {offsets = [24, 0], sizes = [8, 1], strides = [1, 1]} : vector<64x1xf32> to vector<8x1xf32>
    %867 = arith.addf %865, %866 : vector<8x1xf32>
    %868 = vector.extract_strided_slice %860 {offsets = [32, 0], sizes = [8, 1], strides = [1, 1]} : vector<64x1xf32> to vector<8x1xf32>
    %869 = arith.addf %867, %868 : vector<8x1xf32>
    %870 = vector.extract_strided_slice %860 {offsets = [40, 0], sizes = [8, 1], strides = [1, 1]} : vector<64x1xf32> to vector<8x1xf32>
    %871 = arith.addf %869, %870 : vector<8x1xf32>
    %872 = vector.extract_strided_slice %860 {offsets = [48, 0], sizes = [8, 1], strides = [1, 1]} : vector<64x1xf32> to vector<8x1xf32>
    %873 = arith.addf %871, %872 : vector<8x1xf32>
    %874 = vector.extract_strided_slice %860 {offsets = [56, 0], sizes = [8, 1], strides = [1, 1]} : vector<64x1xf32> to vector<8x1xf32>
    %875 = arith.addf %873, %874 : vector<8x1xf32>
    %876 = tpu.concatenate %875, %875, %875, %875, %875, %875, %875, %875 in 0 : vector<8x1xf32>, vector<8x1xf32>, vector<8x1xf32>, vector<8x1xf32>, vector<8x1xf32>, vector<8x1xf32>, vector<8x1xf32>, vector<8x1xf32> -> vector<64x1xf32>
    %877 = arith.divf %860, %876 : vector<64x1xf32>
    %878 = vector.broadcast %877 : vector<64x1xf32> to vector<64x96xf32>
    %879 = arith.mulf %878, %570 : vector<64x96xf32>
    %880 = vector.extract_strided_slice %879 {offsets = [0, 0], sizes = [8, 96], strides = [1, 1]} : vector<64x96xf32> to vector<8x96xf32>
    %881 = vector.extract_strided_slice %879 {offsets = [8, 0], sizes = [8, 96], strides = [1, 1]} : vector<64x96xf32> to vector<8x96xf32>
    %882 = arith.addf %880, %881 : vector<8x96xf32>
    %883 = vector.extract_strided_slice %879 {offsets = [16, 0], sizes = [8, 96], strides = [1, 1]} : vector<64x96xf32> to vector<8x96xf32>
    %884 = arith.addf %882, %883 : vector<8x96xf32>
    %885 = vector.extract_strided_slice %879 {offsets = [24, 0], sizes = [8, 96], strides = [1, 1]} : vector<64x96xf32> to vector<8x96xf32>
    %886 = arith.addf %884, %885 : vector<8x96xf32>
    %887 = vector.extract_strided_slice %879 {offsets = [32, 0], sizes = [8, 96], strides = [1, 1]} : vector<64x96xf32> to vector<8x96xf32>
    %888 = arith.addf %886, %887 : vector<8x96xf32>
    %889 = vector.extract_strided_slice %879 {offsets = [40, 0], sizes = [8, 96], strides = [1, 1]} : vector<64x96xf32> to vector<8x96xf32>
    %890 = arith.addf %888, %889 : vector<8x96xf32>
    %891 = vector.extract_strided_slice %879 {offsets = [48, 0], sizes = [8, 96], strides = [1, 1]} : vector<64x96xf32> to vector<8x96xf32>
    %892 = arith.addf %890, %891 : vector<8x96xf32>
    %893 = vector.extract_strided_slice %879 {offsets = [56, 0], sizes = [8, 96], strides = [1, 1]} : vector<64x96xf32> to vector<8x96xf32>
    %894 = arith.addf %892, %893 : vector<8x96xf32>
    %cst_204 = arith.constant dense<0.000000e+00> : vector<8x96xf32>
    %895 = tpu.matmul %834, %574, %cst_204 {dimension_numbers = #tpu.dot_dimension_numbers<[1], [0], [0], [1], [0, 0, 1, 1], [], []>} : vector<8x16xf32>, vector<16x96xf32>, vector<8x96xf32> -> vector<8x96xf32>
    %896 = arith.addf %895, %894 : vector<8x96xf32>
    %897 = vector.broadcast %576 : vector<1x96xf32> to vector<8x96xf32>
    %898 = arith.addf %896, %897 : vector<8x96xf32>
    %cst_205 = arith.constant dense<0.000000e+00> : vector<8x96xf32>
    %899 = tpu.matmul %803, %575, %cst_205 {dimension_numbers = #tpu.dot_dimension_numbers<[1], [0], [0], [1], [0, 0, 1, 1], [], []>} : vector<8x32xf32>, vector<32x96xf32>, vector<8x96xf32> -> vector<8x96xf32>
    %900 = vector.broadcast %577 : vector<1x96xf32> to vector<8x96xf32>
    %901 = arith.addf %899, %900 : vector<8x96xf32>
    %902 = vector.extract_strided_slice %898 {offsets = [0, 0], sizes = [8, 32], strides = [1, 1]} : vector<8x96xf32> to vector<8x32xf32>
    %903 = vector.extract_strided_slice %901 {offsets = [0, 0], sizes = [8, 32], strides = [1, 1]} : vector<8x96xf32> to vector<8x32xf32>
    %904 = arith.addf %902, %903 : vector<8x32xf32>
    %905 = arith.negf %904 : vector<8x32xf32>
    %906 = math.exp %905 : vector<8x32xf32>
    %cst_206 = arith.constant 1.000000e+00 : f32
    %907 = vector.broadcast %cst_206 : f32 to vector<8x32xf32>
    %908 = arith.addf %907, %906 : vector<8x32xf32>
    %909 = arith.divf %907, %908 : vector<8x32xf32>
    %910 = vector.extract_strided_slice %898 {offsets = [0, 32], sizes = [8, 32], strides = [1, 1]} : vector<8x96xf32> to vector<8x32xf32>
    %911 = vector.extract_strided_slice %901 {offsets = [0, 32], sizes = [8, 32], strides = [1, 1]} : vector<8x96xf32> to vector<8x32xf32>
    %912 = arith.addf %910, %911 : vector<8x32xf32>
    %913 = arith.negf %912 : vector<8x32xf32>
    %914 = math.exp %913 : vector<8x32xf32>
    %cst_207 = arith.constant 1.000000e+00 : f32
    %915 = vector.broadcast %cst_207 : f32 to vector<8x32xf32>
    %916 = arith.addf %915, %914 : vector<8x32xf32>
    %917 = arith.divf %915, %916 : vector<8x32xf32>
    %918 = vector.extract_strided_slice %898 {offsets = [0, 64], sizes = [8, 32], strides = [1, 1]} : vector<8x96xf32> to vector<8x32xf32>
    %919 = vector.extract_strided_slice %901 {offsets = [0, 64], sizes = [8, 32], strides = [1, 1]} : vector<8x96xf32> to vector<8x32xf32>
    %920 = arith.mulf %909, %919 : vector<8x32xf32>
    %921 = arith.addf %918, %920 : vector<8x32xf32>
    %922 = math.tanh %921 : vector<8x32xf32>
    %cst_208 = arith.constant 1.000000e+00 : f32
    %923 = vector.broadcast %cst_208 : f32 to vector<8x32xf32>
    %924 = arith.subf %923, %917 : vector<8x32xf32>
    %925 = arith.mulf %924, %922 : vector<8x32xf32>
    %926 = arith.mulf %917, %803 : vector<8x32xf32>
    %927 = arith.addf %925, %926 : vector<8x32xf32>
    %cst_209 = arith.constant dense<0.000000e+00> : vector<8x128xf32>
    %928 = tpu.matmul %927, %578, %cst_209 {dimension_numbers = #tpu.dot_dimension_numbers<[1], [0], [0], [1], [0, 0, 1, 1], [], []>} : vector<8x32xf32>, vector<32x128xf32>, vector<8x128xf32> -> vector<8x128xf32>
    %929 = vector.broadcast %579 : vector<1x128xf32> to vector<8x128xf32>
    %930 = arith.addf %928, %929 : vector<8x128xf32>
    %cst_210 = arith.constant dense<0xFF800000> : vector<8xf32>
    %931 = vector.multi_reduction <maximumf>, %930, %cst_210 [1] : vector<8x128xf32> to vector<8xf32>
    %932 = vector.shape_cast %931 : vector<8xf32> to vector<8x1xf32>
    %933 = vector.broadcast %932 : vector<8x1xf32> to vector<8x128xf32>
    %934 = arith.subf %930, %933 : vector<8x128xf32>
    %935 = math.exp %934 : vector<8x128xf32>
    %cst_211 = arith.constant dense<0.000000e+00> : vector<8xf32>
    %936 = vector.multi_reduction <add>, %935, %cst_211 [1] : vector<8x128xf32> to vector<8xf32>
    %937 = vector.shape_cast %936 : vector<8xf32> to vector<8x1xf32>
    %938 = math.log %937 : vector<8x1xf32>
    %939 = vector.broadcast %932 : vector<8x1xf32> to vector<8x128xf32>
    %940 = arith.subf %930, %939 : vector<8x128xf32>
    %941 = vector.broadcast %938 : vector<8x1xf32> to vector<8x128xf32>
    %942 = arith.subf %940, %941 : vector<8x128xf32>
    %c2_212 = arith.constant 2 : index
    %c0_213 = arith.constant 0 : index
    %c0_214 = arith.constant 0 : index
    %943 = vector.load %arg23[%c2_212, %c0_213, %c0_214] : memref<4x8x128xf32, #tpu.memory_space<vmem>>, vector<1x8x128xf32>
    %944 = vector.shape_cast %943 : vector<1x8x128xf32> to vector<8x128xf32>
    %945 = vector.shape_cast %942 : vector<8x128xf32> to vector<1x8x128xf32>
    tpu.vector_store %arg23[%c2_212, %c0_213, %c0_214], %945 {strides = array<i32>} : memref<4x8x128xf32, #tpu.memory_space<vmem>>, vector<1x8x128xf32>,
    %946 = tpu.iota {dimensions = array<i32: 1>} : vector<8x128xi32>
    %947 = vector.broadcast %932 : vector<8x1xf32> to vector<8x128xf32>
    %948 = arith.cmpf oeq, %930, %947 : vector<8x128xf32>
    %c128_i32_215 = arith.constant 128 : i32
    %949 = vector.broadcast %c128_i32_215 : i32 to vector<8x128xi32>
    %950 = arith.select %948, %946, %949 : vector<8x128xi1>, vector<8x128xi32>
    %cst_216 = arith.constant dense<2147483647> : vector<8xi32>
    %951 = vector.multi_reduction <minsi>, %950, %cst_216 [1] : vector<8x128xi32> to vector<8xi32>
    %952 = vector.shape_cast %951 : vector<8xi32> to vector<8x1xi32>
    %953 = tpu.iota {dimensions = array<i32: 1>} : vector<8x40xi32>
    %954 = vector.broadcast %952 : vector<8x1xi32> to vector<8x40xi32>
    %955 = arith.cmpi eq, %953, %954 : vector<8x40xi32>
    %956 = arith.extui %955 : vector<8x40xi1> to vector<8x40xi32>
    %957 = arith.sitofp %956 : vector<8x40xi32> to vector<8x40xf32>
    %cst_217 = arith.constant dense<0.000000e+00> : vector<8x16xf32>
    %958 = tpu.matmul %957, %571, %cst_217 {dimension_numbers = #tpu.dot_dimension_numbers<[1], [0], [0], [1], [0, 0, 1, 1], [], []>} : vector<8x40xf32>, vector<40x16xf32>, vector<8x16xf32> -> vector<8x16xf32>
    %cst_218 = arith.constant dense<0.000000e+00> : vector<8x16xf32>
    %959 = tpu.matmul %927, %572, %cst_218 {dimension_numbers = #tpu.dot_dimension_numbers<[1], [0], [0], [1], [0, 0, 1, 1], [], []>} : vector<8x32xf32>, vector<32x16xf32>, vector<8x16xf32> -> vector<8x16xf32>
    %960 = tpu.concatenate %959, %959, %959, %959, %959, %959, %959, %959 in 0 : vector<8x16xf32>, vector<8x16xf32>, vector<8x16xf32>, vector<8x16xf32>, vector<8x16xf32>, vector<8x16xf32>, vector<8x16xf32>, vector<8x16xf32> -> vector<64x16xf32>
    %961 = arith.addf %563, %960 : vector<64x16xf32>
    %962 = math.tanh %961 : vector<64x16xf32>
    %963 = vector.broadcast %573 : vector<1x16xf32> to vector<64x16xf32>
    %964 = arith.mulf %962, %963 : vector<64x16xf32>
    %cst_219 = arith.constant dense<0.000000e+00> : vector<64xf32>
    %965 = vector.multi_reduction <add>, %964, %cst_219 [1] : vector<64x16xf32> to vector<64xf32>
    %966 = vector.shape_cast %965 : vector<64xf32> to vector<64x1xf32>
    %967 = vector.extract_strided_slice %966 {offsets = [0, 0], sizes = [8, 1], strides = [1, 1]} : vector<64x1xf32> to vector<8x1xf32>
    %968 = vector.extract_strided_slice %966 {offsets = [8, 0], sizes = [8, 1], strides = [1, 1]} : vector<64x1xf32> to vector<8x1xf32>
    %969 = arith.maximumf %967, %968 : vector<8x1xf32>
    %970 = vector.extract_strided_slice %966 {offsets = [16, 0], sizes = [8, 1], strides = [1, 1]} : vector<64x1xf32> to vector<8x1xf32>
    %971 = arith.maximumf %969, %970 : vector<8x1xf32>
    %972 = vector.extract_strided_slice %966 {offsets = [24, 0], sizes = [8, 1], strides = [1, 1]} : vector<64x1xf32> to vector<8x1xf32>
    %973 = arith.maximumf %971, %972 : vector<8x1xf32>
    %974 = vector.extract_strided_slice %966 {offsets = [32, 0], sizes = [8, 1], strides = [1, 1]} : vector<64x1xf32> to vector<8x1xf32>
    %975 = arith.maximumf %973, %974 : vector<8x1xf32>
    %976 = vector.extract_strided_slice %966 {offsets = [40, 0], sizes = [8, 1], strides = [1, 1]} : vector<64x1xf32> to vector<8x1xf32>
    %977 = arith.maximumf %975, %976 : vector<8x1xf32>
    %978 = vector.extract_strided_slice %966 {offsets = [48, 0], sizes = [8, 1], strides = [1, 1]} : vector<64x1xf32> to vector<8x1xf32>
    %979 = arith.maximumf %977, %978 : vector<8x1xf32>
    %980 = vector.extract_strided_slice %966 {offsets = [56, 0], sizes = [8, 1], strides = [1, 1]} : vector<64x1xf32> to vector<8x1xf32>
    %981 = arith.maximumf %979, %980 : vector<8x1xf32>
    %982 = tpu.concatenate %981, %981, %981, %981, %981, %981, %981, %981 in 0 : vector<8x1xf32>, vector<8x1xf32>, vector<8x1xf32>, vector<8x1xf32>, vector<8x1xf32>, vector<8x1xf32>, vector<8x1xf32>, vector<8x1xf32> -> vector<64x1xf32>
    %983 = arith.subf %966, %982 : vector<64x1xf32>
    %984 = math.exp %983 : vector<64x1xf32>
    %985 = vector.extract_strided_slice %984 {offsets = [0, 0], sizes = [8, 1], strides = [1, 1]} : vector<64x1xf32> to vector<8x1xf32>
    %986 = vector.extract_strided_slice %984 {offsets = [8, 0], sizes = [8, 1], strides = [1, 1]} : vector<64x1xf32> to vector<8x1xf32>
    %987 = arith.addf %985, %986 : vector<8x1xf32>
    %988 = vector.extract_strided_slice %984 {offsets = [16, 0], sizes = [8, 1], strides = [1, 1]} : vector<64x1xf32> to vector<8x1xf32>
    %989 = arith.addf %987, %988 : vector<8x1xf32>
    %990 = vector.extract_strided_slice %984 {offsets = [24, 0], sizes = [8, 1], strides = [1, 1]} : vector<64x1xf32> to vector<8x1xf32>
    %991 = arith.addf %989, %990 : vector<8x1xf32>
    %992 = vector.extract_strided_slice %984 {offsets = [32, 0], sizes = [8, 1], strides = [1, 1]} : vector<64x1xf32> to vector<8x1xf32>
    %993 = arith.addf %991, %992 : vector<8x1xf32>
    %994 = vector.extract_strided_slice %984 {offsets = [40, 0], sizes = [8, 1], strides = [1, 1]} : vector<64x1xf32> to vector<8x1xf32>
    %995 = arith.addf %993, %994 : vector<8x1xf32>
    %996 = vector.extract_strided_slice %984 {offsets = [48, 0], sizes = [8, 1], strides = [1, 1]} : vector<64x1xf32> to vector<8x1xf32>
    %997 = arith.addf %995, %996 : vector<8x1xf32>
    %998 = vector.extract_strided_slice %984 {offsets = [56, 0], sizes = [8, 1], strides = [1, 1]} : vector<64x1xf32> to vector<8x1xf32>
    %999 = arith.addf %997, %998 : vector<8x1xf32>
    %1000 = tpu.concatenate %999, %999, %999, %999, %999, %999, %999, %999 in 0 : vector<8x1xf32>, vector<8x1xf32>, vector<8x1xf32>, vector<8x1xf32>, vector<8x1xf32>, vector<8x1xf32>, vector<8x1xf32>, vector<8x1xf32> -> vector<64x1xf32>
    %1001 = arith.divf %984, %1000 : vector<64x1xf32>
    %1002 = vector.broadcast %1001 : vector<64x1xf32> to vector<64x96xf32>
    %1003 = arith.mulf %1002, %570 : vector<64x96xf32>
    %1004 = vector.extract_strided_slice %1003 {offsets = [0, 0], sizes = [8, 96], strides = [1, 1]} : vector<64x96xf32> to vector<8x96xf32>
    %1005 = vector.extract_strided_slice %1003 {offsets = [8, 0], sizes = [8, 96], strides = [1, 1]} : vector<64x96xf32> to vector<8x96xf32>
    %1006 = arith.addf %1004, %1005 : vector<8x96xf32>
    %1007 = vector.extract_strided_slice %1003 {offsets = [16, 0], sizes = [8, 96], strides = [1, 1]} : vector<64x96xf32> to vector<8x96xf32>
    %1008 = arith.addf %1006, %1007 : vector<8x96xf32>
    %1009 = vector.extract_strided_slice %1003 {offsets = [24, 0], sizes = [8, 96], strides = [1, 1]} : vector<64x96xf32> to vector<8x96xf32>
    %1010 = arith.addf %1008, %1009 : vector<8x96xf32>
    %1011 = vector.extract_strided_slice %1003 {offsets = [32, 0], sizes = [8, 96], strides = [1, 1]} : vector<64x96xf32> to vector<8x96xf32>
    %1012 = arith.addf %1010, %1011 : vector<8x96xf32>
    %1013 = vector.extract_strided_slice %1003 {offsets = [40, 0], sizes = [8, 96], strides = [1, 1]} : vector<64x96xf32> to vector<8x96xf32>
    %1014 = arith.addf %1012, %1013 : vector<8x96xf32>
    %1015 = vector.extract_strided_slice %1003 {offsets = [48, 0], sizes = [8, 96], strides = [1, 1]} : vector<64x96xf32> to vector<8x96xf32>
    %1016 = arith.addf %1014, %1015 : vector<8x96xf32>
    %1017 = vector.extract_strided_slice %1003 {offsets = [56, 0], sizes = [8, 96], strides = [1, 1]} : vector<64x96xf32> to vector<8x96xf32>
    %1018 = arith.addf %1016, %1017 : vector<8x96xf32>
    %cst_220 = arith.constant dense<0.000000e+00> : vector<8x96xf32>
    %1019 = tpu.matmul %958, %574, %cst_220 {dimension_numbers = #tpu.dot_dimension_numbers<[1], [0], [0], [1], [0, 0, 1, 1], [], []>} : vector<8x16xf32>, vector<16x96xf32>, vector<8x96xf32> -> vector<8x96xf32>
    %1020 = arith.addf %1019, %1018 : vector<8x96xf32>
    %1021 = vector.broadcast %576 : vector<1x96xf32> to vector<8x96xf32>
    %1022 = arith.addf %1020, %1021 : vector<8x96xf32>
    %cst_221 = arith.constant dense<0.000000e+00> : vector<8x96xf32>
    %1023 = tpu.matmul %927, %575, %cst_221 {dimension_numbers = #tpu.dot_dimension_numbers<[1], [0], [0], [1], [0, 0, 1, 1], [], []>} : vector<8x32xf32>, vector<32x96xf32>, vector<8x96xf32> -> vector<8x96xf32>
    %1024 = vector.broadcast %577 : vector<1x96xf32> to vector<8x96xf32>
    %1025 = arith.addf %1023, %1024 : vector<8x96xf32>
    %1026 = vector.extract_strided_slice %1022 {offsets = [0, 0], sizes = [8, 32], strides = [1, 1]} : vector<8x96xf32> to vector<8x32xf32>
    %1027 = vector.extract_strided_slice %1025 {offsets = [0, 0], sizes = [8, 32], strides = [1, 1]} : vector<8x96xf32> to vector<8x32xf32>
    %1028 = arith.addf %1026, %1027 : vector<8x32xf32>
    %1029 = arith.negf %1028 : vector<8x32xf32>
    %1030 = math.exp %1029 : vector<8x32xf32>
    %cst_222 = arith.constant 1.000000e+00 : f32
    %1031 = vector.broadcast %cst_222 : f32 to vector<8x32xf32>
    %1032 = arith.addf %1031, %1030 : vector<8x32xf32>
    %1033 = arith.divf %1031, %1032 : vector<8x32xf32>
    %1034 = vector.extract_strided_slice %1022 {offsets = [0, 32], sizes = [8, 32], strides = [1, 1]} : vector<8x96xf32> to vector<8x32xf32>
    %1035 = vector.extract_strided_slice %1025 {offsets = [0, 32], sizes = [8, 32], strides = [1, 1]} : vector<8x96xf32> to vector<8x32xf32>
    %1036 = arith.addf %1034, %1035 : vector<8x32xf32>
    %1037 = arith.negf %1036 : vector<8x32xf32>
    %1038 = math.exp %1037 : vector<8x32xf32>
    %cst_223 = arith.constant 1.000000e+00 : f32
    %1039 = vector.broadcast %cst_223 : f32 to vector<8x32xf32>
    %1040 = arith.addf %1039, %1038 : vector<8x32xf32>
    %1041 = arith.divf %1039, %1040 : vector<8x32xf32>
    %1042 = vector.extract_strided_slice %1022 {offsets = [0, 64], sizes = [8, 32], strides = [1, 1]} : vector<8x96xf32> to vector<8x32xf32>
    %1043 = vector.extract_strided_slice %1025 {offsets = [0, 64], sizes = [8, 32], strides = [1, 1]} : vector<8x96xf32> to vector<8x32xf32>
    %1044 = arith.mulf %1033, %1043 : vector<8x32xf32>
    %1045 = arith.addf %1042, %1044 : vector<8x32xf32>
    %1046 = math.tanh %1045 : vector<8x32xf32>
    %cst_224 = arith.constant 1.000000e+00 : f32
    %1047 = vector.broadcast %cst_224 : f32 to vector<8x32xf32>
    %1048 = arith.subf %1047, %1041 : vector<8x32xf32>
    %1049 = arith.mulf %1048, %1046 : vector<8x32xf32>
    %1050 = arith.mulf %1041, %927 : vector<8x32xf32>
    %1051 = arith.addf %1049, %1050 : vector<8x32xf32>
    %cst_225 = arith.constant dense<0.000000e+00> : vector<8x128xf32>
    %1052 = tpu.matmul %1051, %578, %cst_225 {dimension_numbers = #tpu.dot_dimension_numbers<[1], [0], [0], [1], [0, 0, 1, 1], [], []>} : vector<8x32xf32>, vector<32x128xf32>, vector<8x128xf32> -> vector<8x128xf32>
    %1053 = vector.broadcast %579 : vector<1x128xf32> to vector<8x128xf32>
    %1054 = arith.addf %1052, %1053 : vector<8x128xf32>
    %cst_226 = arith.constant dense<0xFF800000> : vector<8xf32>
    %1055 = vector.multi_reduction <maximumf>, %1054, %cst_226 [1] : vector<8x128xf32> to vector<8xf32>
    %1056 = vector.shape_cast %1055 : vector<8xf32> to vector<8x1xf32>
    %1057 = vector.broadcast %1056 : vector<8x1xf32> to vector<8x128xf32>
    %1058 = arith.subf %1054, %1057 : vector<8x128xf32>
    %1059 = math.exp %1058 : vector<8x128xf32>
    %cst_227 = arith.constant dense<0.000000e+00> : vector<8xf32>
    %1060 = vector.multi_reduction <add>, %1059, %cst_227 [1] : vector<8x128xf32> to vector<8xf32>
    %1061 = vector.shape_cast %1060 : vector<8xf32> to vector<8x1xf32>
    %1062 = math.log %1061 : vector<8x1xf32>
    %1063 = vector.broadcast %1056 : vector<8x1xf32> to vector<8x128xf32>
    %1064 = arith.subf %1054, %1063 : vector<8x128xf32>
    %1065 = vector.broadcast %1062 : vector<8x1xf32> to vector<8x128xf32>
    %1066 = arith.subf %1064, %1065 : vector<8x128xf32>
    %c3_228 = arith.constant 3 : index
    %c0_229 = arith.constant 0 : index
    %c0_230 = arith.constant 0 : index
    %1067 = vector.load %arg23[%c3_228, %c0_229, %c0_230] : memref<4x8x128xf32, #tpu.memory_space<vmem>>, vector<1x8x128xf32>
    %1068 = vector.shape_cast %1067 : vector<1x8x128xf32> to vector<8x128xf32>
    %1069 = vector.shape_cast %1066 : vector<8x128xf32> to vector<1x8x128xf32>
    tpu.vector_store %arg23[%c3_228, %c0_229, %c0_230], %1069 {strides = array<i32>} : memref<4x8x128xf32, #tpu.memory_space<vmem>>, vector<1x8x128xf32>,
    return
  }
}

</mosaic_0001>

<bundles_post_ra>
// kernel: seq2seq_forward.1
= control target key start
LH: loop header
LB: loop body
LE: loop exit
PB: predicated region body
PF: predicated region fallthrough
CT: control target
= control target key end

     0   :  { %v8520_v0 = vmov 0.0   ;;  %vm97_vm0 = vcmask 130048   ;;  %vm6950_vm1 = vmmov 0   ;;  %s6952_s28 = smov 96   ;;  %vm177_vm2 = vcmask 261120   ;;  %s8489_s2 = inlined_call_operand.vmem [shape: f32[32,96], index: 2, kind: input, shape index: {}]   ;;  %s8490_s1 = inlined_call_operand.vmem [shape: f32[16,96], index: 1, kind: input, shape index: {}]   ;;  %s8491_s0 = inlined_call_operand.vmem [shape: f32[8,8,16], index: 0, kind: input, shape index: {}]   ;;  %s8492_s4 = inlined_call_operand.vmem [shape: f32[1,96], index: 4, kind: input, shape index: {}]   ;;  %s8493_s3 = inlined_call_operand.vmem [shape: f32[1,96], index: 3, kind: input, shape index: {}]   ;;  %s8494_s5 = inlined_call_operand.vmem [shape: f32[16,96], index: 5, kind: input, shape index: {}]   ;;  %s8495_s6 = inlined_call_operand.vmem [shape: f32[32,96], index: 6, kind: input, shape index: {}]   ;;  %s8496_s8 = inlined_call_operand.vmem [shape: f32[1,96], index: 8, kind: input, shape index: {}]   ;;  %s8497_s7 = inlined_call_operand.vmem [shape: f32[1,96], index: 7, kind: input, shape index: {}]   ;;  %s8498_s11 = inlined_call_operand.vmem [shape: f32[32,16], index: 11, kind: input, shape index: {}]   ;;  %s8499_s16 = inlined_call_operand.vmem [shape: f32[32,96], index: 16, kind: input, shape index: {}]   ;;  %s8500_s10 = inlined_call_operand.vmem [shape: f32[32,16], index: 10, kind: input, shape index: {}]   ;;  %s8501_s12 = inlined_call_operand.vmem [shape: f32[32,16], index: 12, kind: input, shape index: {}]   ;;  %s8502_s17 = inlined_call_operand.vmem [shape: f32[32,96], index: 17, kind: input, shape index: {}]   ;;  %s8503_s9 = inlined_call_operand.vmem [shape: f32[40,16], index: 9, kind: input, shape index: {}]   ;;  %s8504_s15 = inlined_call_operand.vmem [shape: f32[16,96], index: 15, kind: input, shape index: {}]   ;;  %s8505_s13 = inlined_call_operand.vmem [shape: f32[1,16], index: 13, kind: input, shape index: {}]   ;;  %s8506_s14 = inlined_call_operand.vmem [shape: f32[1,16], index: 14, kind: input, shape index: {}]   ;;  %s8507_s18 = inlined_call_operand.vmem [shape: f32[32,96], index: 18, kind: input, shape index: {}]   ;;  %s8508_s20 = inlined_call_operand.vmem [shape: f32[1,96], index: 20, kind: input, shape index: {}]   ;;  %s8509_s19 = inlined_call_operand.vmem [shape: f32[1,96], index: 19, kind: input, shape index: {}]   ;;  %s8510_s21 = inlined_call_operand.vmem [shape: f32[32,128], index: 21, kind: input, shape index: {}]   ;;  %s8511_s22 = inlined_call_operand.vmem [shape: f32[1,128], index: 22, kind: input, shape index: {}]   ;;  %s8512_s23 = inlined_call_operand.vmem [shape: f32[4,8,128], index: 23, kind: output, shape index: {}]  }
   0x1   :  { %8523 = sst [smem:[#allocation3_spill]] %s8489_s2  ;;  %6070 = vmatprep.subr.mxu1 %v8520_v0  ;;  %6063 = vmatprep.subr.mxu0 %v8520_v0  ;;  %vm3381_vm4 = vcmask 326656  }
   0x2   :  { %8524 = sst [smem:[#allocation4_spill]] %s8490_s1  ;;  %6067 = vmatprep.mubr.msk.f32.mxu0 %vm6950_vm1, %v8520_v0  ;;  %6078 = vmatprep.mubr.msk.f32.mxu1 %vm6950_vm1, %v8520_v0  ;;  %s6951_s1 = smov 64  }
   0x3   :  { %8525 = sst [smem:[#allocation5_spill]] %s8491_s0 }
   0x4   :  { %8526 = sst [smem:[#allocation6_spill]] %s8492_s4 }
   0x5   :  { %8527 = sst [smem:[#allocation7_spill]] %s8493_s3 }
   0x6   :  { %8528 = sst [smem:[#allocation8_spill]] %s8494_s5 }
   0x7   :  { %8529 = sst [smem:[#allocation9_spill]] %s8495_s6 }
   0x8   :  { %8530 = sst [smem:[#allocation10_spill]] %s8496_s8 }
   0x9   :  { %s8531_s24 = sld [smem:[#allocation3_spill]] }
   0xa   :  { %s8532_s0 = sld [smem:[#allocation4_spill]] }
   0xb   :  { %s8533_s2 = sld [smem:[#allocation5_spill]] }
   0xc   :  { %s8534_s5 = sld [smem:[#allocation6_spill]] }
   0xd   :  { %s8535_s6 = sld [smem:[#allocation7_spill]] }
   0xe   :  { %s8537_s8 = sld [smem:[#allocation9_spill]] }
   0xf   :  { %v7078_v1 = vld [vmem:[%s8531_s24 + $0x18] sm:$0xff]  ;;  %v7083_v2 = vld [vmem:[%s8531_s24 + $0x10] sm:$0xff]  ;;  %v7102_v5 = vld [vmem:[%s8531_s24 + $0x8] sm:$0xff]  ;;  %s8538_s27 = sld [smem:[#allocation10_spill]] }
  0x10   :  { %v7089_v3 = vld [vmem:[%s8532_s0 + $0x8] sm:$0xff]  ;;  %6071 = vmatpush3.msra.mxu1 %v7078_v1  ;;  %v7096_v4 = vld [vmem:[%s8532_s0] sm:$0xff] }
  0x11   :  { %6064 = vmatpush3.msra.mxu0 %v7089_v3  ;;  %6072 = vmatprep.subr.mxu1 %v8520_v0  ;;  %v90_v6 = vld [vmem:[%s8533_s2] sm:$0xff]  ;;  %v5670_v25 = vld [vmem:[%s8533_s2 + $0x8] sm:$0xff]  ;;  %v7186_v48 = vld [vmem:[%s8533_s2 + $0x10] sm:$0xff] }
  0x12   :  { %6065 = vmatprep.subr.mxu0 %v8520_v0  ;;  %6073 = vmatpush3.msra.mxu1 %v7083_v2  ;;  %v7116_v7 = vld [vmem:[%s8531_s24] sm:$0xff]  ;;  %s8536_s24 = sld [smem:[#allocation8_spill]] }
  0x13   :  { %6066 = vmatpush3.msra.mxu0 %v7096_v4  ;;  %6074 = vmatprep.subr.mxu1 %v8520_v0  ;;  %v7142_v9 = vld [vmem:[%s8534_s5] ss:$0 sm:$0xff] }
  0x14   :  { %6075 = vmatpush3.msra.mxu1 %v7102_v5  ;;  %6068 = vmatmul.mubr.msk.f32.vlgmr.msra.gmra.mxu0 %vm97_vm0, %v90_v6  ;;  %v7149_v14 = vld [vmem:[%s8535_s6] ss:$0 sm:$0xff] }
  0x15   :  { %6076 = vmatprep.subr.mxu1 %v8520_v0  ;;  %6081 = vmatprep.subr.mxu0 %v8520_v0 }
  0x16   :  { %6077 = vmatpush3.msra.mxu1 %v7116_v7  ;;  %6082 = vmatpush3.msra.mxu0 %v7089_v3 }
  0x17   :  { %6079 = vmatmul.mubr.f32.vlgmr.msra.gmra.mxu1 %v8520_v0  ;;  %6083 = vmatprep.subr.mxu0 %v8520_v0 }
  0x18   :  { %6085 = vmatprep.mubr.msk.f32.mxu0 %vm6950_vm1, %v8520_v0  ;;  %6084 = vmatpush3.msra.mxu0 %v7096_v4 }
  0x19   :  { %6099 = vmatprep.subr.mxu1 %v8520_v0  ;;  %6088 = vmatprep.subr.mxu0 %v8520_v0 }
  0x1a   :  { %6100 = vmatpush3.msra.mxu1 %v7089_v3  ;;  %6103 = vmatprep.mubr.msk.f32.mxu1 %vm6950_vm1, %v8520_v0 }
  0x1b   :  { %6101 = vmatprep.subr.mxu1 %v8520_v0  ;;  %6086 = vmatmul.mubr.msk.f32.vlgmr.msra.gmra.mxu0 %vm97_vm0, %v5670_v25 }
  0x1c   :  { %6102 = vmatpush3.msra.mxu1 %v7096_v4  ;;  %6089 = vmatpush3.msra.mxu0 %v7078_v1 }
  0x1d   :  { %6106 = vmatprep.subr.mxu1 %v8520_v0  ;;  %6096 = vmatprep.mubr.msk.f32.mxu0 %vm6950_vm1, %v8520_v0 }
  0x1e   :  { %6090 = vmatprep.subr.mxu0 %v8520_v0  ;;  %6104 = vmatmul.mubr.msk.f32.vlgmr.msra.gmra.mxu1 %vm97_vm0, %v7186_v48 }
  0x1f   :  { %6091 = vmatpush3.msra.mxu0 %v7083_v2  ;;  %6107 = vmatpush3.msra.mxu1 %v7078_v1 }
  0x20   :  { %6092 = vmatprep.subr.mxu0 %v8520_v0  ;;  %6114 = vmatprep.mubr.msk.f32.mxu1 %vm6950_vm1, %v8520_v0 }
  0x21   :  { %6093 = vmatpush3.msra.mxu0 %v7102_v5  ;;  %6108 = vmatprep.subr.mxu1 %v8520_v0 }
  0x22   :  { %6094 = vmatprep.subr.mxu0 %v8520_v0  ;;  %6109 = vmatpush3.msra.mxu1 %v7083_v2 }
  0x23   :  { %6095 = vmatpush3.msra.mxu0 %v7116_v7  ;;  %6110 = vmatprep.subr.mxu1 %v8520_v0 }
  0x24   :  { %6117 = vmatprep.subr.mxu0 %v8520_v0  ;;  %6111 = vmatpush3.msra.mxu1 %v7102_v5 }
  0x25   :  { %6112 = vmatprep.subr.mxu1 %v8520_v0 }
  0x26   :  { %6113 = vmatpush3.msra.mxu1 %v7116_v7 }
  0x27   :  { %6135 = vmatprep.subr.mxu1 %v8520_v0 }
  0xd4   :  { %v167_v8 = vpop.f32.mrf.mxu0 }
  0xd5   :  { %v168_v15 = vadd.f32 %v7149_v14, %v167_v8 }
  0xd6   :  { %v6069_v11 = vpop.f32.mrf.mxu0 }
  0xd7   :  { %v247_v10 = vpop.f32.mrf.mxu1 }
  0xd8   :  { %v248_v12 = vadd.f32 %v7142_v9, %v247_v10 }
  0xd9   :  { %v6080_v13 = vpop.f32.mrf.mxu1 }
  0xda   :  { %259 = vrot.lane.b32.xlu0 %v248_v12, %s6951_s1  ;;  %v251_v16 = vadd.f32 %v248_v12, %v168_v15 }
  0xdb   :  { %v348_v32 = vpop.f32.mrf.mxu0 }
  0xdc   :  { %v5669_v17 = vmul.f32 -1.442695, %v251_v16  ;;  %v349_v38 = vadd.f32 %v7149_v14, %v348_v32  ;;  %v7219_v16 = vld [vmem:[%s8533_s2 + $0x18] sm:$0xff] }
  0xdd   :  { %v6087_v33 = vpop.f32.mrf.mxu0 }
  0xde   :  { %6650 = vpow2.f32 %v5669_v17  ;;  %v524_v55 = vpop.f32.mrf.mxu1 }
  0xdf   :  { %v525_v61 = vadd.f32 %v7149_v14, %v524_v55 }
  0xe0   :  { %v6105_v56 = vpop.f32.mrf.mxu1 }
  0xeb   :  { %v6651_v18 = vpop.eup %6650 }
  0xec   :  { %v255_v19 = vadd.f32 1.0, %v6651_v18 }
  0xee   :  { %6652 = vrcp.f32 %v255_v19 }
  0xfb   :  { %v6653_v20 = vpop.eup %6652 }
  0xfc   :  { %v269_v27 = vsub.f32 1.0, %v6653_v20  ;;  %v275_v29 = vmul.f32 0.0, %v6653_v20 }
 0x14c   :  { %v260_v21 = vpop.permute.xlu0 %259 }
 0x14d   :  { %v262_v22 = vmul.f32 %v6653_v20, %v260_v21 }
 0x14f   :  { %264 = vrot.lane.b32.xlu0 %v262_v22, %s6951_s1 }
 0x1c1   :  { %v265_v23 = vpop.permute.xlu0 %264 }
 0x1c2   :  { %v267_v24 = vadd.f32 %v265_v23, %v168_v15 }
 0x1c4   :  { %6654 = vtanh.f32 %v267_v24 }
 0x1d1   :  { %v6655_v26 = vpop.eup %6654 }
 0x1d2   :  { %271 = vrot.lane.b32.xlu1 %v6655_v26, %s6952_s28 }
 0x244   :  { %v272_v28 = vpop.permute.xlu1 %271 }
 0x245   :  { %v274_v30 = vmul.f32 %v272_v28, %v269_v27 }
 0x247   :  { %v276_v31 = vadd.f32 %v275_v29, %v274_v30 }
 0x249   :  { %353 = vrot.lane.b32.xlu1 %v276_v31, %s6952_s28 }
 0x2bb   :  { %v7169_v34 = vpop.permute.xlu1 %353 }
 0x2bc   :  { %6097 = vmatmul.mubr.msk.f32.vlgmr.msra.gmra.mxu0 %vm177_vm2, %v7169_v34 }
 0x2bd   :  { %6118 = vmatpush3.msra.mxu0 %v7089_v3  ;;  %6121 = vmatprep.mubr.msk.f32.mxu0 %vm6950_vm1, %v8520_v0 }
 0x2be   :  { %6119 = vmatprep.subr.mxu0 %v8520_v0 }
 0x2bf   :  { %6120 = vmatpush3.msra.mxu0 %v7096_v4 }
 0x2c0   :  { %6124 = vmatprep.subr.mxu0 %v8520_v0  ;;  %6122 = vmatmul.mubr.msk.f32.vlgmr.msra.gmra.mxu0 %vm97_vm0, %v7219_v16 }
 0x2c1   :  { %6125 = vmatpush3.msra.mxu0 %v7078_v1  ;;  %6132 = vmatprep.mubr.msk.f32.mxu0 %vm6950_vm1, %v8520_v0 }
 0x2c2   :  { %6126 = vmatprep.subr.mxu0 %v8520_v0 }
 0x2c3   :  { %6127 = vmatpush3.msra.mxu0 %v7083_v2 }
 0x2c4   :  { %6128 = vmatprep.subr.mxu0 %v8520_v0 }
 0x2c5   :  { %6129 = vmatpush3.msra.mxu0 %v7102_v5 }
 0x2c6   :  { %6130 = vmatprep.subr.mxu0 %v8520_v0 }
 0x2c7   :  { %6131 = vmatpush3.msra.mxu0 %v7116_v7 }
 0x2c8   :  { %6153 = vmatprep.subr.mxu0 %v8520_v0 }
 0x37c   :  { %v423_v35 = vpop.f32.mrf.mxu0 }
 0x37d   :  { %v424_v36 = vadd.f32 %v7142_v9, %v423_v35 }
 0x37e   :  { %v6098_v37 = vpop.f32.mrf.mxu0 }
 0x37f   :  { %435 = vrot.lane.b32.xlu0 %v424_v36, %s6951_s1  ;;  %v427_v39 = vadd.f32 %v424_v36, %v349_v38 }
 0x380   :  { %v700_v23 = vpop.f32.mrf.mxu0 }
 0x381   :  { %v5673_v40 = vmul.f32 -1.442695, %v427_v39  ;;  %v701_v29 = vadd.f32 %v7149_v14, %v700_v23 }
 0x382   :  { %v6123_v24 = vpop.f32.mrf.mxu0 }
 0x383   :  { %6656 = vpow2.f32 %v5673_v40  ;;  %v7252_v40 = vld [vmem:[%s8533_s2 + $0x20] sm:$0xff] }
 0x390   :  { %v6657_v41 = vpop.eup %6656 }
 0x391   :  { %v431_v42 = vadd.f32 1.0, %v6657_v41 }
 0x393   :  { %6658 = vrcp.f32 %v431_v42 }
 0x3a0   :  { %v6659_v43 = vpop.eup %6658 }
 0x3a1   :  { %v445_v50 = vsub.f32 1.0, %v6659_v43  ;;  %v451_v52 = vmul.f32 %v6659_v43, %v276_v31 }
 0x3f1   :  { %v436_v44 = vpop.permute.xlu0 %435 }
 0x3f2   :  { %v438_v45 = vmul.f32 %v6659_v43, %v436_v44 }
 0x3f4   :  { %440 = vrot.lane.b32.xlu1 %v438_v45, %s6951_s1 }
 0x466   :  { %v441_v46 = vpop.permute.xlu1 %440 }
 0x467   :  { %v443_v47 = vadd.f32 %v441_v46, %v349_v38 }
 0x469   :  { %6660 = vtanh.f32 %v443_v47 }
 0x476   :  { %v6661_v49 = vpop.eup %6660 }
 0x477   :  { %447 = vrot.lane.b32.xlu0 %v6661_v49, %s6952_s28 }
 0x4e9   :  { %v448_v51 = vpop.permute.xlu0 %447 }
 0x4ea   :  { %v450_v53 = vmul.f32 %v448_v51, %v445_v50 }
 0x4ec   :  { %v452_v54 = vadd.f32 %v451_v52, %v450_v53 }
 0x4ee   :  { %529 = vrot.lane.b32.xlu1 %v452_v54, %s6952_s28 }
 0x560   :  { %v7202_v57 = vpop.permute.xlu1 %529 }
 0x561   :  { %6115 = vmatmul.mubr.msk.f32.vlgmr.msra.gmra.mxu1 %vm177_vm2, %v7202_v57 }
 0x562   :  { %6136 = vmatpush3.msra.mxu1 %v7089_v3  ;;  %6139 = vmatprep.mubr.msk.f32.mxu1 %vm6950_vm1, %v8520_v0 }
 0x563   :  { %6137 = vmatprep.subr.mxu1 %v8520_v0 }
 0x564   :  { %6138 = vmatpush3.msra.mxu1 %v7096_v4 }
 0x565   :  { %6142 = vmatprep.subr.mxu1 %v8520_v0  ;;  %6140 = vmatmul.mubr.msk.f32.vlgmr.msra.gmra.mxu1 %vm97_vm0, %v7252_v40 }
 0x566   :  { %6143 = vmatpush3.msra.mxu1 %v7078_v1  ;;  %6150 = vmatprep.mubr.msk.f32.mxu1 %vm6950_vm1, %v8520_v0 }
 0x567   :  { %6144 = vmatprep.subr.mxu1 %v8520_v0 }
 0x568   :  { %6145 = vmatpush3.msra.mxu1 %v7083_v2 }
 0x569   :  { %6146 = vmatprep.subr.mxu1 %v8520_v0 }
 0x56a   :  { %6147 = vmatpush3.msra.mxu1 %v7102_v5 }
 0x56b   :  { %6148 = vmatprep.subr.mxu1 %v8520_v0 }
 0x56c   :  { %6149 = vmatpush3.msra.mxu1 %v7116_v7 }
 0x56d   :  { %6171 = vmatprep.subr.mxu1 %v8520_v0 }
 0x621   :  { %v599_v58 = vpop.f32.mrf.mxu1 }
 0x622   :  { %v600_v59 = vadd.f32 %v7142_v9, %v599_v58 }
 0x623   :  { %v6116_v60 = vpop.f32.mrf.mxu1 }
 0x624   :  { %611 = vrot.lane.b32.xlu0 %v600_v59, %s6951_s1  ;;  %v603_v62 = vadd.f32 %v600_v59, %v525_v61 }
 0x625   :  { %v876_v47 = vpop.f32.mrf.mxu1 }
 0x626   :  { %v5677_v63 = vmul.f32 -1.442695, %v603_v62 }
 0x627   :  { %v6141_v49 = vpop.f32.mrf.mxu1 }
 0x628   :  { %6662 = vpow2.f32 %v5677_v63 }
 0x635   :  { %v6663_v6 = vpop.eup %6662 }
 0x636   :  { %v607_v8 = vadd.f32 1.0, %v6663_v6 }
 0x638   :  { %6664 = vrcp.f32 %v607_v8  ;;  %v7285_v8 = vld [vmem:[%s8533_s2 + $0x28] sm:$0xff] }
 0x645   :  { %v6665_v10 = vpop.eup %6664 }
 0x646   :  { %v621_v18 = vsub.f32 1.0, %v6665_v10  ;;  %v627_v20 = vmul.f32 %v6665_v10, %v452_v54  ;;  %v877_v54 = vadd.f32 %v7149_v14, %v876_v47  ;;  %v7396_v47 = vld [vmem:[%s8537_s8] sm:$0xff] }
 0x696   :  { %v612_v11 = vpop.permute.xlu0 %611 }
 0x697   :  { %v614_v12 = vmul.f32 %v6665_v10, %v612_v11 }
 0x699   :  { %616 = vrot.lane.b32.xlu1 %v614_v12, %s6951_s1 }
 0x70b   :  { %v617_v13 = vpop.permute.xlu1 %616 }
 0x70c   :  { %v619_v15 = vadd.f32 %v617_v13, %v525_v61 }
 0x70e   :  { %6666 = vtanh.f32 %v619_v15 }
 0x71b   :  { %v6667_v17 = vpop.eup %6666 }
 0x71c   :  { %623 = vrot.lane.b32.xlu0 %v6667_v17, %s6952_s28 }
 0x78e   :  { %v624_v19 = vpop.permute.xlu0 %623 }
 0x78f   :  { %v626_v21 = vmul.f32 %v624_v19, %v621_v18 }
 0x791   :  { %v628_v22 = vadd.f32 %v627_v20, %v626_v21 }
 0x793   :  { %705 = vrot.lane.b32.xlu1 %v628_v22, %s6952_s28 }
 0x805   :  { %v7235_v25 = vpop.permute.xlu1 %705 }
 0x806   :  { %6133 = vmatmul.mubr.msk.f32.vlgmr.msra.gmra.mxu0 %vm177_vm2, %v7235_v25 }
 0x807   :  { %6154 = vmatpush3.msra.mxu0 %v7089_v3  ;;  %6157 = vmatprep.mubr.msk.f32.mxu0 %vm6950_vm1, %v8520_v0 }
 0x808   :  { %6155 = vmatprep.subr.mxu0 %v8520_v0 }
 0x809   :  { %6156 = vmatpush3.msra.mxu0 %v7096_v4 }
 0x80a   :  { %6160 = vmatprep.subr.mxu0 %v8520_v0  ;;  %6158 = vmatmul.mubr.msk.f32.vlgmr.msra.gmra.mxu0 %vm97_vm0, %v7285_v8 }
 0x80b   :  { %6161 = vmatpush3.msra.mxu0 %v7078_v1  ;;  %6168 = vmatprep.mubr.msk.f32.mxu0 %vm6950_vm1, %v8520_v0 }
 0x80c   :  { %6162 = vmatprep.subr.mxu0 %v8520_v0 }
 0x80d   :  { %6163 = vmatpush3.msra.mxu0 %v7083_v2 }
 0x80e   :  { %6164 = vmatprep.subr.mxu0 %v8520_v0 }
 0x80f   :  { %6165 = vmatpush3.msra.mxu0 %v7102_v5 }
 0x810   :  { %6166 = vmatprep.subr.mxu0 %v8520_v0 }
 0x811   :  { %6167 = vmatpush3.msra.mxu0 %v7116_v7 }
 0x812   :  { %6189 = vmatprep.subr.mxu0 %v8520_v0 }
 0x8c6   :  { %v775_v26 = vpop.f32.mrf.mxu0 }
 0x8c7   :  { %v776_v27 = vadd.f32 %v7142_v9, %v775_v26 }
 0x8c8   :  { %v6134_v28 = vpop.f32.mrf.mxu0 }
 0x8c9   :  { %787 = vrot.lane.b32.xlu0 %v776_v27, %s6951_s1  ;;  %v779_v30 = vadd.f32 %v776_v27, %v701_v29 }
 0x8ca   :  { %v1052_v18 = vpop.f32.mrf.mxu0 }
 0x8cb   :  { %v5681_v31 = vmul.f32 -1.442695, %v779_v30  ;;  %v1053_v24 = vadd.f32 %v7149_v14, %v1052_v18 }
 0x8cc   :  { %v6159_v19 = vpop.f32.mrf.mxu0 }
 0x8cd   :  { %6668 = vpow2.f32 %v5681_v31 }
 0x8da   :  { %v6669_v32 = vpop.eup %6668 }
 0x8db   :  { %v783_v33 = vadd.f32 1.0, %v6669_v32 }
 0x8dd   :  { %6670 = vrcp.f32 %v783_v33  ;;  %v7318_v33 = vld [vmem:[%s8533_s2 + $0x30] sm:$0xff] }
 0x8ea   :  { %v6671_v35 = vpop.eup %6670 }
 0x8eb   :  { %v797_v42 = vsub.f32 1.0, %v6671_v35  ;;  %v803_v44 = vmul.f32 %v6671_v35, %v628_v22 }
 0x93b   :  { %v788_v36 = vpop.permute.xlu0 %787 }
 0x93c   :  { %v790_v37 = vmul.f32 %v6671_v35, %v788_v36  ;;  %v5694_v36 = vld [vmem:[%s8533_s2 + $0x38] sm:$0xff] }
 0x93e   :  { %792 = vrot.lane.b32.xlu1 %v790_v37, %s6951_s1 }
 0x9b0   :  { %v793_v38 = vpop.permute.xlu1 %792 }
 0x9b1   :  { %v795_v39 = vadd.f32 %v793_v38, %v701_v29 }
 0x9b3   :  { %6672 = vtanh.f32 %v795_v39 }
 0x9c0   :  { %v6673_v41 = vpop.eup %6672 }
 0x9c1   :  { %799 = vrot.lane.b32.xlu0 %v6673_v41, %s6952_s28 }
 0xa33   :  { %v800_v43 = vpop.permute.xlu0 %799 }
 0xa34   :  { %v802_v45 = vmul.f32 %v800_v43, %v797_v42 }
 0xa36   :  { %v804_v46 = vadd.f32 %v803_v44, %v802_v45  ;;  %v7380_v45 = vld [vmem:[%s8537_s8 + $0x10] sm:$0xff] }
 0xa38   :  { %881 = vrot.lane.b32.xlu1 %v804_v46, %s6952_s28 }
 0xaaa   :  { %v7268_v50 = vpop.permute.xlu1 %881 }
 0xaab   :  { %6151 = vmatmul.mubr.msk.f32.vlgmr.msra.gmra.mxu1 %vm177_vm2, %v7268_v50 }
 0xaac   :  { %6172 = vmatpush3.msra.mxu1 %v7089_v3  ;;  %6175 = vmatprep.mubr.msk.f32.mxu1 %vm6950_vm1, %v8520_v0 }
 0xaad   :  { %6173 = vmatprep.subr.mxu1 %v8520_v0 }
 0xaae   :  { %6174 = vmatpush3.msra.mxu1 %v7096_v4 }
 0xaaf   :  { %6178 = vmatprep.subr.mxu1 %v8520_v0  ;;  %6176 = vmatmul.mubr.msk.f32.vlgmr.msra.gmra.mxu1 %vm97_vm0, %v7318_v33 }
 0xab0   :  { %6179 = vmatpush3.msra.mxu1 %v7078_v1  ;;  %6186 = vmatprep.mubr.msk.f32.mxu1 %vm6950_vm1, %v8520_v0 }
 0xab1   :  { %6180 = vmatprep.subr.mxu1 %v8520_v0 }
 0xab2   :  { %6181 = vmatpush3.msra.mxu1 %v7083_v2 }
 0xab3   :  { %6182 = vmatprep.subr.mxu1 %v8520_v0 }
 0xab4   :  { %6183 = vmatpush3.msra.mxu1 %v7102_v5 }
 0xab5   :  { %6184 = vmatprep.subr.mxu1 %v8520_v0 }
 0xab6   :  { %6185 = vmatpush3.msra.mxu1 %v7116_v7 }
 0xab7   :  { %6207 = vmatprep.subr.mxu1 %v8520_v0 }
 0xb6b   :  { %v951_v51 = vpop.f32.mrf.mxu1 }
 0xb6c   :  { %v952_v52 = vadd.f32 %v7142_v9, %v951_v51 }
 0xb6d   :  { %v6152_v53 = vpop.f32.mrf.mxu1 }
 0xb6e   :  { %963 = vrot.lane.b32.xlu0 %v952_v52, %s6951_s1  ;;  %v955_v55 = vadd.f32 %v952_v52, %v877_v54 }
 0xb70   :  { %v5685_v56 = vmul.f32 -1.442695, %v955_v55  ;;  %v7426_v55 = vld [vmem:[%s8538_s27] ss:$0 sm:$0xff] }
 0xb72   :  { %6674 = vpow2.f32 %v5685_v56 }
 0xb7f   :  { %v6675_v58 = vpop.eup %6674 }
 0xb80   :  { %v959_v59 = vadd.f32 1.0, %v6675_v58 }
 0xb82   :  { %6676 = vrcp.f32 %v959_v59 }
 0xb8f   :  { %v6677_v60 = vpop.eup %6676 }
 0xb90   :  { %v973_v11 = vsub.f32 1.0, %v6677_v60  ;;  %v979_v13 = vmul.f32 %v6677_v60, %v804_v46  ;;  %v7389_v46 = vld [vmem:[%s8537_s8 + $0x8] sm:$0xff] }
 0xbe0   :  { %v964_v61 = vpop.permute.xlu0 %963 }
 0xbe1   :  { %v966_v62 = vmul.f32 %v6677_v60, %v964_v61 }
 0xbe3   :  { %968 = vrot.lane.b32.xlu1 %v966_v62, %s6951_s1  ;;  %v7434_v62 = vld [vmem:[%s8497_s7] ss:$0 sm:$0xff] }
 0xc55   :  { %v969_v63 = vpop.permute.xlu1 %968 }
 0xc56   :  { %v971_v6 = vadd.f32 %v969_v63, %v877_v54 }
 0xc58   :  { %6678 = vtanh.f32 %v971_v6 }
 0xc65   :  { %v6679_v10 = vpop.eup %6678 }
 0xc66   :  { %975 = vrot.lane.b32.xlu0 %v6679_v10, %s6952_s28 }
 0xcd8   :  { %v976_v12 = vpop.permute.xlu0 %975 }
 0xcd9   :  { %v978_v15 = vmul.f32 %v976_v12, %v973_v11 }
 0xcdb   :  { %v980_v17 = vadd.f32 %v979_v13, %v978_v15 }
 0xcdd   :  { %1057 = vrot.lane.b32.xlu1 %v980_v17, %s6952_s28 }
 0xd4f   :  { %v7301_v20 = vpop.permute.xlu1 %1057 }
 0xd50   :  { %6169 = vmatmul.mubr.msk.f32.vlgmr.msra.gmra.mxu0 %vm177_vm2, %v7301_v20 }
 0xd51   :  { %6190 = vmatpush3.msra.mxu0 %v7089_v3  ;;  %6193 = vmatprep.mubr.msk.f32.mxu0 %vm6950_vm1, %v8520_v0 }
 0xd52   :  { %6191 = vmatprep.subr.mxu0 %v8520_v0 }
 0xd53   :  { %6192 = vmatpush3.msra.mxu0 %v7096_v4 }
 0xd54   :  { %6196 = vmatprep.subr.mxu0 %v8520_v0  ;;  %6194 = vmatmul.mubr.msk.f32.vlgmr.msra.gmra.mxu0 %vm97_vm0, %v5694_v36 }
 0xd55   :  { %6197 = vmatpush3.msra.mxu0 %v7078_v1  ;;  %6204 = vmatprep.mubr.msk.f32.mxu0 %vm6950_vm1, %v8520_v0  ;;  %v1228_v1 = vpop.f32.mrf.mxu1 }
 0xd56   :  { %6198 = vmatprep.subr.mxu0 %v8520_v0  ;;  %v1229_v60 = vadd.f32 %v7149_v14, %v1228_v1 }
 0xd57   :  { %6199 = vmatpush3.msra.mxu0 %v7083_v2  ;;  %v6177_v43 = vpop.f32.mrf.mxu1  ;;  %v7354_v2 = vld [vmem:[%s8536_s24 + $0x8] sm:$0xff] }
 0xd58   :  { %6200 = vmatprep.subr.mxu0 %v8520_v0 }
 0xd59   :  { %6201 = vmatpush3.msra.mxu0 %v7102_v5  ;;  %v7363_v5 = vld [vmem:[%s8536_s24] sm:$0xff] }
 0xd5a   :  { %6202 = vmatprep.subr.mxu0 %v8520_v0 }
 0xd5b   :  { %6203 = vmatpush3.msra.mxu0 %v7116_v7  ;;  %v7372_v7 = vld [vmem:[%s8537_s8 + $0x18] sm:$0xff] }
 0xd5c   :  { %6225 = vmatprep.subr.mxu0 %v8520_v0 }
 0xe10   :  { %v1127_v21 = vpop.f32.mrf.mxu0 }
 0xe11   :  { %v1128_v22 = vadd.f32 %v7142_v9, %v1127_v21 }
 0xe12   :  { %v6170_v23 = vpop.f32.mrf.mxu0 }
 0xe13   :  { %1139 = vrot.lane.b32.xlu0 %v1128_v22, %s6951_s1  ;;  %v1131_v26 = vadd.f32 %v1128_v22, %v1053_v24 }
 0xe15   :  { %v5689_v27 = vmul.f32 -1.442695, %v1131_v26 }
 0xe17   :  { %6680 = vpow2.f32 %v5689_v27 }
 0xe24   :  { %v6681_v3 = vpop.eup %6680 }
 0xe25   :  { %v1135_v28 = vadd.f32 1.0, %v6681_v3 }
 0xe27   :  { %6682 = vrcp.f32 %v1135_v28 }
 0xe34   :  { %v6683_v29 = vpop.eup %6682 }
 0xe35   :  { %v1149_v37 = vsub.f32 1.0, %v6683_v29  ;;  %v1155_v39 = vmul.f32 %v6683_v29, %v980_v17 }
 0xe85   :  { %v1140_v30 = vpop.permute.xlu0 %1139 }
 0xe86   :  { %v1142_v31 = vmul.f32 %v6683_v29, %v1140_v30 }
 0xe88   :  { %1144 = vrot.lane.b32.xlu1 %v1142_v31, %s6951_s1 }
 0xefa   :  { %v1145_v4 = vpop.permute.xlu1 %1144 }
 0xefb   :  { %v1147_v32 = vadd.f32 %v1145_v4, %v1053_v24 }
 0xefd   :  { %6684 = vtanh.f32 %v1147_v32  ;;  %v7444_v32 = vpop.f32.mrf.mxu0 }
 0xf0a   :  { %v6685_v35 = vpop.eup %6684 }
 0xf0b   :  { %1151 = vrot.lane.b32.xlu0 %v6685_v35, %s6952_s28  ;;  %v6195_v35 = vpop.f32.mrf.mxu0 }
 0xf7d   :  { %v1152_v38 = vpop.permute.xlu0 %1151 }
 0xf7e   :  { %v1154_v41 = vmul.f32 %v1152_v38, %v1149_v37 }
 0xf80   :  { %v7344_v42 = vadd.f32 %v1155_v39, %v1154_v41 }
 0xf82   :  { %1233 = vrot.lane.b32.xlu1 %v7344_v42, %s6952_s28 }
 0xff4   :  { %v7356_v44 = vpop.permute.xlu1 %1233 }
 0xff5   :  { %6187 = vmatmul.mubr.msk.f32.vlgmr.msra.gmra.mxu1 %vm177_vm2, %v7356_v44 }
 0xff6   :  { %6208 = vmatpush3.msra.mxu1 %v7354_v2  ;;  %6211 = vmatprep.mubr.msk.f32.mxu1 %vm6950_vm1, %v8520_v0 }
 0xff7   :  { %6209 = vmatprep.subr.mxu1 %v8520_v0 }
 0xff8   :  { %6210 = vmatpush3.msra.mxu1 %v7363_v5 }
 0xff9   :  { %6214 = vmatprep.subr.mxu1 %v8520_v0  ;;  %6212 = vmatmul.mubr.msk.f32.vlgmr.msra.gmra.mxu1 %vm97_vm0, %v5694_v36 }
 0xffa   :  { %6215 = vmatpush3.msra.mxu1 %v7372_v7  ;;  %6222 = vmatprep.mubr.msk.f32.mxu1 %vm6950_vm1, %v8520_v0 }
 0xffb   :  { %6216 = vmatprep.subr.mxu1 %v8520_v0 }
 0xffc   :  { %6217 = vmatpush3.msra.mxu1 %v7380_v45 }
 0xffd   :  { %6218 = vmatprep.subr.mxu1 %v8520_v0 }
 0xffe   :  { %6219 = vmatpush3.msra.mxu1 %v7389_v46 }
 0xfff   :  { %6220 = vmatprep.subr.mxu1 %v8520_v0 }
0x1000   :  { %6221 = vmatpush3.msra.mxu1 %v7396_v47 }
0x1001   :  { %6223 = vmatmul.mubr.f32.vlgmr.msra.gmra.mxu1 %v8520_v0  ;;  %6243 = vmatprep.subr.mxu1 %v8520_v0 }
0x1002   :  { %6244 = vmatpush3.msra.mxu1 %v7354_v2  ;;  %6247 = vmatprep.mubr.msk.f32.mxu1 %vm6950_vm1, %v8520_v0 }
0x1003   :  { %6245 = vmatprep.subr.mxu1 %v8520_v0 }
0x1004   :  { %6246 = vmatpush3.msra.mxu1 %v7363_v5 }
0x1005   :  { %6248 = vmatmul.mubr.msk.f32.vlgmr.msra.gmra.mxu1 %vm97_vm0, %v7285_v8  ;;  %6250 = vmatprep.subr.mxu1 %v8520_v0 }
0x1006   :  { %6251 = vmatpush3.msra.mxu1 %v7372_v7  ;;  %6258 = vmatprep.mubr.msk.f32.mxu1 %vm6950_vm1, %v8520_v0 }
0x1007   :  { %6252 = vmatprep.subr.mxu1 %v8520_v0 }
0x1008   :  { %6253 = vmatpush3.msra.mxu1 %v7380_v45 }
0x1009   :  { %6254 = vmatprep.subr.mxu1 %v8520_v0 }
0x100a   :  { %6255 = vmatpush3.msra.mxu1 %v7389_v46 }
0x100b   :  { %6256 = vmatprep.subr.mxu1 %v8520_v0 }
0x100c   :  { %6257 = vmatpush3.msra.mxu1 %v7396_v47 }
0x100d   :  { %6279 = vmatprep.subr.mxu1 %v8520_v0 }
0x10b5   :  { %v1303_v49 = vpop.f32.mrf.mxu1 }
0x10b6   :  { %v1304_v51 = vadd.f32 %v7142_v9, %v1303_v49 }
0x10b7   :  { %v6188_v52 = vpop.f32.mrf.mxu1 }
0x10b8   :  { %1315 = vrot.lane.b32.xlu0 %v1304_v51, %s6951_s1  ;;  %v1307_v61 = vadd.f32 %v1304_v51, %v1229_v60 }
0x10b9   :  { %v1581_v53 = vpop.f32.mrf.mxu1 }
0x10ba   :  { %v5693_v9 = vmul.f32 -1.442695, %v1307_v61  ;;  %v1582_v63 = vadd.f32 %v7434_v62, %v1581_v53 }
0x10bb   :  { %v6213_v54 = vpop.f32.mrf.mxu1 }
0x10bc   :  { %6686 = vpow2.f32 %v5693_v9 }
0x10c1   :  { %v1657_v56 = vpop.f32.mrf.mxu1 }
0x10c2   :  { %v1658_v58 = vadd.f32 %v7426_v55, %v1657_v56 }
0x10c3   :  { %v6224_v59 = vpop.f32.mrf.mxu1 }
0x10c4   :  { %1669 = vrot.lane.b32.xlu1 %v1658_v58, %s6951_s1  ;;  %v1661_v6 = vadd.f32 %v1658_v58, %v1582_v63 }
0x10c6   :  { %v5701_v8 = vmul.f32 -1.442695, %v1661_v6 }
0x10c8   :  { %6688 = vpow2.f32 %v5701_v8 }
0x10c9   :  { %v6687_v10 = vpop.eup %6686 }
0x10ca   :  { %v1311_v11 = vadd.f32 1.0, %v6687_v10 }
0x10cc   :  { %6690 = vrcp.f32 %v1311_v11  ;;  %v1924_v11 = vpop.f32.mrf.mxu1 }
0x10d5   :  { %v6689_v12 = vpop.eup %6688 }
0x10d6   :  { %v1665_v13 = vadd.f32 1.0, %v6689_v12  ;;  %v6249_v12 = vpop.f32.mrf.mxu1 }
0x10d8   :  { %6692 = vrcp.f32 %v1665_v13 }
0x10d9   :  { %v6691_v14 = vpop.eup %6690 }
0x10da   :  { %v1325_v28 = vsub.f32 1.0, %v6691_v14  ;;  %v1331_v30 = vmul.f32 %v6691_v14, %v7344_v42 }
0x10e5   :  { %v6693_v18 = vpop.eup %6692 }
0x10e6   :  { %v1679_v36 = vsub.f32 1.0, %v6693_v18  ;;  %v1685_v38 = vmul.f32 0.0, %v6693_v18 }
0x112a   :  { %v1316_v15 = vpop.permute.xlu0 %1315 }
0x112b   :  { %v1318_v17 = vmul.f32 %v6691_v14, %v1316_v15 }
0x112d   :  { %1320 = vrot.lane.b32.xlu0 %v1318_v17, %s6951_s1 }
0x1136   :  { %v1670_v19 = vpop.permute.xlu1 %1669 }
0x1137   :  { %v1672_v21 = vmul.f32 %v6693_v18, %v1670_v19 }
0x1139   :  { %1674 = vrot.lane.b32.xlu1 %v1672_v21, %s6951_s1 }
0x119f   :  { %v1321_v22 = vpop.permute.xlu0 %1320 }
0x11a0   :  { %v1323_v23 = vadd.f32 %v1321_v22, %v1229_v60 }
0x11a2   :  { %6694 = vtanh.f32 %v1323_v23  ;;  %v1925_v23 = vadd.f32 %v7434_v62, %v1924_v11 }
0x11ab   :  { %v1675_v24 = vpop.permute.xlu1 %1674 }
0x11ac   :  { %v1677_v26 = vadd.f32 %v1675_v24, %v1582_v63 }
0x11ae   :  { %6696 = vtanh.f32 %v1677_v26 }
0x11af   :  { %v6695_v27 = vpop.eup %6694 }
0x11b0   :  { %1327 = vrot.lane.b32.xlu0 %v6695_v27, %s6952_s28 }
0x11bb   :  { %v6697_v3 = vpop.eup %6696 }
0x11bc   :  { %1681 = vrot.lane.b32.xlu1 %v6697_v3, %s6952_s28 }
0x1222   :  { %v1328_v29 = vpop.permute.xlu0 %1327 }
0x1223   :  { %v1330_v31 = vmul.f32 %v1328_v29, %v1325_v28 }
0x1225   :  { %v7442_v4 = vadd.f32 %v1331_v30, %v1330_v31 }
0x1227   :  { %1409 = vrot.lane.b32.xlu0 %v7442_v4, %s6952_s28 }
0x122e   :  { %v1682_v37 = vpop.permute.xlu1 %1681 }
0x122f   :  { %v1684_v39 = vmul.f32 %v1682_v37, %v1679_v36 }
0x1231   :  { %v7448_v41 = vadd.f32 %v1685_v38, %v1684_v39 }
0x1233   :  { %1758 = vrot.lane.b32.xlu1 %v7448_v41, %s6952_s28 }
0x1299   :  { %v7452_v1 = vpop.permute.xlu0 %1409 }
0x129a   :  { %6205 = vmatmul.mubr.msk.f32.vlgmr.msra.gmra.mxu0 %vm177_vm2, %v7452_v1 }
0x129b   :  { %6226 = vmatpush3.msra.mxu0 %v7354_v2  ;;  %6229 = vmatprep.mubr.msk.f32.mxu0 %vm6950_vm1, %v8520_v0 }
0x129c   :  { %6227 = vmatprep.subr.mxu0 %v8520_v0 }
0x129d   :  { %6228 = vmatpush3.msra.mxu0 %v7363_v5 }
0x129e   :  { %6232 = vmatprep.subr.mxu0 %v8520_v0  ;;  %6230 = vmatmul.mubr.msk.f32.vlgmr.msra.gmra.mxu0 %vm97_vm0, %v7318_v33 }
0x129f   :  { %6233 = vmatpush3.msra.mxu0 %v7372_v7  ;;  %6240 = vmatprep.mubr.msk.f32.mxu0 %vm6950_vm1, %v8520_v0 }
0x12a0   :  { %6234 = vmatprep.subr.mxu0 %v8520_v0 }
0x12a1   :  { %6235 = vmatpush3.msra.mxu0 %v7380_v45 }
0x12a2   :  { %6236 = vmatprep.subr.mxu0 %v8520_v0 }
0x12a3   :  { %6237 = vmatpush3.msra.mxu0 %v7389_v46 }
0x12a4   :  { %6238 = vmatprep.subr.mxu0 %v8520_v0 }
0x12a5   :  { %6239 = vmatpush3.msra.mxu0 %v7396_v47  ;;  %v7473_v42 = vpop.permute.xlu1 %1758 }
0x12a6   :  { %6241 = vmatmul.mubr.msk.f32.vlgmr.msra.gmra.mxu0 %vm177_vm2, %v7473_v42  ;;  %6261 = vmatprep.subr.mxu0 %v8520_v0 }
0x12a7   :  { %6262 = vmatpush3.msra.mxu0 %v7354_v2  ;;  %6265 = vmatprep.mubr.msk.f32.mxu0 %vm6950_vm1, %v8520_v0 }
0x12a8   :  { %6263 = vmatprep.subr.mxu0 %v8520_v0 }
0x12a9   :  { %6264 = vmatpush3.msra.mxu0 %v7363_v5 }
0x12aa   :  { %6266 = vmatmul.mubr.msk.f32.vlgmr.msra.gmra.mxu0 %vm97_vm0, %v7252_v40  ;;  %6268 = vmatprep.subr.mxu0 %v8520_v0 }
0x12ab   :  { %6269 = vmatpush3.msra.mxu0 %v7372_v7  ;;  %6276 = vmatprep.mubr.msk.f32.mxu0 %vm6950_vm1, %v8520_v0 }
0x12ac   :  { %6270 = vmatprep.subr.mxu0 %v8520_v0 }
0x12ad   :  { %6271 = vmatpush3.msra.mxu0 %v7380_v45 }
0x12ae   :  { %6272 = vmatprep.subr.mxu0 %v8520_v0 }
0x12af   :  { %6273 = vmatpush3.msra.mxu0 %v7389_v46 }
0x12b0   :  { %6274 = vmatprep.subr.mxu0 %v8520_v0 }
0x12b1   :  { %6275 = vmatpush3.msra.mxu0 %v7396_v47 }
0x12b2   :  { %6297 = vmatprep.subr.mxu0 %v8520_v0 }
0x135a   :  { %v7496_v40 = vpop.f32.mrf.mxu0 }
0x135c   :  { %v6206_v33 = vpop.f32.mrf.mxu0 }
0x135e   :  { %v1753_v43 = vpop.f32.mrf.mxu0 }
0x135f   :  { %v1754_v54 = vadd.f32 %v7434_v62, %v1753_v43 }
0x1360   :  { %v6231_v49 = vpop.f32.mrf.mxu0 }
0x1366   :  { %v1828_v51 = vpop.f32.mrf.mxu0 }
0x1367   :  { %v1829_v52 = vadd.f32 %v7426_v55, %v1828_v51 }
0x1368   :  { %v6242_v53 = vpop.f32.mrf.mxu0 }
0x1369   :  { %1840 = vrot.lane.b32.xlu0 %v1829_v52, %s6951_s1  ;;  %v1832_v56 = vadd.f32 %v1829_v52, %v1754_v54 }
0x136a   :  { %v2095_v37 = vpop.f32.mrf.mxu0 }
0x136b   :  { %v5704_v58 = vmul.f32 -1.442695, %v1832_v56 }
0x136c   :  { %v6267_v38 = vpop.f32.mrf.mxu0 }
0x136d   :  { %6698 = vpow2.f32 %v5704_v58 }
0x137a   :  { %v6699_v59 = vpop.eup %6698 }
0x137b   :  { %v1836_v60 = vadd.f32 1.0, %v6699_v59 }
0x137d   :  { %6700 = vrcp.f32 %v1836_v60 }
0x138a   :  { %v6701_v61 = vpop.eup %6700 }
0x138b   :  { %v1850_v13 = vsub.f32 1.0, %v6701_v61  ;;  %v1856_v15 = vmul.f32 %v6701_v61, %v7448_v41 }
0x13db   :  { %v1841_v9 = vpop.permute.xlu0 %1840 }
0x13dc   :  { %v1843_v63 = vmul.f32 %v6701_v61, %v1841_v9 }
0x13de   :  { %1845 = vrot.lane.b32.xlu1 %v1843_v63, %s6951_s1 }
0x1450   :  { %v1846_v6 = vpop.permute.xlu1 %1845 }
0x1451   :  { %v1848_v8 = vadd.f32 %v1846_v6, %v1754_v54  ;;  %v2096_v54 = vadd.f32 %v7434_v62, %v2095_v37 }
0x1453   :  { %6702 = vtanh.f32 %v1848_v8 }
0x1460   :  { %v6703_v10 = vpop.eup %6702 }
0x1461   :  { %1852 = vrot.lane.b32.xlu0 %v6703_v10, %s6952_s28 }
0x14d3   :  { %v1853_v14 = vpop.permute.xlu0 %1852 }
0x14d4   :  { %v1855_v17 = vmul.f32 %v1853_v14, %v1850_v13 }
0x14d6   :  { %v1857_v18 = vadd.f32 %v1856_v15, %v1855_v17 }
0x14d8   :  { %1929 = vrot.lane.b32.xlu1 %v1857_v18, %s6952_s28 }
0x154a   :  { %v7505_v19 = vpop.permute.xlu1 %1929 }
0x154b   :  { %6259 = vmatmul.mubr.msk.f32.vlgmr.msra.gmra.mxu1 %vm177_vm2, %v7505_v19 }
0x154c   :  { %6280 = vmatpush3.msra.mxu1 %v7354_v2  ;;  %6283 = vmatprep.mubr.msk.f32.mxu1 %vm6950_vm1, %v8520_v0 }
0x154d   :  { %6281 = vmatprep.subr.mxu1 %v8520_v0 }
0x154e   :  { %6282 = vmatpush3.msra.mxu1 %v7363_v5 }
0x154f   :  { %6284 = vmatmul.mubr.msk.f32.vlgmr.msra.gmra.mxu1 %vm97_vm0, %v7219_v16  ;;  %6286 = vmatprep.subr.mxu1 %v8520_v0 }
0x1550   :  { %6287 = vmatpush3.msra.mxu1 %v7372_v7  ;;  %6294 = vmatprep.mubr.msk.f32.mxu1 %vm6950_vm1, %v8520_v0 }
0x1551   :  { %6288 = vmatprep.subr.mxu1 %v8520_v0 }
0x1552   :  { %6289 = vmatpush3.msra.mxu1 %v7380_v45 }
0x1553   :  { %6290 = vmatprep.subr.mxu1 %v8520_v0 }
0x1554   :  { %6291 = vmatpush3.msra.mxu1 %v7389_v46 }
0x1555   :  { %6292 = vmatprep.subr.mxu1 %v8520_v0 }
0x1556   :  { %6293 = vmatpush3.msra.mxu1 %v7396_v47 }
0x1557   :  { %6315 = vmatprep.subr.mxu1 %v8520_v0 }
0x160b   :  { %v1999_v16 = vpop.f32.mrf.mxu1 }
0x160c   :  { %v2000_v21 = vadd.f32 %v7426_v55, %v1999_v16 }
0x160d   :  { %v6260_v22 = vpop.f32.mrf.mxu1 }
0x160e   :  { %2011 = vrot.lane.b32.xlu0 %v2000_v21, %s6951_s1  ;;  %v2003_v24 = vadd.f32 %v2000_v21, %v1925_v23  ;;  %v6922_v21 = vld [vmem:[%s8533_s2 + $0x8] sm:$0xff] }
0x160f   :  { %v2266_v11 = vpop.f32.mrf.mxu1 }
0x1610   :  { %v5707_v26 = vmul.f32 -1.442695, %v2003_v24 }
0x1611   :  { %v6285_v12 = vpop.f32.mrf.mxu1 }
0x1612   :  { %6704 = vpow2.f32 %v5707_v26  ;;  %v2267_v26 = vadd.f32 %v7434_v62, %v2266_v11 }
0x161f   :  { %v6705_v27 = vpop.eup %6704 }
0x1620   :  { %v2007_v3 = vadd.f32 1.0, %v6705_v27 }
0x1622   :  { %6706 = vrcp.f32 %v2007_v3 }
0x162f   :  { %v6707_v28 = vpop.eup %6706 }
0x1630   :  { %v2021_v39 = vsub.f32 1.0, %v6707_v28  ;;  %v2027_v33 = vmul.f32 %v6707_v28, %v1857_v18 }
0x1680   :  { %v2012_v29 = vpop.permute.xlu0 %2011 }
0x1681   :  { %v2014_v30 = vmul.f32 %v6707_v28, %v2012_v29 }
0x1683   :  { %2016 = vrot.lane.b32.xlu1 %v2014_v30, %s6951_s1 }
0x16f5   :  { %v2017_v31 = vpop.permute.xlu1 %2016 }
0x16f6   :  { %v2019_v35 = vadd.f32 %v2017_v31, %v1925_v23 }
0x16f8   :  { %6708 = vtanh.f32 %v2019_v35 }
0x1705   :  { %v6709_v36 = vpop.eup %6708 }
0x1706   :  { %2023 = vrot.lane.b32.xlu0 %v6709_v36, %s6952_s28 }
0x1778   :  { %v2024_v41 = vpop.permute.xlu0 %2023 }
0x1779   :  { %v2026_v43 = vmul.f32 %v2024_v41, %v2021_v39 }
0x177b   :  { %v2028_v49 = vadd.f32 %v2027_v33, %v2026_v43 }
0x177d   :  { %2100 = vrot.lane.b32.xlu1 %v2028_v49, %s6952_s28 }
0x17ef   :  { %v7533_v51 = vpop.permute.xlu1 %2100 }
0x17f0   :  { %6277 = vmatmul.mubr.msk.f32.vlgmr.msra.gmra.mxu0 %vm177_vm2, %v7533_v51 }
0x17f1   :  { %6298 = vmatpush3.msra.mxu0 %v7354_v2  ;;  %6301 = vmatprep.mubr.msk.f32.mxu0 %vm6950_vm1, %v8520_v0 }
0x17f2   :  { %6299 = vmatprep.subr.mxu0 %v8520_v0 }
0x17f3   :  { %6300 = vmatpush3.msra.mxu0 %v7363_v5 }
0x17f4   :  { %6302 = vmatmul.mubr.msk.f32.vlgmr.msra.gmra.mxu0 %vm97_vm0, %v7186_v48  ;;  %6304 = vmatprep.subr.mxu0 %v8520_v0 }
0x17f5   :  { %6305 = vmatpush3.msra.mxu0 %v7372_v7  ;;  %6312 = vmatprep.mubr.msk.f32.mxu0 %vm6950_vm1, %v8520_v0 }
0x17f6   :  { %6306 = vmatprep.subr.mxu0 %v8520_v0 }
0x17f7   :  { %6307 = vmatpush3.msra.mxu0 %v7380_v45 }
0x17f8   :  { %6308 = vmatprep.subr.mxu0 %v8520_v0 }
0x17f9   :  { %6309 = vmatpush3.msra.mxu0 %v7389_v46 }
0x17fa   :  { %6310 = vmatprep.subr.mxu0 %v8520_v0 }
0x17fb   :  { %6311 = vmatpush3.msra.mxu0 %v7396_v47 }
0x17fc   :  { %6333 = vmatprep.subr.mxu0 %v8520_v0 }
0x18b0   :  { %v2170_v48 = vpop.f32.mrf.mxu0 }
0x18b1   :  { %v2171_v52 = vadd.f32 %v7426_v55, %v2170_v48 }
0x18b2   :  { %v6278_v53 = vpop.f32.mrf.mxu0 }
0x18b3   :  { %2182 = vrot.lane.b32.xlu0 %v2171_v52, %s6951_s1  ;;  %v2174_v56 = vadd.f32 %v2171_v52, %v2096_v54 }
0x18b4   :  { %v2437_v39 = vpop.f32.mrf.mxu0 }
0x18b5   :  { %v5710_v58 = vmul.f32 -1.442695, %v2174_v56 }
0x18b6   :  { %v6303_v41 = vpop.f32.mrf.mxu0 }
0x18b7   :  { %6710 = vpow2.f32 %v5710_v58 }
0x18c4   :  { %v6711_v59 = vpop.eup %6710 }
0x18c5   :  { %v2178_v60 = vadd.f32 1.0, %v6711_v59 }
0x18c7   :  { %6712 = vrcp.f32 %v2178_v60 }
0x18d4   :  { %v6713_v61 = vpop.eup %6712 }
0x18d5   :  { %v2192_v13 = vsub.f32 1.0, %v6713_v61  ;;  %v2198_v15 = vmul.f32 %v6713_v61, %v2028_v49 }
0x1925   :  { %v2183_v9 = vpop.permute.xlu0 %2182 }
0x1926   :  { %v2185_v63 = vmul.f32 %v6713_v61, %v2183_v9 }
0x1928   :  { %2187 = vrot.lane.b32.xlu1 %v2185_v63, %s6951_s1 }
0x199a   :  { %v2188_v6 = vpop.permute.xlu1 %2187 }
0x199b   :  { %v2190_v8 = vadd.f32 %v2188_v6, %v2096_v54  ;;  %v6923_v54 = vld [vmem:[%s8533_s2] sm:$0xff] }
0x199d   :  { %6714 = vtanh.f32 %v2190_v8 }
0x19aa   :  { %v6715_v10 = vpop.eup %6714 }
0x19ab   :  { %2194 = vrot.lane.b32.xlu0 %v6715_v10, %s6952_s28 }
0x1a1d   :  { %v2195_v14 = vpop.permute.xlu0 %2194 }
0x1a1e   :  { %v2197_v17 = vmul.f32 %v2195_v14, %v2192_v13 }
0x1a20   :  { %v2199_v18 = vadd.f32 %v2198_v15, %v2197_v17 }
0x1a22   :  { %2271 = vrot.lane.b32.xlu1 %v2199_v18, %s6952_s28 }
0x1a94   :  { %v7561_v16 = vpop.permute.xlu1 %2271 }
0x1a95   :  { %6295 = vmatmul.mubr.msk.f32.vlgmr.msra.gmra.mxu1 %vm177_vm2, %v7561_v16 }
0x1a96   :  { %6316 = vmatpush3.msra.mxu1 %v7354_v2  ;;  %6319 = vmatprep.mubr.msk.f32.mxu1 %vm6950_vm1, %v8520_v0 }
0x1a97   :  { %6317 = vmatprep.subr.mxu1 %v8520_v0 }
0x1a98   :  { %6318 = vmatpush3.msra.mxu1 %v7363_v5 }
0x1a99   :  { %6320 = vmatmul.mubr.msk.f32.vlgmr.msra.gmra.mxu1 %vm97_vm0, %v6922_v21  ;;  %6322 = vmatprep.subr.mxu1 %v8520_v0 }
0x1a9a   :  { %6323 = vmatpush3.msra.mxu1 %v7372_v7  ;;  %6330 = vmatprep.mubr.msk.f32.mxu1 %vm6950_vm1, %v8520_v0 }
0x1a9b   :  { %6324 = vmatprep.subr.mxu1 %v8520_v0 }
0x1a9c   :  { %6325 = vmatpush3.msra.mxu1 %v7380_v45 }
0x1a9d   :  { %6326 = vmatprep.subr.mxu1 %v8520_v0 }
0x1a9e   :  { %6327 = vmatpush3.msra.mxu1 %v7389_v46 }
0x1a9f   :  { %6328 = vmatprep.subr.mxu1 %v8520_v0 }
0x1aa0   :  { %6329 = vmatpush3.msra.mxu1 %v7396_v47 }
0x1b55   :  { %v2341_v22 = vpop.f32.mrf.mxu1 }
0x1b56   :  { %v2342_v23 = vadd.f32 %v7426_v55, %v2341_v22 }
0x1b57   :  { %v6296_v24 = vpop.f32.mrf.mxu1 }
0x1b58   :  { %2353 = vrot.lane.b32.xlu0 %v2342_v23, %s6951_s1  ;;  %v2345_v27 = vadd.f32 %v2342_v23, %v2267_v26 }
0x1b59   :  { %v2608_v8 = vpop.f32.mrf.mxu1 }
0x1b5a   :  { %v5713_v3 = vmul.f32 -1.442695, %v2345_v27  ;;  %v2609_v23 = vadd.f32 %v7434_v62, %v2608_v8  ;;  %v3130_v8 = vld [vmem:[%s8499_s16 + $0x18] sm:$0xff] }
0x1b5b   :  { %v6321_v10 = vpop.f32.mrf.mxu1 }
0x1b5c   :  { %6716 = vpow2.f32 %v5713_v3  ;;  %v3129_v10 = vld [vmem:[%s8499_s16 + $0x10] sm:$0xff] }
0x1b69   :  { %v6717_v28 = vpop.eup %6716 }
0x1b6a   :  { %v2349_v29 = vadd.f32 1.0, %v6717_v28 }
0x1b6c   :  { %6718 = vrcp.f32 %v2349_v29 }
0x1b79   :  { %v6719_v30 = vpop.eup %6718 }
0x1b7a   :  { %v2363_v33 = vsub.f32 1.0, %v6719_v30  ;;  %v2369_v49 = vmul.f32 %v6719_v30, %v2199_v18 }
0x1bca   :  { %v2354_v31 = vpop.permute.xlu0 %2353 }
0x1bcb   :  { %v2356_v35 = vmul.f32 %v6719_v30, %v2354_v31 }
0x1bcd   :  { %2358 = vrot.lane.b32.xlu1 %v2356_v35, %s6951_s1 }
0x1c3f   :  { %v2359_v36 = vpop.permute.xlu1 %2358 }
0x1c40   :  { %v2361_v37 = vadd.f32 %v2359_v36, %v2267_v26  ;;  %v2887_v36 = vld [vmem:[%s8498_s11 + $0x18] sm:$0xff] }
0x1c42   :  { %6720 = vtanh.f32 %v2361_v37 }
0x1c4f   :  { %v6721_v38 = vpop.eup %6720 }
0x1c50   :  { %2365 = vrot.lane.b32.xlu0 %v6721_v38, %s6952_s28 }
0x1cc2   :  { %v2366_v43 = vpop.permute.xlu0 %2365 }
0x1cc3   :  { %v2368_v48 = vmul.f32 %v2366_v43, %v2363_v33 }
0x1cc5   :  { %v2370_v52 = vadd.f32 %v2369_v49, %v2368_v48  ;;  %v6924_v49 = vld [vmem:[%s8534_s5] ss:$0 sm:$0xff] }
0x1cc6   :  { %v1480_v48 = vadd.f32 %v6924_v49, %v7496_v40  ;;  %v2886_v40 = vld [vmem:[%s8498_s11 + $0x10] sm:$0xff]  ;;  %v3134_v49 = vld [vmem:[%s8502_s17 + $0x18] sm:$0xff] }
0x1cc7   :  { %2442 = vrot.lane.b32.xlu1 %v2370_v52, %s6952_s28 }
0x1d39   :  { %v7590_v53 = vpop.permute.xlu1 %2442 }
0x1d3a   :  { %6313 = vmatmul.mubr.msk.f32.vlgmr.msra.gmra.mxu0 %vm177_vm2, %v7590_v53 }
0x1d3b   :  { %6334 = vmatpush3.msra.mxu0 %v7354_v2  ;;  %6337 = vmatprep.mubr.msk.f32.mxu0 %vm6950_vm1, %v8520_v0 }
0x1d3c   :  { %6335 = vmatprep.subr.mxu0 %v8520_v0 }
0x1d3d   :  { %6336 = vmatpush3.msra.mxu0 %v7363_v5 }
0x1d3e   :  { %6338 = vmatmul.mubr.msk.f32.vlgmr.msra.gmra.mxu0 %vm97_vm0, %v6923_v54  ;;  %6340 = vmatprep.subr.mxu0 %v8520_v0 }
0x1d3f   :  { %6341 = vmatpush3.msra.mxu0 %v7372_v7  ;;  %6348 = vmatprep.mubr.msk.f32.mxu0 %vm6950_vm1, %v8520_v0  ;;  %v2438_v7 = vadd.f32 %v7434_v62, %v2437_v39 }
0x1d40   :  { %6342 = vmatprep.subr.mxu0 %v8520_v0 }
0x1d41   :  { %6343 = vmatpush3.msra.mxu0 %v7380_v45 }
0x1d42   :  { %6344 = vmatprep.subr.mxu0 %v8520_v0 }
0x1d43   :  { %6345 = vmatpush3.msra.mxu0 %v7389_v46 }
0x1d44   :  { %6346 = vmatprep.subr.mxu0 %v8520_v0 }
0x1d45   :  { %6347 = vmatpush3.msra.mxu0 %v7396_v47 }
0x1d46   :  { %6371 = vmatprep.subr.mxu0 %v2887_v36 }
0x1dfa   :  { %v2512_v2 = vpop.f32.mrf.mxu0 }
0x1dfb   :  { %v2513_v5 = vadd.f32 %v7426_v55, %v2512_v2 }
0x1dfc   :  { %v6314_v56 = vpop.f32.mrf.mxu0 }
0x1dfd   :  { %2524 = vrot.lane.b32.xlu0 %v2513_v5, %s6951_s1  ;;  %v2516_v58 = vadd.f32 %v2513_v5, %v2438_v7 }
0x1dff   :  { %v5716_v59 = vmul.f32 -1.442695, %v2516_v58 }
0x1e01   :  { %6722 = vpow2.f32 %v5716_v59 }
0x1e0e   :  { %v6723_v45 = vpop.eup %6722 }
0x1e0f   :  { %v2520_v60 = vadd.f32 1.0, %v6723_v45 }
0x1e11   :  { %6724 = vrcp.f32 %v2520_v60  ;;  %v2884_v60 = vld [vmem:[%s8498_s11] sm:$0xff] }
0x1e1e   :  { %v6725_v61 = vpop.eup %6724 }
0x1e1f   :  { %v2534_v11 = vsub.f32 1.0, %v6725_v61  ;;  %v2540_v13 = vmul.f32 %v6725_v61, %v2370_v52  ;;  %v6925_v52 = vld [vmem:[%s8535_s6] ss:$0 sm:$0xff] }
0x1e20   :  { %v1405_v54 = vadd.f32 %v6925_v52, %v7444_v32  ;;  %v2885_v32 = vld [vmem:[%s8498_s11 + $0x8] sm:$0xff] }
0x1e22   :  { %v1483_v2 = vadd.f32 %v1480_v48, %v1405_v54 }
0x1e24   :  { %v5697_v5 = vmul.f32 -1.442695, %v1483_v2  ;;  %v3131_v2 = vld [vmem:[%s8502_s17] sm:$0xff] }
0x1e6f   :  { %v2525_v46 = vpop.permute.xlu0 %2524 }
0x1e70   :  { %v2527_v9 = vmul.f32 %v6725_v61, %v2525_v46  ;;  %v2779_v46 = vpop.f32.mrf.mxu0 }
0x1e72   :  { %2529 = vrot.lane.b32.xlu1 %v2527_v9, %s6951_s1  ;;  %v6339_v9 = vpop.f32.mrf.mxu0 }
0x1ee4   :  { %v2530_v47 = vpop.permute.xlu1 %2529 }
0x1ee5   :  { %v2532_v63 = vadd.f32 %v2530_v47, %v2438_v7 }
0x1ee7   :  { %6726 = vtanh.f32 %v2532_v63 }
0x1ef4   :  { %v6727_v6 = vpop.eup %6726 }
0x1ef5   :  { %2536 = vrot.lane.b32.xlu0 %v6727_v6, %s6952_s28 }
0x1f67   :  { %v2537_v12 = vpop.permute.xlu0 %2536 }
0x1f68   :  { %v2539_v14 = vmul.f32 %v2537_v12, %v2534_v11 }
0x1f6a   :  { %v2541_v15 = vadd.f32 %v2540_v13, %v2539_v14  ;;  %v3128_v14 = vld [vmem:[%s8499_s16 + $0x8] sm:$0xff] }
0x1f6c   :  { %2613 = vrot.lane.b32.xlu1 %v2541_v15, %s6952_s28 }
0x1fde   :  { %v7619_v17 = vpop.permute.xlu1 %2613 }
0x1fdf   :  { %6331 = vmatmul.mubr.msk.f32.vlgmr.msra.gmra.mxu1 %vm177_vm2, %v7619_v17 }
0x209f   :  { %v2683_v18 = vpop.f32.mrf.mxu1 }
0x20a0   :  { %v2684_v21 = vadd.f32 %v7426_v55, %v2683_v18 }
0x20a1   :  { %v6332_v22 = vpop.f32.mrf.mxu1 }
0x20a2   :  { %2695 = vrot.lane.b32.xlu0 %v2684_v21, %s6951_s1  ;;  %v2687_v24 = vadd.f32 %v2684_v21, %v2609_v23 }
0x20a4   :  { %v5719_v26 = vmul.f32 -1.442695, %v2687_v24  ;;  %v2780_v24 = vadd.f32 %v7434_v62, %v2779_v46  ;;  %v7726_v62 = vld [vmem:[%s8500_s10 + $0x10] sm:$0xff] }
0x20a6   :  { %6728 = vpow2.f32 %v5719_v26 }
0x20b3   :  { %v6729_v27 = vpop.eup %6728 }
0x20b4   :  { %v2691_v3 = vadd.f32 1.0, %v6729_v27 }
0x20b6   :  { %6730 = vrcp.f32 %v2691_v3 }
0x20c3   :  { %v6731_v28 = vpop.eup %6730 }
0x20c4   :  { %v2705_v38 = vsub.f32 1.0, %v6731_v28  ;;  %v2711_v41 = vmul.f32 %v6731_v28, %v2541_v15  ;;  %v3127_v15 = vld [vmem:[%s8499_s16] sm:$0xff] }
0x2114   :  { %v2696_v29 = vpop.permute.xlu0 %2695 }
0x2115   :  { %v2698_v30 = vmul.f32 %v6731_v28, %v2696_v29 }
0x2117   :  { %2700 = vrot.lane.b32.xlu1 %v2698_v30, %s6951_s1 }
0x2189   :  { %v2701_v31 = vpop.permute.xlu1 %2700 }
0x218a   :  { %v2703_v35 = vadd.f32 %v2701_v31, %v2609_v23 }
0x218c   :  { %6732 = vtanh.f32 %v2703_v35 }
0x218d   :  { %6734 = vpow2.f32 %v5697_v5  ;;  %v7796_v5 = vld [vmem:[%s8503_s9 + $0x20] sm:$0xff] }
0x2199   :  { %v6733_v37 = vpop.eup %6732 }
0x219a   :  { %2707 = vrot.lane.b32.xlu0 %v6733_v37, %s6952_s28  ;;  %v6735_v56 = vpop.eup %6734  ;;  %v7745_v37 = vld [vmem:[%s8500_s10] sm:$0xff] }
0x219b   :  { %v1487_v7 = vadd.f32 1.0, %v6735_v56  ;;  %v7803_v56 = vld [vmem:[%s8503_s9 + $0x18] sm:$0xff] }
0x219d   :  { %6736 = vrcp.f32 %v1487_v7  ;;  %v7812_v7 = vld [vmem:[%s8503_s9 + $0x10] sm:$0xff] }
0x21aa   :  { %v6737_v59 = vpop.eup %6736 }
0x21ab   :  { %v1501_v18 = vsub.f32 1.0, %v6737_v59 }
0x220c   :  { %v2708_v39 = vpop.permute.xlu0 %2707 }
0x220d   :  { %v2710_v33 = vmul.f32 %v2708_v39, %v2705_v38 }
0x220f   :  { %v7631_v43 = vadd.f32 %v2711_v41, %v2710_v33 }
0x2211   :  { %2784 = vrot.lane.b32.xlu1 %v7631_v43, %s6952_s28 }
0x2215   :  { %1491 = vrot.lane.b32.xlu1 %v1480_v48, %s6951_s1 }
0x2283   :  { %v7644_v58 = vpop.permute.xlu1 %2784 }
0x2284   :  { %6349 = vmatmul.mubr.msk.f32.vlgmr.msra.gmra.mxu0 %vm177_vm2, %v7644_v58 }
0x2285   :  { %6372 = vmatpush3.msra.mxu0 %v2887_v36  ;;  %6379 = vmatprep.mubr.msk.f32.mxu0 %vm177_vm2, %v7169_v34  ;;  %v2888_v36 = vld [vmem:[%s8501_s12] sm:$0xff] }
0x2286   :  { %6373 = vmatprep.subr.mxu0 %v2886_v40 }
0x2287   :  { %6374 = vmatpush3.msra.mxu0 %v2886_v40  ;;  %v1492_v45 = vpop.permute.xlu1 %1491  ;;  %v3376_v40 = vlaneseq }
0x2288   :  { %6375 = vmatprep.subr.mxu0 %v2885_v32  ;;  %v1494_v61 = vmul.f32 %v6737_v59, %v1492_v45 }
0x2289   :  { %6376 = vmatpush3.msra.mxu0 %v2885_v32 }
0x228a   :  { %6377 = vmatprep.subr.mxu0 %v2884_v60  ;;  %1496 = vrot.lane.b32.xlu1 %v1494_v61, %s6951_s1 }
0x228b   :  { %6378 = vmatpush3.msra.mxu0 %v2884_v60 }
0x228c   :  { %6380 = vmatmul.mubr.msk.f32.vlgmr.msra.gmra.mxu0 %vm177_vm2, %v7202_v57  ;;  %6411 = vmatprep.subr.mxu0 %v3130_v8 }
0x228d   :  { %6382 = vmatprep.mubr.msk.f32.mxu0 %vm177_vm2, %v7235_v25  ;;  %6412 = vmatpush3.msra.mxu0 %v3130_v8 }
0x228e   :  { %6413 = vmatprep.subr.mxu0 %v3129_v10 }
0x228f   :  { %6414 = vmatpush3.msra.mxu0 %v3129_v10 }
0x2290   :  { %6383 = vmatmul.mubr.msk.f32.gmra.mxu0 %vm177_vm2, %v7268_v50  ;;  %6415 = vmatprep.subr.mxu0 %v3128_v14 }
0x2291   :  { %6385 = vmatprep.mubr.msk.f32.mxu0 %vm177_vm2, %v7301_v20  ;;  %6416 = vmatpush3.msra.mxu0 %v3128_v14 }
0x2292   :  { %6417 = vmatprep.subr.mxu0 %v3127_v15 }
0x2293   :  { %6418 = vmatpush3.msra.mxu0 %v3127_v15 }
0x2294   :  { %6386 = vmatmul.mubr.msk.f32.gmra.mxu0 %vm177_vm2, %v7356_v44  ;;  %6444 = vmatprep.subr.mxu0 %v8520_v0 }
0x2295   :  { %6388 = vmatprep.mubr.msk.f32.mxu0 %vm177_vm2, %v7452_v1 }
0x22fc   :  { %v1497_v47 = vpop.permute.xlu1 %1496 }
0x22fd   :  { %v1499_v63 = vadd.f32 %v1497_v47, %v1405_v54  ;;  %v3132_v54 = vld [vmem:[%s8502_s17 + $0x8] sm:$0xff] }
0x22ff   :  { %6738 = vtanh.f32 %v1499_v63 }
0x230c   :  { %v6739_v6 = vpop.eup %6738 }
0x230d   :  { %1503 = vrot.lane.b32.xlu1 %v6739_v6, %s6952_s28 }
0x2344   :  { %v2854_v11 = vpop.f32.mrf.mxu0 }
0x2345   :  { %v2855_v12 = vadd.f32 %v7426_v55, %v2854_v11  ;;  %v1507_v55 = vmul.f32 %v6737_v59, %v7442_v4  ;;  %v2889_v4 = vld [vmem:[%s8501_s12 + $0x8] sm:$0xff] }
0x2346   :  { %v6350_v13 = vpop.f32.mrf.mxu0 }
0x2347   :  { %2866 = vrot.lane.b32.xlu0 %v2855_v12, %s6951_s1  ;;  %v2858_v26 = vadd.f32 %v2855_v12, %v2780_v24 }
0x2349   :  { %v5722_v27 = vmul.f32 -1.442695, %v2858_v26 }
0x234b   :  { %6740 = vpow2.f32 %v5722_v27 }
0x2358   :  { %v6741_v3 = vpop.eup %6740 }
0x2359   :  { %v2862_v28 = vadd.f32 1.0, %v6741_v3 }
0x235b   :  { %6742 = vrcp.f32 %v2862_v28 }
0x2368   :  { %v6743_v29 = vpop.eup %6742 }
0x2369   :  { %v2876_v38 = vsub.f32 1.0, %v6743_v29  ;;  %v2882_v41 = vmul.f32 %v6743_v29, %v7631_v43  ;;  %v3133_v43 = vld [vmem:[%s8502_s17 + $0x10] sm:$0xff] }
0x237f   :  { %v1504_v21 = vpop.permute.xlu1 %1503 }
0x2380   :  { %v1506_v22 = vmul.f32 %v1504_v21, %v1501_v18  ;;  %v5739_v18 = vld [vmem:[%s8505_s13] ss:$0 sm:$0xff] }
0x2382   :  { %v1508_v23 = vadd.f32 %v1507_v55, %v1506_v22 }
0x2384   :  { %3003 = vrot.lane.b32.xlu1 %v1508_v23, %s6952_s28 }
0x23b9   :  { %v2867_v30 = vpop.permute.xlu0 %2866 }
0x23ba   :  { %v2869_v31 = vmul.f32 %v6743_v29, %v2867_v30 }
0x23bc   :  { %2871 = vrot.lane.b32.xlu0 %v2869_v31, %s6951_s1 }
0x23f6   :  { %v3004_v35 = vpop.permute.xlu1 %3003 }
0x23f7   :  { %6389 = vmatmul.mubr.msk.f32.gmra.mxu0 %vm177_vm2, %v3004_v35 }
0x23f8   :  { %6419 = vmatprep.mubr.msk.f32.mxu0 %vm177_vm2, %v7169_v34 }
0x23fb   :  { %6420 = vmatmul.mubr.msk.f32.vlgmr.msra.gmra.mxu0 %vm177_vm2, %v7202_v57 }
0x23fc   :  { %6422 = vmatprep.mubr.msk.f32.mxu0 %vm177_vm2, %v7235_v25 }
0x23ff   :  { %6423 = vmatmul.mubr.msk.f32.gmra.mxu0 %vm177_vm2, %v7268_v50  ;;  %v7714_v50 = vld [vmem:[%s8500_s10 + $0x18] sm:$0xff] }
0x2400   :  { %6425 = vmatprep.mubr.msk.f32.mxu0 %vm177_vm2, %v7301_v20  ;;  %v2891_v20 = vld [vmem:[%s8501_s12 + $0x18] sm:$0xff]  ;;  %6445 = vmatpush3.msra.mxu0 %v7714_v50 }
0x2401   :  { %6351 = vmatprep.subr.mxu1 %v2891_v20  ;;  %6446 = vmatprep.subr.mxu0 %v8520_v0 }
0x2402   :  { %6352 = vmatpush3.msra.mxu1 %v2891_v20  ;;  %6447 = vmatpush3.msra.mxu0 %v7726_v62 }
0x2403   :  { %6426 = vmatmul.mubr.msk.f32.gmra.mxu0 %vm177_vm2, %v7356_v44  ;;  %v2890_v44 = vld [vmem:[%s8501_s12 + $0x10] sm:$0xff]  ;;  %6448 = vmatprep.subr.mxu0 %v8520_v0 }
0x2404   :  { %6428 = vmatprep.mubr.msk.f32.mxu0 %vm177_vm2, %v7452_v1  ;;  %v7735_v1 = vld [vmem:[%s8500_s10 + $0x8] sm:$0xff]  ;;  %6353 = vmatprep.subr.mxu1 %v2890_v44 }
0x2405   :  { %6354 = vmatpush3.msra.mxu1 %v2890_v44  ;;  %6449 = vmatpush3.msra.mxu0 %v7735_v1 }
0x2406   :  { %6355 = vmatprep.subr.mxu1 %v2889_v4  ;;  %6450 = vmatprep.subr.mxu0 %v8520_v0 }
0x2407   :  { %6429 = vmatmul.mubr.msk.f32.gmra.mxu0 %vm177_vm2, %v3004_v35  ;;  %6356 = vmatpush3.msra.mxu1 %v2889_v4 }
0x2408   :  { %6452 = vmatprep.mubr.msk.f32.mxu0 %vm6950_vm1, %v8520_v0  ;;  %6357 = vmatprep.subr.mxu1 %v2888_v36 }
0x2409   :  { %6451 = vmatpush3.msra.mxu0 %v7745_v37  ;;  %6358 = vmatpush3.msra.mxu1 %v2888_v36 }
0x240a   :  { %6473 = vmatprep.subr.mxu0 %v8520_v0  ;;  %6391 = vmatprep.subr.mxu1 %v3134_v49 }
0x242e   :  { %v2872_v34 = vpop.permute.xlu0 %2871 }
0x242f   :  { %v2874_v57 = vadd.f32 %v2872_v34, %v2780_v24 }
0x2431   :  { %6744 = vtanh.f32 %v2874_v57 }
0x243e   :  { %v6745_v25 = vpop.eup %6744 }
0x243f   :  { %2878 = vrot.lane.b32.xlu0 %v6745_v25, %s6952_s28 }
0x24b1   :  { %v2879_v39 = vpop.permute.xlu0 %2878 }
0x24b2   :  { %v2881_v33 = vmul.f32 %v2879_v39, %v2876_v38 }
0x24b4   :  { %v7755_v48 = vadd.f32 %v2882_v41, %v2881_v33 }
0x24b6   :  { %2893 = vrot.lane.b32.xlu0 %v7755_v48, %s6952_s28 }
0x2528   :  { %v7759_v52 = vpop.permute.xlu0 %2893 }
0x2529   :  { %6359 = vmatprep.mubr.msk.f32.mxu1 %vm177_vm2, %v7759_v52  ;;  %6453 = vmatmul.mubr.msk.f32.vlgmr.msra.gmra.mxu0 %vm177_vm2, %v7759_v52 }
0x252a   :  { %6360 = vmatmul.mubr.msk.f32.vlgmr.msra.gmra.mxu1 %vm177_vm2, %v7644_v58  ;;  %6481 = vmatprep.mubr.msk.f32.mxu0 %vm6950_vm1, %v8520_v0 }
0x252b   :  { %6362 = vmatprep.mubr.msk.f32.mxu1 %vm177_vm2, %v7619_v17  ;;  %6392 = vmatpush3.msra.mxu1 %v3134_v49 }
0x252c   :  { %6393 = vmatprep.subr.mxu1 %v3133_v43 }
0x252d   :  { %6394 = vmatpush3.msra.mxu1 %v3133_v43 }
0x252e   :  { %6363 = vmatmul.mubr.msk.f32.gmra.mxu1 %vm177_vm2, %v7590_v53  ;;  %6395 = vmatprep.subr.mxu1 %v3132_v54 }
0x252f   :  { %6365 = vmatprep.mubr.msk.f32.mxu1 %vm177_vm2, %v7561_v16  ;;  %6396 = vmatpush3.msra.mxu1 %v3132_v54 }
0x2530   :  { %6397 = vmatprep.subr.mxu1 %v3131_v2 }
0x2531   :  { %6398 = vmatpush3.msra.mxu1 %v3131_v2 }
0x2532   :  { %6366 = vmatmul.mubr.msk.f32.gmra.mxu1 %vm177_vm2, %v7533_v51  ;;  %6431 = vmatprep.subr.mxu1 %v8520_v0 }
0x2533   :  { %6368 = vmatprep.mubr.msk.f32.mxu1 %vm177_vm2, %v7505_v19 }
0x2536   :  { %6369 = vmatmul.mubr.msk.f32.gmra.mxu1 %vm177_vm2, %v7473_v42 }
0x2537   :  { %6399 = vmatprep.mubr.msk.f32.mxu1 %vm177_vm2, %v7759_v52 }
0x253a   :  { %6400 = vmatmul.mubr.msk.f32.vlgmr.msra.gmra.mxu1 %vm177_vm2, %v7644_v58  ;;  %v7830_v58 = vld [vmem:[%s8503_s9] sm:$0xff] }
0x253b   :  { %6402 = vmatprep.mubr.msk.f32.mxu1 %vm177_vm2, %v7619_v17  ;;  %6432 = vmatpush3.msra.mxu1 %v7796_v5  ;;  %v7821_v17 = vld [vmem:[%s8503_s9 + $0x8] sm:$0xff] }
0x253c   :  { %6433 = vmatprep.subr.mxu1 %v8520_v0 }
0x253d   :  { %6434 = vmatpush3.msra.mxu1 %v7803_v56 }
0x253e   :  { %6403 = vmatmul.mubr.msk.f32.gmra.mxu1 %vm177_vm2, %v7590_v53  ;;  %6435 = vmatprep.subr.mxu1 %v8520_v0  ;;  %v7832_v53 = vand.u32 127, %v3376_v40 }
0x253f   :  { %6405 = vmatprep.mubr.msk.f32.mxu1 %vm177_vm2, %v7561_v16  ;;  %6436 = vmatpush3.msra.mxu1 %v7812_v7 }
0x2540   :  { %6437 = vmatprep.subr.mxu1 %v8520_v0  ;;  %vm3378_vm3 = vcmp.eq.s32.totalorder %v7832_v53, 1 }
0x2541   :  { %6438 = vmatpush3.msra.mxu1 %v7821_v17  ;;  %v5756_v16 = vsel %vm3378_vm3, 1.0, %v8520_v0 }
0x2542   :  { %6406 = vmatmul.mubr.msk.f32.gmra.mxu1 %vm177_vm2, %v7533_v51  ;;  %6439 = vmatprep.subr.mxu1 %v8520_v0  ;;  %v6381_v51 = vpop.f32.mrf.mxu0 }
0x2543   :  { %6408 = vmatprep.mubr.msk.f32.mxu1 %vm177_vm2, %v7505_v19  ;;  %6440 = vmatpush3.msra.mxu1 %v7830_v58  ;;  %v7854_v19 = vld [vmem:[%s8504_s15 + $0x8] sm:$0xff] }
0x2544   :  { %6455 = vmatprep.subr.mxu1 %v8520_v0  ;;  %v3073_v32 = vpop.f32.mrf.mxu0 }
0x2546   :  { %6409 = vmatmul.mubr.msk.f32.gmra.mxu1 %vm177_vm2, %v7473_v42  ;;  %v7861_v42 = vld [vmem:[%s8504_s15] sm:$0xff]  ;;  %v6384_v59 = vpop.f32.mrf.mxu0 }
0x2547   :  { %6441 = vmatprep.mubr.msk.f32.mxu1 %vm6950_vm1, %v8520_v0  ;;  %8539 = vst [vmem:[#allocation2_spill] sm:$0xff] %v7861_v42 }
0x2548   :  { %v3083_v45 = vpop.f32.mrf.mxu0 }
0x254a   :  { %6442 = vmatmul.mubr.msk.f32.vlgmr.msra.gmra.mxu1 %vm3381_vm4, %v5756_v16  ;;  %v6387_v60 = vpop.f32.mrf.mxu0 }
0x254b   :  { %6459 = vmatprep.mubr.msk.f32.mxu1 %vm6950_vm1, %v8520_v0  ;;  %6456 = vmatpush3.msra.mxu1 %v7854_v19 }
0x254c   :  { %6457 = vmatprep.subr.mxu1 %v8520_v0  ;;  %v3093_v61 = vpop.f32.mrf.mxu0 }
0x254d   :  { %6458 = vmatpush3.msra.mxu1 %v7861_v42 }
0x254e   :  { %6462 = vmatprep.subr.mxu1 %v8520_v0  ;;  %v6390_v46 = vpop.f32.mrf.mxu0 }
0x2550   :  { %v3103_v9 = vpop.f32.mrf.mxu0 }
0x2552   :  { %v7865_v47 = vpop.f32.mrf.mxu0 }
0x2554   :  { %v7867_v63 = vpop.f32.mrf.mxu0 }
0x2556   :  { %v7869_v6 = vpop.f32.mrf.mxu0 }
0x2558   :  { %v7871_v8 = vpop.f32.mrf.mxu0 }
0x255a   :  { %v7873_v10 = vpop.f32.mrf.mxu0 }
0x255c   :  { %v7875_v11 = vpop.f32.mrf.mxu0 }
0x255e   :  { %v7877_v12 = vpop.f32.mrf.mxu0 }
0x2560   :  { %v7879_v13 = vpop.f32.mrf.mxu0 }
0x25e9   :  { %v3521_v14 = vpop.f32.mrf.mxu0 }
0x25ea   :  { %v6361_v15 = vpop.f32.mrf.mxu1 }
0x25eb   :  { %v3079_v21 = vadd.f32 %v6381_v51, %v6361_v15  ;;  %v6454_v55 = vpop.f32.mrf.mxu0 }
0x25ec   :  { %v2963_v22 = vpop.f32.mrf.mxu1 }
0x25ed   :  { %v7884_v23 = vadd.f32 %v5739_v18, %v3079_v21  ;;  %v3074_v24 = vadd.f32 %v3073_v32, %v2963_v22 }
0x25ee   :  { %v6364_v26 = vpop.f32.mrf.mxu1 }
0x25ef   :  { %v3526_v27 = vadd.f32 %v3521_v14, %v7884_v23  ;;  %v7887_v3 = vadd.f32 %v5739_v18, %v3074_v24  ;;  %v3089_v28 = vadd.f32 %v6384_v59, %v6364_v26 }
0x25f0   :  { %v2973_v29 = vpop.f32.mrf.mxu1 }
0x25f1   :  { %6746 = vtanh.f32 %v3526_v27  ;;  %v3525_v30 = vadd.f32 %v3521_v14, %v7887_v3  ;;  %v7890_v31 = vadd.f32 %v5739_v18, %v3089_v28  ;;  %v3084_v35 = vadd.f32 %v3083_v45, %v2973_v29  ;;  %v7914_v45 = vld [vmem:[%s8506_s14] ss:$0 sm:$0xff] }
0x25f2   :  { %v6367_v34 = vpop.f32.mrf.mxu1 }
0x25f3   :  { %6748 = vtanh.f32 %v3525_v30  ;;  %v7892_v57 = vadd.f32 %v5739_v18, %v3084_v35  ;;  %v3099_v25 = vadd.f32 %v6387_v60, %v6367_v34  ;;  %v3528_v20 = vadd.f32 %v3521_v14, %v7890_v31 }
0x25f4   :  { %v2983_v44 = vpop.f32.mrf.mxu1 }
0x25f5   :  { %v3527_v4 = vadd.f32 %v3521_v14, %v7892_v57  ;;  %v7896_v36 = vadd.f32 %v5739_v18, %v3099_v25  ;;  %v3094_v38 = vadd.f32 %v3093_v61, %v2983_v44 }
0x25f6   :  { %v6370_v39 = vpop.f32.mrf.mxu1 }
0x25f7   :  { %6750 = vtanh.f32 %v3527_v4  ;;  %v7898_v41 = vadd.f32 %v5739_v18, %v3094_v38  ;;  %v3109_v33 = vadd.f32 %v6390_v46, %v6370_v39  ;;  %v3530_v49 = vadd.f32 %v3521_v14, %v7896_v36  ;;  %v7940_v4 = vld [vmem:[%s8507_s18 + $0x18] sm:$0xff] }
0x25f8   :  { %6752 = vtanh.f32 %v3528_v20  ;;  %v2993_v43 = vpop.f32.mrf.mxu1 }
0x25f9   :  { %v3529_v54 = vadd.f32 %v3521_v14, %v7898_v41  ;;  %v7902_v2 = vadd.f32 %v5739_v18, %v3109_v33  ;;  %v3104_v40 = vadd.f32 %v3103_v9, %v2993_v43 }
0x25fa   :  { %v7904_v16 = vpop.f32.mrf.mxu1 }
0x25fb   :  { %6754 = vtanh.f32 %v3529_v54  ;;  %v7906_v51 = vadd.f32 %v5739_v18, %v3104_v40  ;;  %v3532_v32 = vadd.f32 %v3521_v14, %v7902_v2 }
0x25fc   :  { %6756 = vtanh.f32 %v3530_v49  ;;  %v7909_v59 = vpop.f32.mrf.mxu1  ;;  %v7948_v49 = vld [vmem:[%s8507_s18 + $0x10] sm:$0xff] }
0x25fd   :  { %v3531_v60 = vadd.f32 %v3521_v14, %v7906_v51 }
0x25fe   :  { %v6747_v61 = vpop.eup %6746  ;;  %v7917_v46 = vpop.f32.mrf.mxu1 }
0x25ff   :  { %6758 = vtanh.f32 %v3531_v60  ;;  %v3548_v9 = vmul.f32 %v6747_v61, %v7914_v45  ;;  %v7957_v60 = vld [vmem:[%s8507_s18 + $0x8] sm:$0xff] }
0x2600   :  { %v6749_v15 = vpop.eup %6748  ;;  %6760 = vtanh.f32 %v3532_v32  ;;  %v7920_v18 = vpop.f32.mrf.mxu1 }
0x2601   :  { %v3558_v21 = vsel %vm97_vm0, %v3548_v9, 0.0  ;;  %v3547_v55 = vmul.f32 %v6749_v15, %v7914_v45  ;;  %v7968_v15 = vld [vmem:[%s8507_s18] sm:$0xff] }
0x2602   :  { %v7924_v22 = vpop.f32.mrf.mxu1  ;;  %3559 = vadd.xlane.f32.xlu1 %v3558_v21 }
0x2603   :  { %v3555_v24 = vsel %vm97_vm0, %v3547_v55, 0.0 }
0x2604   :  { %v6751_v14 = vpop.eup %6750  ;;  %v7927_v26 = vpop.f32.mrf.mxu1  ;;  %3556 = vadd.xlane.f32.xlu0 %v3555_v24 }
0x2605   :  { %v6753_v27 = vpop.eup %6752  ;;  %v3549_v28 = vmul.f32 %v6751_v14, %v7914_v45 }
0x2606   :  { %v7930_v29 = vpop.f32.mrf.mxu1  ;;  %v3550_v25 = vmul.f32 %v6753_v27, %v7914_v45 }
0x2607   :  { %v3561_v30 = vsel %vm97_vm0, %v3549_v28, 0.0 }
0x2608   :  { %v6755_v35 = vpop.eup %6754  ;;  %v3231_v34 = vpop.f32.mrf.mxu1  ;;  %3562 = vadd.xlane.f32.xlu0 %v3561_v30 }
0x2609   :  { %v6757_v20 = vpop.eup %6756  ;;  %v7935_v44 = vadd.f32 %v7879_v13, %v3231_v34  ;;  %v3551_v38 = vmul.f32 %v6755_v35, %v7914_v45  ;;  %v3564_v13 = vsel %vm97_vm0, %v3550_v25, 0.0 }
0x260a   :  { %v3451_v39 = vpop.f32.mrf.mxu1  ;;  %v3552_v54 = vmul.f32 %v6757_v20, %v7914_v45 }
0x260b   :  { %6460 = vmatmul.mubr.msk.f32.vlgmr.msra.gmra.mxu1 %vm97_vm0, %v3451_v39  ;;  %v3567_v33 = vsel %vm97_vm0, %v3551_v38, 0.0 }
0x260c   :  { %v6759_v43 = vpop.eup %6758  ;;  %6463 = vmatpush3.msra.mxu1 %v7940_v4  ;;  %3568 = vadd.xlane.f32.xlu1 %v3567_v33  ;;  %v6443_v40 = vpop.f32.mrf.mxu1  ;;  %v3570_v21 = vsel %vm97_vm0, %v3552_v54, 0.0 }
0x260d   :  { %v6761_v32 = vpop.eup %6760  ;;  %6464 = vmatprep.subr.mxu1 %v8520_v0  ;;  %3565 = vadd.xlane.f32.xlu0 %v3564_v13  ;;  %v3553_v61 = vmul.f32 %v6759_v43, %v7914_v45 }
0x260e   :  { %6465 = vmatpush3.msra.mxu1 %v7948_v49  ;;  %6470 = vmatprep.mubr.msk.f32.mxu1 %vm6950_vm1, %v8520_v0  ;;  %v3554_v55 = vmul.f32 %v6761_v32, %v7914_v45 }
0x260f   :  { %6466 = vmatprep.subr.mxu1 %v8520_v0  ;;  %v3573_v9 = vsel %vm97_vm0, %v3553_v61, 0.0 }
0x2610   :  { %6467 = vmatpush3.msra.mxu1 %v7957_v60  ;;  %3574 = vadd.xlane.f32.xlu1 %v3573_v9  ;;  %v3576_v24 = vsel %vm97_vm0, %v3554_v55, 0.0 }
0x2611   :  { %6468 = vmatprep.subr.mxu1 %v8520_v0  ;;  %3571 = vadd.xlane.f32.xlu0 %v3570_v21 }
0x2612   :  { %6469 = vmatpush3.msra.mxu1 %v7968_v15 }
0x2613   :  { %6471 = vmatmul.mubr.msk.f32.vlgmr.msra.gmra.mxu1 %vm177_vm2, %v7759_v52  ;;  %6484 = vmatprep.subr.mxu1 %v8520_v0  ;;  %v6953_v52 = vmov 0  }
0x2614   :  { %6485 = vmatpush3.msra.mxu1 %v7796_v5  ;;  %6494 = vmatprep.mubr.msk.f32.mxu1 %vm6950_vm1, %v8520_v0 }
0x2615   :  { %3577 = vadd.xlane.f32.xlu0 %v3576_v24  ;;  %6486 = vmatprep.subr.mxu1 %v8520_v0 }
0x2616   :  { %6487 = vmatpush3.msra.mxu1 %v7803_v56  ;;  %6649 = vset.pattern.permute.xlu0 %v6953_v52 }
0x2617   :  { %6488 = vmatprep.subr.mxu1 %v8520_v0  ;;  %6648 = vset.pattern.permute.xlu1 %v6953_v52 }
0x2618   :  { %6489 = vmatpush3.msra.mxu1 %v7812_v7 }
0x2619   :  { %6490 = vmatprep.subr.mxu1 %v8520_v0 }
0x261a   :  { %6491 = vmatpush3.msra.mxu1 %v7821_v17 }
0x261b   :  { %6492 = vmatprep.subr.mxu1 %v8520_v0 }
0x261c   :  { %6493 = vmatpush3.msra.mxu1 %v7830_v58 }
0x261d   :  { %6508 = vmatprep.subr.mxu1 %v8520_v0 }
0x268b   :  { %v3560_v28 = vpop.xlane.xlu1 %3559 }
0x268d   :  { %v3557_v14 = vpop.xlane.xlu0 %3556 }
0x268e   :  { %v3579_v30 = vmax.f32 %v3557_v14, %v3560_v28 }
0x2691   :  { %v3563_v27 = vpop.xlane.xlu0 %3562 }
0x2692   :  { %v3580_v35 = vmax.f32 %v3579_v30, %v3563_v27 }
0x2695   :  { %v3569_v34 = vpop.xlane.xlu1 %3568 }
0x2696   :  { %v3566_v25 = vpop.xlane.xlu0 %3565 }
0x2697   :  { %v3581_v20 = vmax.f32 %v3580_v35, %v3566_v25 }
0x2699   :  { %v3582_v38 = vmax.f32 %v3581_v20, %v3569_v34  ;;  %v3575_v43 = vpop.xlane.xlu1 %3574 }
0x269a   :  { %v3572_v39 = vpop.xlane.xlu0 %3571 }
0x269b   :  { %v3583_v33 = vmax.f32 %v3582_v38, %v3572_v39 }
0x269d   :  { %v3584_v13 = vmax.f32 %v3583_v33, %v3575_v43 }
0x269e   :  { %v3578_v54 = vpop.xlane.xlu0 %3577 }
0x269f   :  { %v3585_v40 = vmax.f32 %v3584_v13, %v3578_v54 }
0x26a1   :  { %v3586_v32 = vsub.f32 %v3557_v14, %v3585_v40  ;;  %v3587_v61 = vsub.f32 %v3560_v28, %v3585_v40  ;;  %v3588_v9 = vsub.f32 %v3563_v27, %v3585_v40  ;;  %v3589_v21 = vsub.f32 %v3566_v25, %v3585_v40 }
0x26a2   :  { %v3590_v52 = vsub.f32 %v3569_v34, %v3585_v40  ;;  %v3591_v30 = vsub.f32 %v3572_v39, %v3585_v40  ;;  %v3592_v35 = vsub.f32 %v3575_v43, %v3585_v40  ;;  %v3593_v38 = vsub.f32 %v3578_v54, %v3585_v40 }
0x26a3   :  { %v3594_v55 = vmul.f32 1.442695, %v3586_v32  ;;  %v3596_v24 = vmul.f32 1.442695, %v3587_v61  ;;  %v3598_v0 = vmul.f32 1.442695, %v3588_v9 }
0x26a4   :  { %v3600_v42 = vmul.f32 1.442695, %v3589_v21  ;;  %v3602_v20 = vmul.f32 1.442695, %v3590_v52  ;;  %v3604_v33 = vmul.f32 1.442695, %v3591_v30 }
0x26a5   :  { %6762 = vpow2.f32 %v3594_v55  ;;  %v3606_v13 = vmul.f32 1.442695, %v3592_v35  ;;  %v3608_v14 = vmul.f32 1.442695, %v3593_v38 }
0x26a6   :  { %6764 = vpow2.f32 %v3596_v24 }
0x26a7   :  { %6766 = vpow2.f32 %v3598_v0 }
0x26a8   :  { %6768 = vpow2.f32 %v3600_v42 }
0x26a9   :  { %6770 = vpow2.f32 %v3602_v20 }
0x26aa   :  { %6772 = vpow2.f32 %v3604_v33 }
0x26ab   :  { %6774 = vpow2.f32 %v3606_v13 }
0x26ac   :  { %6776 = vpow2.f32 %v3608_v14 }
0x26b2   :  { %v6763_v27 = vpop.eup %6762 }
0x26b3   :  { %v6765_v28 = vpop.eup %6764 }
0x26b4   :  { %v3610_v34 = vadd.f32 %v6765_v28, %v6763_v27  ;;  %v6767_v25 = vpop.eup %6766 }
0x26b5   :  { %v6769_v39 = vpop.eup %6768 }
0x26b6   :  { %v3611_v32 = vadd.f32 %v6767_v25, %v3610_v34  ;;  %v6771_v9 = vpop.eup %6770 }
0x26b7   :  { %v6773_v0 = vpop.eup %6772 }
0x26b8   :  { %v3612_v61 = vadd.f32 %v6769_v39, %v3611_v32  ;;  %v6775_v54 = vpop.eup %6774 }
0x26b9   :  { %v6777_v40 = vpop.eup %6776 }
0x26ba   :  { %v3613_v43 = vadd.f32 %v6771_v9, %v3612_v61 }
0x26bc   :  { %v3614_v21 = vadd.f32 %v6773_v0, %v3613_v43 }
0x26be   :  { %v3615_v42 = vadd.f32 %v6775_v54, %v3614_v21  ;;  %v3317_v21 = vadd.f32 %v7871_v8, %v7920_v18  ;;  %v3332_v18 = vadd.f32 %v7873_v10, %v7924_v22 }
0x26c0   :  { %v3616_v55 = vadd.f32 %v6777_v40, %v3615_v42 }
0x26c2   :  { %6778 = vrcp.f32 %v3616_v55 }
0x26cb   :  { %v7991_v24 = vpop.f32.mrf.mxu1 }
0x26cd   :  { %v6461_v52 = vpop.f32.mrf.mxu1 }
0x26ce   :  { %v3322_v52 = vadd.f32 %v7869_v6, %v7917_v46 }
0x26cf   :  { %v6779_v30 = vpop.eup %6778 }
0x26d0   :  { %v3619_v35 = vmul.f32 %v6779_v30, %v6765_v28  ;;  %v3618_v20 = vmul.f32 %v6779_v30, %v6763_v27  ;;  %v3620_v33 = vmul.f32 %v6779_v30, %v6767_v25  ;;  %v3621_v14 = vmul.f32 %v6779_v30, %v6769_v39  ;;  %v7996_v28 = vld [vmem:[%s8508_s20] ss:$0 sm:$0xff] }
0x26d1   :  { %v3622_v34 = vmul.f32 %v6779_v30, %v6771_v9  ;;  %v3623_v32 = vmul.f32 %v6779_v30, %v6773_v0  ;;  %v3624_v61 = vmul.f32 %v6779_v30, %v6775_v54  ;;  %v3625_v43 = vmul.f32 %v6779_v30, %v6777_v40 }
0x26d2   :  { %3633 = vperm.xlu0 %6649, %v3619_v35   ;;  %3628 = vperm.xlu1 %6648, %v3618_v20   ;;  %v3312_v9 = vadd.f32 %v7865_v47, %v7904_v16  ;;  %v3307_v0 = vadd.f32 %v7867_v63, %v7909_v59  ;;  %v8012_v30 = vmul.f32 0.125, %v3317_v21  ;;  %v3327_v47 = vadd.f32 %v7875_v11, %v7927_v26 }
0x26d3   :  { %v3833_v38 = vpop.f32.mrf.mxu1  ;;  %v8018_v8 = vmul.f32 0.125, %v3322_v52 }
0x26d4   :  { %v3834_v27 = vadd.f32 %v7996_v28, %v3833_v38  ;;  %v8006_v40 = vmul.f32 0.125, %v3312_v9  ;;  %v8008_v55 = vmul.f32 0.125, %v3307_v0  ;;  %v8023_v20 = vmul.f32 0.125, %v3327_v47 }
0x26d5   :  { %v6472_v13 = vpop.f32.mrf.mxu1 }
0x26d6   :  { %3638 = vperm.xlu1 %6648, %v3620_v33   ;;  %v8026_v33 = vmul.f32 0.125, %v3332_v18  ;;  %v3342_v13 = vadd.f32 %v7877_v12, %v7930_v29  ;;  %v8042_v12 = vld [vmem:[%s8509_s19] ss:$0 sm:$0xff] }
0x26da   :  { %3643 = vperm.xlu1 %6648, %v3621_v14   ;;  %v8032_v14 = vmul.f32 0.125, %v7935_v44 }
0x26de   :  { %3648 = vperm.xlu1 %6648, %v3622_v34  }
0x26e2   :  { %3653 = vperm.xlu1 %6648, %v3623_v32  }
0x26e6   :  { %3658 = vperm.xlu1 %6648, %v3624_v61  }
0x26ea   :  { %3663 = vperm.xlu1 %6648, %v3625_v43   ;;  %v8036_v43 = vmul.f32 0.125, %v3342_v13 }
0x26ee   :  { %3845 = vrot.lane.b32.xlu1 %v3834_v27, %s6951_s1 }
0x274d   :  { %v3629_v25 = vpop.permute.xlu1 %3628  ;;  %v3634_v54 = vpop.permute.xlu0 %3633 }
0x274e   :  { %v3667_v16 = vmul.f32 %v3634_v54, %v8006_v40  ;;  %v3666_v63 = vmul.f32 %v3629_v25, %v8008_v55 }
0x2750   :  { %v3674_v6 = vadd.f32 %v3667_v16, %v3666_v63 }
0x2751   :  { %v3639_v39 = vpop.permute.xlu1 %3638 }
0x2752   :  { %v3668_v35 = vmul.f32 %v3639_v39, %v8012_v30 }
0x2754   :  { %v3675_v11 = vadd.f32 %v3674_v6, %v3668_v35  ;;  %v8540_v6 = vmov 0.0  }
0x2755   :  { %v3644_v42 = vpop.permute.xlu1 %3643 }
0x2756   :  { %v3669_v46 = vmul.f32 %v3644_v42, %v8018_v8 }
0x2758   :  { %v3676_v10 = vadd.f32 %v3675_v11, %v3669_v46  ;;  %v8062_v46 = vld [vmem:[%s8510_s21 + $0x8] sm:$0xff] }
0x2759   :  { %v3649_v59 = vpop.permute.xlu1 %3648 }
0x275a   :  { %v3670_v26 = vmul.f32 %v3649_v59, %v8023_v20 }
0x275c   :  { %v3677_v32 = vadd.f32 %v3676_v10, %v3670_v26 }
0x275d   :  { %v3654_v38 = vpop.permute.xlu1 %3653 }
0x275e   :  { %v3671_v22 = vmul.f32 %v3654_v38, %v8026_v33  ;;  %v8069_v38 = vld [vmem:[%s8510_s21] sm:$0xff] }
0x2760   :  { %v3678_v25 = vadd.f32 %v3677_v32, %v3671_v22 }
0x2761   :  { %v3659_v34 = vpop.permute.xlu1 %3658 }
0x2762   :  { %v3672_v61 = vmul.f32 %v3659_v34, %v8032_v14 }
0x2764   :  { %v3679_v9 = vadd.f32 %v3678_v25, %v3672_v61 }
0x2765   :  { %v3664_v39 = vpop.permute.xlu1 %3663 }
0x2766   :  { %v3673_v0 = vmul.f32 %v3664_v39, %v8036_v43 }
0x2768   :  { %v3680_v21 = vadd.f32 %v3679_v9, %v3673_v0 }
0x2769   :  { %v3846_v63 = vpop.permute.xlu1 %3845 }
0x276a   :  { %v3751_v29 = vadd.f32 %v7991_v24, %v3680_v21  ;;  %v8050_v24 = vld [vmem:[%s8510_s21 + $0x18] sm:$0xff] }
0x276b   :  { %6474 = vmatpush3.msra.mxu0 %v8050_v24 }
0x276c   :  { %v3760_v44 = vadd.f32 %v8042_v12, %v3751_v29  ;;  %6475 = vmatprep.subr.mxu0 %v8540_v6 }
0x276e   :  { %v3837_v54 = vadd.f32 %v3834_v27, %v3760_v44  ;;  %v8055_v27 = vld [vmem:[%s8510_s21 + $0x10] sm:$0xff] }
0x276f   :  { %6476 = vmatpush3.msra.mxu0 %v8055_v27 }
0x2770   :  { %v5764_v42 = vmul.f32 -1.442695, %v3837_v54  ;;  %6477 = vmatprep.subr.mxu0 %v8540_v6 }
0x2771   :  { %6478 = vmatpush3.msra.mxu0 %v8062_v46 }
0x2772   :  { %6780 = vpow2.f32 %v5764_v42  ;;  %6479 = vmatprep.subr.mxu0 %v8540_v6 }
0x2773   :  { %6480 = vmatpush3.msra.mxu0 %v8069_v38 }
0x2774   :  { %6497 = vmatprep.subr.mxu0 %v8540_v6 }
0x277f   :  { %v6781_v52 = vpop.eup %6780 }
0x2780   :  { %v3841_v47 = vadd.f32 1.0, %v6781_v52 }
0x2782   :  { %6782 = vrcp.f32 %v3841_v47 }
0x278f   :  { %v6783_v16 = vpop.eup %6782 }
0x2790   :  { %v3848_v59 = vmul.f32 %v6783_v16, %v3846_v63  ;;  %v3855_v26 = vsub.f32 1.0, %v6783_v16  ;;  %v3861_v10 = vmul.f32 %v6783_v16, %v7755_v48 }
0x2792   :  { %3850 = vrot.lane.b32.xlu1 %v3848_v59, %s6951_s1 }
0x2804   :  { %v3851_v18 = vpop.permute.xlu1 %3850 }
0x2805   :  { %v3853_v35 = vadd.f32 %v3851_v18, %v3760_v44 }
0x2807   :  { %6784 = vtanh.f32 %v3853_v35 }
0x2814   :  { %v6785_v11 = vpop.eup %6784 }
0x2815   :  { %3857 = vrot.lane.b32.xlu0 %v6785_v11, %s6952_s28 }
0x2887   :  { %v3858_v13 = vpop.permute.xlu0 %3857 }
0x2888   :  { %v3860_v22 = vmul.f32 %v3858_v13, %v3855_v26 }
0x288a   :  { %v8077_v34 = vadd.f32 %v3861_v10, %v3860_v22 }
0x288c   :  { %3870 = vrot.lane.b32.xlu1 %v8077_v34, %s6952_s28 }
0x28fe   :  { %v3871_v32 = vpop.permute.xlu1 %3870 }
0x28ff   :  { %6482 = vmatmul.mubr.msk.f32.vlgmr.msra.gmra.mxu0 %vm177_vm2, %v3871_v32 }
0x2900   :  { %6498 = vmatpush3.msra.mxu0 %v7714_v50  ;;  %6505 = vmatprep.mubr.msk.f32.mxu0 %vm6950_vm1, %v8540_v6  ;;  %v8119_v50 = vld [vmem:[%s8511_s22] ss:$0 sm:$0xff] }
0x2901   :  { %6499 = vmatprep.subr.mxu0 %v8540_v6 }
0x2902   :  { %6500 = vmatpush3.msra.mxu0 %v7726_v62 }
0x2903   :  { %6501 = vmatprep.subr.mxu0 %v8540_v6 }
0x2904   :  { %6502 = vmatpush3.msra.mxu0 %v7735_v1 }
0x2905   :  { %6503 = vmatprep.subr.mxu0 %v8540_v6 }
0x2906   :  { %6504 = vmatpush3.msra.mxu0 %v7745_v37 }
0x2907   :  { %6506 = vmatmul.mubr.msk.f32.vlgmr.msra.gmra.mxu0 %vm177_vm2, %v3871_v32  ;;  %6515 = vmatprep.subr.mxu0 %v8540_v6 }
0x2908   :  { %6516 = vmatpush3.msra.mxu0 %v7940_v4  ;;  %6523 = vmatprep.mubr.msk.f32.mxu0 %vm6950_vm1, %v8540_v6 }
0x2909   :  { %6517 = vmatprep.subr.mxu0 %v8540_v6 }
0x290a   :  { %6518 = vmatpush3.msra.mxu0 %v7948_v49 }
0x290b   :  { %6519 = vmatprep.subr.mxu0 %v8540_v6 }
0x290c   :  { %6520 = vmatpush3.msra.mxu0 %v7957_v60 }
0x290d   :  { %6521 = vmatprep.subr.mxu0 %v8540_v6 }
0x290e   :  { %6522 = vmatpush3.msra.mxu0 %v7968_v15 }
0x290f   :  { %6524 = vmatmul.mubr.msk.f32.vlgmr.msra.gmra.mxu0 %vm177_vm2, %v3871_v32  ;;  %6537 = vmatprep.subr.mxu0 %v8540_v6 }
0x2910   :  { %6538 = vmatpush3.msra.mxu0 %v7796_v5  ;;  %6547 = vmatprep.mubr.msk.f32.mxu0 %vm6950_vm1, %v8540_v6 }
0x2911   :  { %6539 = vmatprep.subr.mxu0 %v8540_v6 }
0x2912   :  { %6540 = vmatpush3.msra.mxu0 %v7803_v56 }
0x2913   :  { %6541 = vmatprep.subr.mxu0 %v8540_v6 }
0x2914   :  { %6542 = vmatpush3.msra.mxu0 %v7812_v7 }
0x2915   :  { %6543 = vmatprep.subr.mxu0 %v8540_v6 }
0x2916   :  { %6544 = vmatpush3.msra.mxu0 %v7821_v17 }
0x2917   :  { %6545 = vmatprep.subr.mxu0 %v8540_v6 }
0x2918   :  { %6546 = vmatpush3.msra.mxu0 %v7830_v58 }
0x2919   :  { %6561 = vmatprep.subr.mxu0 %v8540_v6 }
0x29bf   :  { %v3940_v62 = vpop.f32.mrf.mxu0 }
0x29c0   :  { %v8122_v1 = vadd.f32 %v8119_v50, %v3940_v62 }
0x29c1   :  { %v6483_v37 = vpop.f32.mrf.mxu0 }
0x29c2   :  { %3944 = vmax.xlane.f32.xlu0 %v8122_v1 }
0x29c7   :  { %v4113_v48 = vpop.f32.mrf.mxu0 }
0x29c8   :  { %v4118_v17 = vadd.f32 %v4113_v48, %v7884_v23  ;;  %v4120_v58 = vadd.f32 %v4113_v48, %v7890_v31  ;;  %v4122_v61 = vadd.f32 %v4113_v48, %v7896_v36  ;;  %v4124_v25 = vadd.f32 %v4113_v48, %v7902_v2 }
0x29c9   :  { %v6507_v5 = vpop.f32.mrf.mxu0  ;;  %v4117_v26 = vadd.f32 %v4113_v48, %v7887_v3  ;;  %v4119_v13 = vadd.f32 %v4113_v48, %v7892_v57  ;;  %v4121_v10 = vadd.f32 %v4113_v48, %v7898_v41  ;;  %v4123_v22 = vadd.f32 %v4113_v48, %v7906_v51 }
0x29ca   :  { %6786 = vtanh.f32 %v4118_v17 }
0x29cb   :  { %6788 = vtanh.f32 %v4120_v58 }
0x29cc   :  { %6790 = vtanh.f32 %v4122_v61 }
0x29cd   :  { %6792 = vtanh.f32 %v4124_v25 }
0x29ce   :  { %6794 = vtanh.f32 %v4117_v26 }
0x29cf   :  { %v8125_v56 = vpop.f32.mrf.mxu0  ;;  %6796 = vtanh.f32 %v4119_v13 }
0x29d0   :  { %6798 = vtanh.f32 %v4121_v10  ;;  %v8541_v10 = vld [vmem:[#allocation2_spill] sm:$0xff] }
0x29d1   :  { %v6525_v7 = vpop.f32.mrf.mxu0  ;;  %6800 = vtanh.f32 %v4123_v22 }
0x29d7   :  { %v6787_v0 = vpop.eup %6786 }
0x29d8   :  { %v4134_v44 = vmul.f32 %v6787_v0, %v7914_v45  ;;  %v6789_v54 = vpop.eup %6788 }
0x29d9   :  { %v4136_v52 = vmul.f32 %v6789_v54, %v7914_v45  ;;  %v6791_v47 = vpop.eup %6790 }
0x29da   :  { %v4144_v42 = vsel %vm97_vm0, %v4134_v44, 0.0  ;;  %v4138_v63 = vmul.f32 %v6791_v47, %v7914_v45  ;;  %v6793_v59 = vpop.eup %6792 }
0x29db   :  { %v4150_v16 = vsel %vm97_vm0, %v4136_v52, 0.0  ;;  %v4140_v35 = vmul.f32 %v6793_v59, %v7914_v45  ;;  %v6795_v62 = vpop.eup %6794 }
0x29dc   :  { %v4156_v18 = vsel %vm97_vm0, %v4138_v63, 0.0  ;;  %v4133_v17 = vmul.f32 %v6795_v62, %v7914_v45  ;;  %v6797_v58 = vpop.eup %6796 }
0x29dd   :  { %v4162_v11 = vsel %vm97_vm0, %v4140_v35, 0.0  ;;  %v4135_v25 = vmul.f32 %v6797_v58, %v7914_v45  ;;  %v6799_v0 = vpop.eup %6798 }
0x29de   :  { %v4141_v61 = vsel %vm97_vm0, %v4133_v17, 0.0  ;;  %v4137_v48 = vmul.f32 %v6799_v0, %v7914_v45 }
0x29e0   :  { %v4153_v44 = vsel %vm97_vm0, %v4137_v48, 0.0 }
0x2a4b   :  { %v8131_v39 = vpop.xlane.xlu0 %3944 }
0x2a4c   :  { %vm3955_vm5 = vcmp.eq.f32.partialorder %v8122_v1, %v8131_v39 }
0x2a4d   :  { %v3956_v9 = vsel %vm3955_vm5, %v7832_v53, 128 }
0x2a4e   :  { %v3958_v21 = vshra.s32 %v3956_v9, 16  ;;  %v3957_v32 = vand.u32 65535, %v3956_v9  ;;  %v6801_v9 = vpop.eup %6800 }
0x2a50   :  { %v3960_v29 = vcvt.s32.f32 %v3958_v21  ;;  %v3959_v5 = vcvt.s32.f32 %v3957_v32  ;;  %v4147_v21 = vsel %vm97_vm0, %v4135_v25, 0.0 }
0x2a52   :  { %3961 = vmin.xlane.f32.xlu1 %v3960_v29 }
0x2a56   :  { %4145 = vadd.xlane.f32.xlu1 %v4144_v42 }
0x2a5a   :  { %4151 = vadd.xlane.f32.xlu1 %v4150_v16 }
0x2a5e   :  { %4157 = vadd.xlane.f32.xlu1 %v4156_v18 }
0x2a62   :  { %4163 = vadd.xlane.f32.xlu1 %v4162_v11 }
0x2adb   :  { %v3962_v37 = vpop.xlane.xlu1 %3961 }
0x2adc   :  { %vm3963_vm6 = vcmp.eq.f32.partialorder %v3960_v29, %v3962_v37  ;;  %v4139_v29 = vmul.f32 %v6801_v9, %v7914_v45  ;;  %v3968_v42 = vcvt.f32.s32 %v3962_v37 }
0x2add   :  { %v3964_v7 = vsel %vm3963_vm6, %v3959_v5, inf }
0x2ade   :  { %3965 = vmin.xlane.f32.xlu0 %v3964_v7  ;;  %v4159_v54 = vsel %vm97_vm0, %v4139_v29, 0.0  ;;  %v3969_v16 = vshll.u32 %v3968_v42, 16 }
0x2adf   :  { %v4146_v52 = vpop.xlane.xlu1 %4145 }
0x2ae2   :  { %4142 = vadd.xlane.f32.xlu0 %v4141_v61 }
0x2ae3   :  { %v4152_v35 = vpop.xlane.xlu1 %4151 }
0x2ae6   :  { %4148 = vadd.xlane.f32.xlu0 %v4147_v21 }
0x2ae7   :  { %v4158_v32 = vpop.xlane.xlu1 %4157 }
0x2aea   :  { %4154 = vadd.xlane.f32.xlu0 %v4153_v44 }
0x2aeb   :  { %v4164_v58 = vpop.xlane.xlu1 %4163 }
0x2aee   :  { %4160 = vadd.xlane.f32.xlu0 %v4159_v54 }
0x2b67   :  { %v3966_v47 = vpop.xlane.xlu0 %3965 }
0x2b68   :  { %v3967_v63 = vcvt.f32.s32 %v3966_v47 }
0x2b6a   :  { %v3970_v59 = vadd.s32 %v3969_v16, %v3967_v63 }
0x2b6b   :  { %v4143_v18 = vpop.xlane.xlu0 %4142 }
0x2b6c   :  { %vm3971_vm7 = vcmp.eq.s32.totalorder %v7832_v53, %v3970_v59  ;;  %v4165_v26 = vmax.f32 %v4143_v18, %v4146_v52 }
0x2b6d   :  { %v5767_v11 = vsel %vm3971_vm7, 1.0, %v8540_v6 }
0x2b6e   :  { %6495 = vmatmul.mubr.msk.f32.vlgmr.msra.gmra.mxu1 %vm3381_vm4, %v5767_v11 }
0x2b6f   :  { %v4149_v45 = vpop.xlane.xlu0 %4148  ;;  %6509 = vmatpush3.msra.mxu1 %v7854_v19  ;;  %6512 = vmatprep.mubr.msk.f32.mxu1 %vm6950_vm1, %v8540_v6 }
0x2b70   :  { %v4166_v13 = vmax.f32 %v4165_v26, %v4149_v45  ;;  %6510 = vmatprep.subr.mxu1 %v8540_v6 }
0x2b71   :  { %6511 = vmatpush3.msra.mxu1 %v8541_v10 }
0x2b72   :  { %v4167_v22 = vmax.f32 %v4166_v13, %v4152_v35  ;;  %6526 = vmatprep.subr.mxu1 %v8540_v6 }
0x2b73   :  { %v4155_v62 = vpop.xlane.xlu0 %4154 }
0x2b74   :  { %v4168_v37 = vmax.f32 %v4167_v22, %v4155_v62 }
0x2b76   :  { %v4169_v5 = vmax.f32 %v4168_v37, %v4158_v32 }
0x2b77   :  { %v4161_v7 = vpop.xlane.xlu0 %4160 }
0x2b78   :  { %v4170_v17 = vmax.f32 %v4169_v5, %v4161_v7 }
0x2b7a   :  { %v4171_v61 = vmax.f32 %v4170_v17, %v4164_v58 }
0x2b7c   :  { %v4172_v19 = vsub.f32 %v4143_v18, %v4171_v61  ;;  %v4173_v25 = vsub.f32 %v4146_v52, %v4171_v61  ;;  %v4174_v0 = vsub.f32 %v4149_v45, %v4171_v61  ;;  %v4175_v21 = vsub.f32 %v4152_v35, %v4171_v61 }
0x2b7d   :  { %v4176_v44 = vsub.f32 %v4155_v62, %v4171_v61  ;;  %v4177_v54 = vsub.f32 %v4158_v32, %v4171_v61  ;;  %v4178_v47 = vsub.f32 %v4161_v7, %v4171_v61  ;;  %v4179_v63 = vsub.f32 %v4164_v58, %v4171_v61 }
0x2b7e   :  { %v4180_v48 = vmul.f32 1.442695, %v4172_v19  ;;  %v4182_v9 = vmul.f32 1.442695, %v4173_v25  ;;  %v4184_v29 = vmul.f32 1.442695, %v4174_v0 }
0x2b7f   :  { %v4186_v42 = vmul.f32 1.442695, %v4175_v21  ;;  %v4188_v16 = vmul.f32 1.442695, %v4176_v44  ;;  %v4190_v59 = vmul.f32 1.442695, %v4177_v54 }
0x2b80   :  { %6802 = vpow2.f32 %v4180_v48  ;;  %v4192_v11 = vmul.f32 1.442695, %v4178_v47  ;;  %v4194_v52 = vmul.f32 1.442695, %v4179_v63 }
0x2b81   :  { %6804 = vpow2.f32 %v4182_v9 }
0x2b82   :  { %6806 = vpow2.f32 %v4184_v29 }
0x2b83   :  { %6808 = vpow2.f32 %v4186_v42  ;;  %v4408_v42 = vadd.f32 %v7996_v28, %v8125_v56 }
0x2b84   :  { %6810 = vpow2.f32 %v4188_v16 }
0x2b85   :  { %6812 = vpow2.f32 %v4190_v59 }
0x2b86   :  { %6814 = vpow2.f32 %v4192_v11 }
0x2b87   :  { %6816 = vpow2.f32 %v4194_v52 }
0x2b8d   :  { %v6803_v18 = vpop.eup %6802 }
0x2b8e   :  { %v6805_v35 = vpop.eup %6804 }
0x2b8f   :  { %v4196_v26 = vadd.f32 %v6805_v35, %v6803_v18  ;;  %v6807_v45 = vpop.eup %6806 }
0x2b90   :  { %v6809_v10 = vpop.eup %6808 }
0x2b91   :  { %v4197_v13 = vadd.f32 %v6807_v45, %v4196_v26  ;;  %v6811_v32 = vpop.eup %6810 }
0x2b92   :  { %v6813_v37 = vpop.eup %6812 }
0x2b93   :  { %v4198_v22 = vadd.f32 %v6809_v10, %v4197_v13  ;;  %v6815_v7 = vpop.eup %6814 }
0x2b94   :  { %v6817_v58 = vpop.eup %6816 }
0x2b95   :  { %v4199_v62 = vadd.f32 %v6811_v32, %v4198_v22 }
0x2b97   :  { %v4200_v5 = vadd.f32 %v6813_v37, %v4199_v62 }
0x2b99   :  { %v4201_v17 = vadd.f32 %v6815_v7, %v4200_v5 }
0x2b9b   :  { %v4202_v61 = vadd.f32 %v6817_v58, %v4201_v17 }
0x2b9d   :  { %6818 = vrcp.f32 %v4202_v61 }
0x2baa   :  { %v6819_v19 = vpop.eup %6818 }
0x2bab   :  { %v4205_v25 = vmul.f32 %v6819_v19, %v6805_v35  ;;  %v4204_v0 = vmul.f32 %v6819_v19, %v6803_v18  ;;  %v4206_v21 = vmul.f32 %v6819_v19, %v6807_v45  ;;  %v4207_v48 = vmul.f32 %v6819_v19, %v6809_v10 }
0x2bac   :  { %v4208_v9 = vmul.f32 %v6819_v19, %v6811_v32  ;;  %v4209_v44 = vmul.f32 %v6819_v19, %v6813_v37  ;;  %v4210_v29 = vmul.f32 %v6819_v19, %v6815_v7  ;;  %v4211_v54 = vmul.f32 %v6819_v19, %v6817_v58 }
0x2bad   :  { %4219 = vperm.xlu1 %6648, %v4205_v25   ;;  %4214 = vperm.xlu0 %6649, %v4204_v0  }
0x2bb1   :  { %4224 = vperm.xlu1 %6648, %v4206_v21   ;;  %4229 = vperm.xlu0 %6649, %v4207_v48  }
0x2bb5   :  { %4234 = vperm.xlu1 %6648, %v4208_v9   ;;  %4239 = vperm.xlu0 %6649, %v4209_v44  }
0x2bb9   :  { %4244 = vperm.xlu1 %6648, %v4210_v29   ;;  %4249 = vperm.xlu0 %6649, %v4211_v54  }
0x2bbd   :  { %4419 = vrot.lane.b32.xlu1 %v4408_v42, %s6951_s1 }
0x2c28   :  { %v4220_v28 = vpop.permute.xlu1 %4219  ;;  %v4215_v56 = vpop.permute.xlu0 %4214 }
0x2c29   :  { %v4253_v59 = vmul.f32 %v4220_v28, %v8006_v40  ;;  %v4252_v11 = vmul.f32 %v4215_v56, %v8008_v55 }
0x2c2b   :  { %v4260_v18 = vadd.f32 %v4253_v59, %v4252_v11 }
0x2c2c   :  { %v4225_v63 = vpop.permute.xlu1 %4224  ;;  %v4230_v35 = vpop.permute.xlu0 %4229 }
0x2c2d   :  { %v4254_v52 = vmul.f32 %v4225_v63, %v8012_v30  ;;  %v4255_v13 = vmul.f32 %v4230_v35, %v8018_v8 }
0x2c2e   :  { %v4043_v47 = vpop.f32.mrf.mxu1 }
0x2c2f   :  { %6513 = vmatmul.mubr.msk.f32.vlgmr.msra.gmra.mxu1 %vm97_vm0, %v4043_v47  ;;  %v4261_v26 = vadd.f32 %v4260_v18, %v4254_v52 }
0x2c30   :  { %6527 = vmatpush3.msra.mxu1 %v8050_v24  ;;  %6534 = vmatprep.mubr.msk.f32.mxu1 %vm6950_vm1, %v8540_v6  ;;  %v6496_v16 = vpop.f32.mrf.mxu1  ;;  %v4235_v45 = vpop.permute.xlu1 %4234 }
0x2c31   :  { %6528 = vmatprep.subr.mxu1 %v8540_v6  ;;  %v4262_v10 = vadd.f32 %v4261_v26, %v4255_v13  ;;  %v4256_v22 = vmul.f32 %v4235_v45, %v8023_v20  ;;  %v4240_v32 = vpop.permute.xlu0 %4239  ;;  %v8199_v45 = vld [vmem:[%s8500_s10 + $0x18] sm:$0xff]  ;;  %v8215_v13 = vld [vmem:[%s8500_s10 + $0x8] sm:$0xff] }
0x2c32   :  { %6529 = vmatpush3.msra.mxu1 %v8055_v27  ;;  %v4257_v5 = vmul.f32 %v4240_v32, %v8026_v33 }
0x2c33   :  { %6530 = vmatprep.subr.mxu1 %v8540_v6  ;;  %v4263_v62 = vadd.f32 %v4262_v10, %v4256_v22  ;;  %v8222_v10 = vld [vmem:[%s8500_s10] sm:$0xff] }
0x2c34   :  { %6531 = vmatpush3.msra.mxu1 %v8062_v46  ;;  %v4245_v37 = vpop.permute.xlu1 %4244  ;;  %v6934_v22 = vld [vmem:[%s8503_s9] sm:$0xff] }
0x2c35   :  { %6532 = vmatprep.subr.mxu1 %v8540_v6  ;;  %v4264_v7 = vadd.f32 %v4263_v62, %v4257_v5  ;;  %v4258_v17 = vmul.f32 %v4245_v37, %v8032_v14  ;;  %v4250_v58 = vpop.permute.xlu0 %4249 }
0x2c36   :  { %6533 = vmatpush3.msra.mxu1 %v8069_v38  ;;  %v4259_v19 = vmul.f32 %v4250_v58, %v8036_v43 }
0x2c37   :  { %6550 = vmatprep.subr.mxu1 %v8540_v6  ;;  %v4265_v61 = vadd.f32 %v4264_v7, %v4258_v17 }
0x2c38   :  { %v4420_v28 = vpop.permute.xlu1 %4419 }
0x2c39   :  { %v4266_v25 = vadd.f32 %v4265_v61, %v4259_v19 }
0x2cef   :  { %v4336_v0 = vpop.f32.mrf.mxu1 }
0x2cf0   :  { %v4337_v21 = vadd.f32 %v4336_v0, %v4266_v25 }
0x2cf1   :  { %v6514_v48 = vpop.f32.mrf.mxu1 }
0x2cf2   :  { %v4340_v9 = vadd.f32 %v8042_v12, %v4337_v21 }
0x2cf4   :  { %v4411_v44 = vadd.f32 %v4408_v42, %v4340_v9 }
0x2cf6   :  { %v5772_v29 = vmul.f32 -1.442695, %v4411_v44 }
0x2cf8   :  { %6820 = vpow2.f32 %v5772_v29 }
0x2d05   :  { %v6821_v54 = vpop.eup %6820 }
0x2d06   :  { %v4415_v47 = vadd.f32 1.0, %v6821_v54 }
0x2d08   :  { %6822 = vrcp.f32 %v4415_v47 }
0x2d15   :  { %v6823_v16 = vpop.eup %6822 }
0x2d16   :  { %v4422_v56 = vmul.f32 %v6823_v16, %v4420_v28  ;;  %v4429_v52 = vsub.f32 1.0, %v6823_v16  ;;  %v4435_v12 = vmul.f32 %v6823_v16, %v8077_v34  ;;  %v8208_v34 = vld [vmem:[%s8500_s10 + $0x10] sm:$0xff] }
0x2d18   :  { %4424 = vrot.lane.b32.xlu0 %v4422_v56, %s6951_s1 }
0x2d8a   :  { %v4425_v63 = vpop.permute.xlu0 %4424 }
0x2d8b   :  { %v4427_v59 = vadd.f32 %v4425_v63, %v4340_v9  ;;  %v8273_v9 = vld [vmem:[%s8506_s14] ss:$0 sm:$0xff] }
0x2d8d   :  { %6824 = vtanh.f32 %v4427_v59 }
0x2d9a   :  { %v6825_v11 = vpop.eup %6824 }
0x2d9b   :  { %4431 = vrot.lane.b32.xlu1 %v6825_v11, %s6952_s28 }
0x2e0d   :  { %v4432_v18 = vpop.permute.xlu1 %4431 }
0x2e0e   :  { %v4434_v42 = vmul.f32 %v4432_v18, %v4429_v52 }
0x2e10   :  { %v8191_v35 = vadd.f32 %v4435_v12, %v4434_v42 }
0x2e12   :  { %4438 = vrot.lane.b32.xlu0 %v8191_v35, %s6952_s28 }
0x2e84   :  { %v4439_v26 = vpop.permute.xlu0 %4438 }
0x2e85   :  { %6535 = vmatmul.mubr.msk.f32.vlgmr.msra.gmra.mxu1 %vm177_vm2, %v4439_v26 }
0x2e86   :  { %6551 = vmatpush3.msra.mxu1 %v8199_v45  ;;  %6558 = vmatprep.mubr.msk.f32.mxu1 %vm6950_vm1, %v8540_v6 }
0x2e87   :  { %6552 = vmatprep.subr.mxu1 %v8540_v6 }
0x2e88   :  { %6553 = vmatpush3.msra.mxu1 %v8208_v34 }
0x2e89   :  { %6554 = vmatprep.subr.mxu1 %v8540_v6 }
0x2e8a   :  { %6555 = vmatpush3.msra.mxu1 %v8215_v13 }
0x2e8b   :  { %6556 = vmatprep.subr.mxu1 %v8540_v6 }
0x2e8c   :  { %6557 = vmatpush3.msra.mxu1 %v8222_v10 }
0x2e8d   :  { %6559 = vmatmul.mubr.msk.f32.vlgmr.msra.gmra.mxu1 %vm177_vm2, %v4439_v26  ;;  %6568 = vmatprep.subr.mxu1 %v8540_v6 }
0x2e8e   :  { %6569 = vmatpush3.msra.mxu1 %v7940_v4  ;;  %6576 = vmatprep.mubr.msk.f32.mxu1 %vm6950_vm1, %v8540_v6  ;;  %v6930_v4 = vld [vmem:[%s8503_s9 + $0x20] sm:$0xff] }
0x2e8f   :  { %6570 = vmatprep.subr.mxu1 %v8540_v6 }
0x2e90   :  { %6571 = vmatpush3.msra.mxu1 %v7948_v49  ;;  %v6931_v49 = vld [vmem:[%s8503_s9 + $0x18] sm:$0xff] }
0x2e91   :  { %6572 = vmatprep.subr.mxu1 %v8540_v6 }
0x2e92   :  { %6573 = vmatpush3.msra.mxu1 %v7957_v60  ;;  %v6932_v60 = vld [vmem:[%s8503_s9 + $0x10] sm:$0xff] }
0x2e93   :  { %6574 = vmatprep.subr.mxu1 %v8540_v6 }
0x2e94   :  { %6575 = vmatpush3.msra.mxu1 %v7968_v15  ;;  %v6933_v15 = vld [vmem:[%s8503_s9 + $0x8] sm:$0xff] }
0x2e95   :  { %6577 = vmatmul.mubr.msk.f32.vlgmr.msra.gmra.mxu1 %vm177_vm2, %v4439_v26  ;;  %6590 = vmatprep.subr.mxu1 %v8540_v6 }
0x2e96   :  { %6591 = vmatpush3.msra.mxu1 %v6930_v4  ;;  %6600 = vmatprep.mubr.msk.f32.mxu1 %vm6950_vm1, %v8540_v6 }
0x2e97   :  { %6592 = vmatprep.subr.mxu1 %v8540_v6 }
0x2e98   :  { %6593 = vmatpush3.msra.mxu1 %v6931_v49 }
0x2e99   :  { %6594 = vmatprep.subr.mxu1 %v8540_v6 }
0x2e9a   :  { %6595 = vmatpush3.msra.mxu1 %v6932_v60 }
0x2e9b   :  { %6596 = vmatprep.subr.mxu1 %v8540_v6 }
0x2e9c   :  { %6597 = vmatpush3.msra.mxu1 %v6933_v15 }
0x2e9d   :  { %6598 = vmatprep.subr.mxu1 %v8540_v6 }
0x2e9e   :  { %6599 = vmatpush3.msra.mxu1 %v6934_v22 }
0x2e9f   :  { %6614 = vmatprep.subr.mxu1 %v8540_v6 }
0x2f45   :  { %v4508_v32 = vpop.f32.mrf.mxu1 }
0x2f46   :  { %v8261_v62 = vadd.f32 %v8119_v50, %v4508_v32 }
0x2f47   :  { %v6536_v37 = vpop.f32.mrf.mxu1 }
0x2f48   :  { %4512 = vmax.xlane.f32.xlu1 %v8261_v62 }
0x2f4d   :  { %v4682_v5 = vpop.f32.mrf.mxu1 }
0x2f4e   :  { %v4686_v7 = vadd.f32 %v4682_v5, %v7887_v3  ;;  %v4688_v17 = vadd.f32 %v4682_v5, %v7892_v57  ;;  %v4690_v61 = vadd.f32 %v4682_v5, %v7898_v41  ;;  %v4692_v19 = vadd.f32 %v4682_v5, %v7906_v51 }
0x2f4f   :  { %v6560_v58 = vpop.f32.mrf.mxu1  ;;  %v4687_v26 = vadd.f32 %v4682_v5, %v7884_v23  ;;  %v4689_v4 = vadd.f32 %v4682_v5, %v7890_v31  ;;  %v4691_v49 = vadd.f32 %v4682_v5, %v7896_v36  ;;  %v4693_v60 = vadd.f32 %v4682_v5, %v7902_v2 }
0x2f50   :  { %6826 = vtanh.f32 %v4686_v7 }
0x2f51   :  { %6828 = vtanh.f32 %v4688_v17 }
0x2f52   :  { %6830 = vtanh.f32 %v4690_v61 }
0x2f53   :  { %6832 = vtanh.f32 %v4692_v19 }
0x2f54   :  { %6834 = vtanh.f32 %v4687_v26 }
0x2f55   :  { %v8268_v25 = vpop.f32.mrf.mxu1  ;;  %6836 = vtanh.f32 %v4689_v4 }
0x2f56   :  { %6838 = vtanh.f32 %v4691_v49 }
0x2f57   :  { %v6578_v0 = vpop.f32.mrf.mxu1  ;;  %6840 = vtanh.f32 %v4693_v60  ;;  %v8306_v60 = vld [vmem:[%s8504_s15 + $0x8] sm:$0xff] }
0x2f5d   :  { %v6827_v21 = vpop.eup %6826 }
0x2f5e   :  { %v6829_v48 = vpop.eup %6828  ;;  %v4702_v44 = vmul.f32 %v8273_v9, %v6827_v21 }
0x2f5f   :  { %v4704_v54 = vmul.f32 %v8273_v9, %v6829_v48  ;;  %v6831_v47 = vpop.eup %6830 }
0x2f60   :  { %v4710_v29 = vsel %vm97_vm0, %v4702_v44, 0.0  ;;  %v4706_v28 = vmul.f32 %v8273_v9, %v6831_v47  ;;  %v6833_v56 = vpop.eup %6832 }
0x2f61   :  { %4711 = vadd.xlane.f32.xlu1 %v4710_v29  ;;  %v4716_v16 = vsel %vm97_vm0, %v4704_v54, 0.0  ;;  %v4708_v59 = vmul.f32 %v8273_v9, %v6833_v56  ;;  %v6835_v22 = vpop.eup %6834 }
0x2f62   :  { %v4722_v63 = vsel %vm97_vm0, %v4706_v28, 0.0  ;;  %v4703_v17 = vmul.f32 %v8273_v9, %v6835_v22  ;;  %v6837_v58 = vpop.eup %6836  ;;  %v8315_v22 = vld [vmem:[%s8504_s15] sm:$0xff] }
0x2f63   :  { %v4728_v11 = vsel %vm97_vm0, %v4708_v59, 0.0  ;;  %v4705_v19 = vmul.f32 %v8273_v9, %v6837_v58  ;;  %v6839_v0 = vpop.eup %6838 }
0x2f64   :  { %v4713_v61 = vsel %vm97_vm0, %v4703_v17, 0.0  ;;  %v4707_v5 = vmul.f32 %v8273_v9, %v6839_v0  ;;  %v6841_v48 = vpop.eup %6840 }
0x2f65   :  { %4717 = vadd.xlane.f32.xlu1 %v4716_v16  ;;  %v4719_v21 = vsel %vm97_vm0, %v4705_v19, 0.0  ;;  %v4709_v29 = vmul.f32 %v8273_v9, %v6841_v48 }
0x2f66   :  { %v4725_v44 = vsel %vm97_vm0, %v4707_v5, 0.0 }
0x2f67   :  { %v4731_v54 = vsel %vm97_vm0, %v4709_v29, 0.0 }
0x2f69   :  { %4723 = vadd.xlane.f32.xlu1 %v4722_v63 }
0x2f6d   :  { %4729 = vadd.xlane.f32.xlu1 %v4728_v11 }
0x2fd1   :  { %v8283_v52 = vpop.xlane.xlu1 %4512 }
0x2fd2   :  { %vm4524_vm8 = vcmp.eq.f32.partialorder %v8261_v62, %v8283_v52 }
0x2fd3   :  { %v4525_v18 = vsel %vm4524_vm8, %v7832_v53, 128 }
0x2fd4   :  { %v4527_v12 = vshra.s32 %v4525_v18, 16  ;;  %v4526_v15 = vand.u32 65535, %v4525_v18 }
0x2fd6   :  { %v4529_v42 = vcvt.s32.f32 %v4527_v12  ;;  %v4528_v37 = vcvt.s32.f32 %v4526_v15 }
0x2fd8   :  { %4530 = vmin.xlane.f32.xlu0 %v4529_v42 }
0x2fea   :  { %v4712_v47 = vpop.xlane.xlu1 %4711 }
0x2fee   :  { %v4718_v59 = vpop.xlane.xlu1 %4717 }
0x2ff2   :  { %v4724_v4 = vpop.xlane.xlu1 %4723 }
0x2ff6   :  { %v4730_v17 = vpop.xlane.xlu1 %4729 }
0x3061   :  { %v4531_v32 = vpop.xlane.xlu0 %4530 }
0x3062   :  { %vm4532_vm9 = vcmp.eq.f32.partialorder %v4529_v42, %v4531_v32  ;;  %v4537_v16 = vcvt.f32.s32 %v4531_v32 }
0x3063   :  { %v4533_v7 = vsel %vm4532_vm9, %v4528_v37, inf }
0x3064   :  { %4534 = vmin.xlane.f32.xlu0 %v4533_v7  ;;  %v4538_v56 = vshll.u32 %v4537_v16, 16 }
0x3068   :  { %4714 = vadd.xlane.f32.xlu0 %v4713_v61 }
0x306c   :  { %4720 = vadd.xlane.f32.xlu0 %v4719_v21 }
0x3070   :  { %4726 = vadd.xlane.f32.xlu0 %v4725_v44 }
0x3074   :  { %4732 = vadd.xlane.f32.xlu0 %v4731_v54 }
0x30ed   :  { %v4535_v28 = vpop.xlane.xlu0 %4534 }
0x30ee   :  { %v4536_v63 = vcvt.f32.s32 %v4535_v28 }
0x30f0   :  { %v4539_v11 = vadd.s32 %v4538_v56, %v4536_v63 }
0x30f1   :  { %v4715_v18 = vpop.xlane.xlu0 %4714 }
0x30f2   :  { %vm4540_vm10 = vcmp.eq.s32.totalorder %v7832_v53, %v4539_v11  ;;  %v4734_v12 = vmax.f32 %v4712_v47, %v4715_v18 }
0x30f3   :  { %v5775_v42 = vsel %vm4540_vm10, 1.0, %v8540_v6 }
0x30f4   :  { %6548 = vmatmul.mubr.msk.f32.vlgmr.msra.gmra.mxu0 %vm3381_vm4, %v5775_v42  ;;  %v4735_v26 = vmax.f32 %v4734_v12, %v4718_v59 }
0x30f5   :  { %v4721_v49 = vpop.xlane.xlu0 %4720  ;;  %6562 = vmatpush3.msra.mxu0 %v8306_v60  ;;  %6565 = vmatprep.mubr.msk.f32.mxu0 %vm6950_vm1, %v8540_v6 }
0x30f6   :  { %v4736_v15 = vmax.f32 %v4735_v26, %v4721_v49  ;;  %6563 = vmatprep.subr.mxu0 %v8540_v6 }
0x30f7   :  { %6564 = vmatpush3.msra.mxu0 %v8315_v22 }
0x30f8   :  { %v4737_v32 = vmax.f32 %v4736_v15, %v4724_v4  ;;  %6579 = vmatprep.subr.mxu0 %v8540_v6 }
0x30f9   :  { %v4727_v37 = vpop.xlane.xlu0 %4726 }
0x30fa   :  { %v4738_v7 = vmax.f32 %v4737_v32, %v4727_v37 }
0x30fc   :  { %v4739_v58 = vmax.f32 %v4738_v7, %v4730_v17 }
0x30fd   :  { %v4733_v61 = vpop.xlane.xlu0 %4732 }
0x30fe   :  { %v4740_v19 = vmax.f32 %v4739_v58, %v4733_v61 }
0x3100   :  { %v4741_v0 = vsub.f32 %v4712_v47, %v4740_v19  ;;  %v4742_v21 = vsub.f32 %v4715_v18, %v4740_v19  ;;  %v4743_v5 = vsub.f32 %v4718_v59, %v4740_v19  ;;  %v4744_v48 = vsub.f32 %v4721_v49, %v4740_v19 }
0x3101   :  { %v4745_v54 = vsub.f32 %v4724_v4, %v4740_v19  ;;  %v4746_v28 = vsub.f32 %v4727_v37, %v4740_v19  ;;  %v4747_v63 = vsub.f32 %v4730_v17, %v4740_v19  ;;  %v4748_v12 = vsub.f32 %v4733_v61, %v4740_v19 }
0x3102   :  { %v4749_v44 = vmul.f32 1.442695, %v4741_v0  ;;  %v4751_v29 = vmul.f32 1.442695, %v4742_v21  ;;  %v4753_v16 = vmul.f32 1.442695, %v4743_v5 }
0x3103   :  { %v4755_v56 = vmul.f32 1.442695, %v4744_v48  ;;  %v4757_v11 = vmul.f32 1.442695, %v4745_v54  ;;  %v4759_v42 = vmul.f32 1.442695, %v4746_v28 }
0x3104   :  { %6842 = vpow2.f32 %v4749_v44  ;;  %v4761_v26 = vmul.f32 1.442695, %v4747_v63  ;;  %v4763_v47 = vmul.f32 1.442695, %v4748_v12  ;;  %v8322_v63 = vld [vmem:[%s8508_s20] ss:$0 sm:$0xff] }
0x3105   :  { %6844 = vpow2.f32 %v4751_v29 }
0x3106   :  { %6846 = vpow2.f32 %v4753_v16 }
0x3107   :  { %6848 = vpow2.f32 %v4755_v56 }
0x3108   :  { %6850 = vpow2.f32 %v4757_v11  ;;  %v4977_v11 = vadd.f32 %v8322_v63, %v8268_v25 }
0x3109   :  { %6852 = vpow2.f32 %v4759_v42 }
0x310a   :  { %6854 = vpow2.f32 %v4761_v26 }
0x310b   :  { %6856 = vpow2.f32 %v4763_v47 }
0x3111   :  { %v6843_v59 = vpop.eup %6842 }
0x3112   :  { %v6845_v18 = vpop.eup %6844 }
0x3113   :  { %v4765_v4 = vadd.f32 %v6845_v18, %v6843_v59  ;;  %v6847_v49 = vpop.eup %6846 }
0x3114   :  { %v6849_v32 = vpop.eup %6848 }
0x3115   :  { %v4766_v15 = vadd.f32 %v6847_v49, %v4765_v4  ;;  %v6851_v7 = vpop.eup %6850 }
0x3116   :  { %v6853_v58 = vpop.eup %6852 }
0x3117   :  { %v4767_v37 = vadd.f32 %v6849_v32, %v4766_v15  ;;  %v6855_v61 = vpop.eup %6854 }
0x3118   :  { %v6857_v21 = vpop.eup %6856 }
0x3119   :  { %v4768_v17 = vadd.f32 %v6851_v7, %v4767_v37 }
0x311b   :  { %v4769_v0 = vadd.f32 %v6853_v58, %v4768_v17 }
0x311d   :  { %v4770_v19 = vadd.f32 %v6855_v61, %v4769_v0 }
0x311f   :  { %v4771_v5 = vadd.f32 %v6857_v21, %v4770_v19 }
0x3121   :  { %6858 = vrcp.f32 %v4771_v5 }
0x312e   :  { %v6859_v48 = vpop.eup %6858 }
0x312f   :  { %v4774_v44 = vmul.f32 %v6859_v48, %v6845_v18  ;;  %v4773_v29 = vmul.f32 %v6859_v48, %v6843_v59  ;;  %v4777_v54 = vmul.f32 %v6859_v48, %v6851_v7  ;;  %v4775_v16 = vmul.f32 %v6859_v48, %v6847_v49 }
0x3130   :  { %v4779_v28 = vmul.f32 %v6859_v48, %v6855_v61  ;;  %v4776_v56 = vmul.f32 %v6859_v48, %v6849_v32  ;;  %v4778_v12 = vmul.f32 %v6859_v48, %v6853_v58  ;;  %v4780_v42 = vmul.f32 %v6859_v48, %v6857_v21 }
0x3131   :  { %4788 = vperm.xlu0 %6649, %v4774_v44   ;;  %4783 = vperm.xlu1 %6648, %v4773_v29  }
0x3135   :  { %4803 = vperm.xlu0 %6649, %v4777_v54   ;;  %4793 = vperm.xlu1 %6648, %v4775_v16  }
0x3139   :  { %4813 = vperm.xlu0 %6649, %v4779_v28   ;;  %4798 = vperm.xlu1 %6648, %v4776_v56   ;;  %v8349_v56 = vld [vmem:[%s8509_s19] ss:$0 sm:$0xff] }
0x313d   :  { %4808 = vperm.xlu1 %6648, %v4778_v12   ;;  %4988 = vrot.lane.b32.xlu0 %v4977_v11, %s6951_s1 }
0x3141   :  { %4818 = vperm.xlu1 %6648, %v4780_v42  }
0x31ac   :  { %v4784_v25 = vpop.permute.xlu1 %4783 }
0x31ad   :  { %v4821_v4 = vmul.f32 %v4784_v25, %v8008_v55 }
0x31b0   :  { %v4794_v59 = vpop.permute.xlu1 %4793 }
0x31b4   :  { %v4612_v26 = vpop.f32.mrf.mxu0  ;;  %v4799_v49 = vpop.permute.xlu1 %4798 }
0x31b5   :  { %6566 = vmatmul.mubr.msk.f32.vlgmr.msra.gmra.mxu0 %vm97_vm0, %v4612_v26  ;;  %v4824_v32 = vmul.f32 %v4799_v49, %v8018_v8 }
0x31b6   :  { %v6549_v47 = vpop.f32.mrf.mxu0  ;;  %6580 = vmatpush3.msra.mxu0 %v8050_v24  ;;  %6587 = vmatprep.mubr.msk.f32.mxu0 %vm6950_vm1, %v8540_v6  ;;  %v4789_v24 = vpop.permute.xlu0 %4788 }
0x31b7   :  { %6581 = vmatprep.subr.mxu0 %v8540_v6  ;;  %v4822_v18 = vmul.f32 %v4789_v24, %v8006_v40 }
0x31b8   :  { %6582 = vmatpush3.msra.mxu0 %v8055_v27  ;;  %v4823_v27 = vmul.f32 %v4794_v59, %v8012_v30  ;;  %v4809_v17 = vpop.permute.xlu1 %4808 }
0x31b9   :  { %6583 = vmatprep.subr.mxu0 %v8540_v6  ;;  %v4829_v15 = vadd.f32 %v4822_v18, %v4821_v4  ;;  %v4826_v0 = vmul.f32 %v4809_v17, %v8026_v33 }
0x31ba   :  { %6584 = vmatpush3.msra.mxu0 %v8062_v46  ;;  %v4804_v37 = vpop.permute.xlu0 %4803 }
0x31bb   :  { %6585 = vmatprep.subr.mxu0 %v8540_v6  ;;  %v4830_v46 = vadd.f32 %v4829_v15, %v4823_v27 }
0x31bc   :  { %6586 = vmatpush3.msra.mxu0 %v8069_v38  ;;  %v4825_v38 = vmul.f32 %v4804_v37, %v8023_v20  ;;  %v4819_v21 = vpop.permute.xlu1 %4818 }
0x31bd   :  { %6603 = vmatprep.subr.mxu0 %v8540_v6  ;;  %v4831_v7 = vadd.f32 %v4830_v46, %v4824_v32  ;;  %v4828_v48 = vmul.f32 %v4819_v21, %v8036_v43 }
0x31be   :  { %v4814_v61 = vpop.permute.xlu0 %4813 }
0x31bf   :  { %v4832_v58 = vadd.f32 %v4831_v7, %v4825_v38  ;;  %v4827_v5 = vmul.f32 %v4814_v61, %v8032_v14 }
0x31c1   :  { %v4833_v19 = vadd.f32 %v4832_v58, %v4826_v0 }
0x31c2   :  { %v4989_v24 = vpop.permute.xlu0 %4988 }
0x31c3   :  { %v4834_v44 = vadd.f32 %v4833_v19, %v4827_v5 }
0x31c5   :  { %v4835_v29 = vadd.f32 %v4834_v44, %v4828_v48 }
0x3275   :  { %v4905_v54 = vpop.f32.mrf.mxu0 }
0x3276   :  { %v4906_v16 = vadd.f32 %v4905_v54, %v4835_v29 }
0x3277   :  { %v6567_v28 = vpop.f32.mrf.mxu0 }
0x3278   :  { %v4909_v12 = vadd.f32 %v8349_v56, %v4906_v16 }
0x327a   :  { %v4980_v42 = vadd.f32 %v4977_v11, %v4909_v12 }
0x327c   :  { %v5780_v26 = vmul.f32 -1.442695, %v4980_v42 }
0x327e   :  { %6860 = vpow2.f32 %v5780_v26 }
0x328b   :  { %v6861_v47 = vpop.eup %6860 }
0x328c   :  { %v4984_v25 = vadd.f32 1.0, %v6861_v47 }
0x328e   :  { %6862 = vrcp.f32 %v4984_v25 }
0x329b   :  { %v6863_v59 = vpop.eup %6862 }
0x329c   :  { %v4991_v18 = vmul.f32 %v6863_v59, %v4989_v24  ;;  %v4998_v15 = vsub.f32 1.0, %v6863_v59  ;;  %v5004_v11 = vmul.f32 %v6863_v59, %v8191_v35  ;;  %v6940_v35 = vld [vmem:[%s8507_s18 + $0x18] sm:$0xff] }
0x329e   :  { %4993 = vrot.lane.b32.xlu1 %v4991_v18, %s6951_s1 }
0x3310   :  { %v4994_v4 = vpop.permute.xlu1 %4993 }
0x3311   :  { %v4996_v49 = vadd.f32 %v4994_v4, %v4909_v12 }
0x3313   :  { %6864 = vtanh.f32 %v4996_v49 }
0x3320   :  { %v6865_v27 = vpop.eup %6864 }
0x3321   :  { %5000 = vrot.lane.b32.xlu0 %v6865_v27, %s6952_s28 }
0x3393   :  { %v5001_v32 = vpop.permute.xlu0 %5000 }
0x3394   :  { %v5003_v46 = vmul.f32 %v5001_v32, %v4998_v15 }
0x3396   :  { %v8355_v37 = vadd.f32 %v5004_v11, %v5003_v46 }
0x3398   :  { %5007 = vrot.lane.b32.xlu1 %v8355_v37, %s6952_s28 }
0x340a   :  { %v5008_v7 = vpop.permute.xlu1 %5007 }
0x340b   :  { %6588 = vmatmul.mubr.msk.f32.vlgmr.msra.gmra.mxu0 %vm177_vm2, %v5008_v7 }
0x340c   :  { %6604 = vmatpush3.msra.mxu0 %v8199_v45  ;;  %6611 = vmatprep.mubr.msk.f32.mxu0 %vm6950_vm1, %v8540_v6  ;;  %v6941_v45 = vld [vmem:[%s8507_s18 + $0x10] sm:$0xff] }
0x340d   :  { %6605 = vmatprep.subr.mxu0 %v8540_v6 }
0x340e   :  { %6606 = vmatpush3.msra.mxu0 %v8208_v34  ;;  %v6942_v34 = vld [vmem:[%s8507_s18 + $0x8] sm:$0xff] }
0x340f   :  { %6607 = vmatprep.subr.mxu0 %v8540_v6 }
0x3410   :  { %6608 = vmatpush3.msra.mxu0 %v8215_v13  ;;  %v6943_v13 = vld [vmem:[%s8507_s18] sm:$0xff] }
0x3411   :  { %6609 = vmatprep.subr.mxu0 %v8540_v6 }
0x3412   :  { %6610 = vmatpush3.msra.mxu0 %v8222_v10 }
0x3413   :  { %6612 = vmatmul.mubr.msk.f32.vlgmr.msra.gmra.mxu0 %vm177_vm2, %v5008_v7  ;;  %6621 = vmatprep.subr.mxu0 %v8540_v6 }
0x3414   :  { %6622 = vmatpush3.msra.mxu0 %v6940_v35  ;;  %6629 = vmatprep.mubr.msk.f32.mxu0 %vm6950_vm1, %v8540_v6 }
0x3415   :  { %6623 = vmatprep.subr.mxu0 %v8540_v6 }
0x3416   :  { %6624 = vmatpush3.msra.mxu0 %v6941_v45 }
0x3417   :  { %6625 = vmatprep.subr.mxu0 %v8540_v6 }
0x3418   :  { %6626 = vmatpush3.msra.mxu0 %v6942_v34 }
0x3419   :  { %6627 = vmatprep.subr.mxu0 %v8540_v6 }
0x341a   :  { %6628 = vmatpush3.msra.mxu0 %v6943_v13 }
0x341b   :  { %6630 = vmatmul.mubr.msk.f32.vlgmr.msra.gmra.mxu0 %vm177_vm2, %v5008_v7 }
0x34cb   :  { %v5077_v10 = vpop.f32.mrf.mxu0 }
0x34cc   :  { %v8390_v17 = vadd.f32 %v8119_v50, %v5077_v10 }
0x34cd   :  { %v6589_v38 = vpop.f32.mrf.mxu0 }
0x34ce   :  { %5081 = vmax.xlane.f32.xlu0 %v8390_v17 }
0x34d3   :  { %v5251_v58 = vpop.f32.mrf.mxu0 }
0x34d4   :  { %v5256_v21 = vadd.f32 %v5251_v58, %v7884_v23  ;;  %v5258_v5 = vadd.f32 %v5251_v58, %v7890_v31  ;;  %v5260_v48 = vadd.f32 %v5251_v58, %v7896_v36  ;;  %v5262_v50 = vadd.f32 %v5251_v58, %v7902_v2 }
0x34d5   :  { %v6613_v0 = vpop.f32.mrf.mxu0  ;;  %v5255_v18 = vadd.f32 %v5251_v58, %v7887_v3  ;;  %v5257_v4 = vadd.f32 %v5251_v58, %v7892_v57  ;;  %v5259_v49 = vadd.f32 %v5251_v58, %v7898_v41  ;;  %v5261_v27 = vadd.f32 %v5251_v58, %v7906_v51 }
0x34d6   :  { %6866 = vtanh.f32 %v5256_v21 }
0x34d7   :  { %6868 = vtanh.f32 %v5258_v5 }
0x34d8   :  { %6870 = vtanh.f32 %v5260_v48 }
0x34d9   :  { %6872 = vtanh.f32 %v5262_v50 }
0x34da   :  { %6874 = vtanh.f32 %v5255_v18 }
0x34db   :  { %v8393_v61 = vpop.f32.mrf.mxu0  ;;  %6876 = vtanh.f32 %v5257_v4 }
0x34dc   :  { %6878 = vtanh.f32 %v5259_v49 }
0x34dd   :  { %v6631_v19 = vpop.f32.mrf.mxu0  ;;  %6880 = vtanh.f32 %v5261_v27 }
0x34e3   :  { %v6867_v54 = vpop.eup %6866 }
0x34e4   :  { %v5272_v28 = vmul.f32 %v8273_v9, %v6867_v54  ;;  %v6869_v31 = vpop.eup %6868 }
0x34e5   :  { %v5274_v12 = vmul.f32 %v8273_v9, %v6869_v31  ;;  %v6871_v2 = vpop.eup %6870 }
0x34e6   :  { %v5282_v36 = vsel %vm97_vm0, %v5272_v28, 0.0  ;;  %v5276_v26 = vmul.f32 %v8273_v9, %v6871_v2  ;;  %v6873_v47 = vpop.eup %6872 }
0x34e7   :  { %v5288_v42 = vsel %vm97_vm0, %v5274_v12, 0.0  ;;  %v5278_v59 = vmul.f32 %v8273_v9, %v6873_v47  ;;  %v6875_v32 = vpop.eup %6874 }
0x34e8   :  { %v5294_v25 = vsel %vm97_vm0, %v5276_v26, 0.0  ;;  %v5271_v35 = vmul.f32 %v8273_v9, %v6875_v32  ;;  %v6877_v45 = vpop.eup %6876 }
0x34e9   :  { %v5300_v24 = vsel %vm97_vm0, %v5278_v59, 0.0  ;;  %v5273_v57 = vmul.f32 %v8273_v9, %v6877_v45  ;;  %v6879_v34 = vpop.eup %6878 }
0x34ea   :  { %v5279_v3 = vsel %vm97_vm0, %v5271_v35, 0.0  ;;  %v5275_v51 = vmul.f32 %v8273_v9, %v6879_v34  ;;  %v6881_v13 = vpop.eup %6880 }
0x34eb   :  { %v5285_v41 = vsel %vm97_vm0, %v5273_v57, 0.0  ;;  %v5277_v38 = vmul.f32 %v8273_v9, %v6881_v13 }
0x34ec   :  { %v5291_v10 = vsel %vm97_vm0, %v5275_v51, 0.0 }
0x34ed   :  { %v5297_v58 = vsel %vm97_vm0, %v5277_v38, 0.0 }
0x3557   :  { %v8399_v44 = vpop.xlane.xlu0 %5081 }
0x3558   :  { %vm5093_vm11 = vcmp.eq.f32.partialorder %v8390_v17, %v8399_v44 }
0x3559   :  { %v5094_v29 = vsel %vm5093_vm11, %v7832_v53, 128 }
0x355a   :  { %v5096_v16 = vshra.s32 %v5094_v29, 16  ;;  %v5095_v15 = vand.u32 65535, %v5094_v29 }
0x355c   :  { %v5098_v23 = vcvt.s32.f32 %v5096_v16  ;;  %v5097_v46 = vcvt.s32.f32 %v5095_v15 }
0x355e   :  { %5099 = vmin.xlane.f32.xlu1 %v5098_v23 }
0x3562   :  { %5283 = vadd.xlane.f32.xlu1 %v5282_v36 }
0x3566   :  { %5289 = vadd.xlane.f32.xlu1 %v5288_v42 }
0x356a   :  { %5295 = vadd.xlane.f32.xlu1 %v5294_v25 }
0x356e   :  { %5301 = vadd.xlane.f32.xlu1 %v5300_v24 }
0x35e7   :  { %v5100_v11 = vpop.xlane.xlu1 %5099 }
0x35e8   :  { %vm5101_vm12 = vcmp.eq.f32.partialorder %v5098_v23, %v5100_v11  ;;  %v5106_v0 = vcvt.f32.s32 %v5100_v11 }
0x35e9   :  { %v5102_v7 = vsel %vm5101_vm12, %v5097_v46, inf }
0x35ea   :  { %5103 = vmin.xlane.f32.xlu0 %v5102_v7  ;;  %v5107_v5 = vshll.u32 %v5106_v0, 16 }
0x35eb   :  { %v5284_v19 = vpop.xlane.xlu1 %5283 }
0x35ee   :  { %5280 = vadd.xlane.f32.xlu0 %v5279_v3 }
0x35ef   :  { %v5290_v54 = vpop.xlane.xlu1 %5289 }
0x35f2   :  { %5286 = vadd.xlane.f32.xlu0 %v5285_v41 }
0x35f6   :  { %5292 = vadd.xlane.f32.xlu0 %v5291_v10 }
0x35fa   :  { %5298 = vadd.xlane.f32.xlu0 %v5297_v58 }
0x3673   :  { %v5104_v21 = vpop.xlane.xlu0 %5103 }
0x3674   :  { %v5105_v48 = vcvt.f32.s32 %v5104_v21 }
0x3676   :  { %v5108_v50 = vadd.s32 %v5107_v5, %v5105_v48 }
0x3677   :  { %v5281_v29 = vpop.xlane.xlu0 %5280 }
0x3678   :  { %vm5109_vm13 = vcmp.eq.s32.totalorder %v7832_v53, %v5108_v50  ;;  %v5303_v23 = vmax.f32 %v5281_v29, %v5284_v19  ;;  %v5296_v53 = vpop.xlane.xlu1 %5295 }
0x3679   :  { %v5783_v16 = vsel %vm5109_vm13, 1.0, %v8540_v6 }
0x367a   :  { %6601 = vmatmul.mubr.msk.f32.vlgmr.msra.gmra.mxu1 %vm3381_vm4, %v5783_v16 }
0x367b   :  { %v5287_v9 = vpop.xlane.xlu0 %5286  ;;  %6615 = vmatpush3.msra.mxu1 %v8306_v60  ;;  %6618 = vmatprep.mubr.msk.f32.mxu1 %vm6950_vm1, %v8540_v6 }
0x367c   :  { %v5304_v28 = vmax.f32 %v5303_v23, %v5287_v9  ;;  %6616 = vmatprep.subr.mxu1 %v8540_v6  ;;  %v5302_v47 = vpop.xlane.xlu1 %5301 }
0x367d   :  { %6617 = vmatpush3.msra.mxu1 %v8315_v22 }
0x367e   :  { %v5305_v31 = vmax.f32 %v5304_v28, %v5290_v54  ;;  %6632 = vmatprep.subr.mxu1 %v8540_v6 }
0x367f   :  { %v5293_v36 = vpop.xlane.xlu0 %5292 }
0x3680   :  { %v5306_v12 = vmax.f32 %v5305_v31, %v5293_v36 }
0x3682   :  { %v5307_v2 = vmax.f32 %v5306_v12, %v5296_v53 }
0x3683   :  { %v5299_v42 = vpop.xlane.xlu0 %5298 }
0x3684   :  { %v5308_v26 = vmax.f32 %v5307_v2, %v5299_v42  ;;  %v5546_v2 = vadd.f32 %v8322_v63, %v8393_v61  ;;  %v6945_v63 = vld [vmem:[%s8510_s21 + $0x10] sm:$0xff]  ;;  %v6946_v61 = vld [vmem:[%s8510_s21 + $0x8] sm:$0xff] }
0x3686   :  { %v5309_v25 = vmax.f32 %v5308_v26, %v5302_v47  ;;  %v6944_v26 = vld [vmem:[%s8510_s21 + $0x18] sm:$0xff] }
0x3688   :  { %v5310_v60 = vsub.f32 %v5281_v29, %v5309_v25  ;;  %v5311_v59 = vsub.f32 %v5284_v19, %v5309_v25  ;;  %v5312_v24 = vsub.f32 %v5287_v9, %v5309_v25  ;;  %v5313_v18 = vsub.f32 %v5290_v54, %v5309_v25 }
0x3689   :  { %v5314_v27 = vsub.f32 %v5293_v36, %v5309_v25  ;;  %v5315_v22 = vsub.f32 %v5296_v53, %v5309_v25  ;;  %v5316_v11 = vsub.f32 %v5299_v42, %v5309_v25  ;;  %v5317_v7 = vsub.f32 %v5302_v47, %v5309_v25  ;;  %v6947_v25 = vld [vmem:[%s8510_s21] sm:$0xff] }
0x368a   :  { %v5318_v4 = vmul.f32 1.442695, %v5310_v60  ;;  %v5320_v49 = vmul.f32 1.442695, %v5311_v59  ;;  %v5322_v15 = vmul.f32 1.442695, %v5312_v24 }
0x368b   :  { %v5324_v32 = vmul.f32 1.442695, %v5313_v18  ;;  %v5326_v46 = vmul.f32 1.442695, %v5314_v27  ;;  %v5328_v35 = vmul.f32 1.442695, %v5315_v22 }
0x368c   :  { %6882 = vpow2.f32 %v5318_v4  ;;  %v5330_v45 = vmul.f32 1.442695, %v5316_v11  ;;  %v5332_v3 = vmul.f32 1.442695, %v5317_v7 }
0x368d   :  { %6884 = vpow2.f32 %v5320_v49 }
0x368e   :  { %6886 = vpow2.f32 %v5322_v15 }
0x368f   :  { %6888 = vpow2.f32 %v5324_v32 }
0x3690   :  { %6890 = vpow2.f32 %v5326_v46 }
0x3691   :  { %6892 = vpow2.f32 %v5328_v35 }
0x3692   :  { %6894 = vpow2.f32 %v5330_v45 }
0x3693   :  { %6896 = vpow2.f32 %v5332_v3 }
0x3699   :  { %v6883_v57 = vpop.eup %6882 }
0x369a   :  { %v6885_v34 = vpop.eup %6884 }
0x369b   :  { %v5334_v41 = vadd.f32 %v6885_v34, %v6883_v57  ;;  %v6887_v51 = vpop.eup %6886 }
0x369c   :  { %v6889_v10 = vpop.eup %6888 }
0x369d   :  { %v5335_v13 = vadd.f32 %v6887_v51, %v5334_v41  ;;  %v6891_v58 = vpop.eup %6890 }
0x369e   :  { %v6893_v19 = vpop.eup %6892 }
0x369f   :  { %v5336_v38 = vadd.f32 %v6889_v10, %v5335_v13  ;;  %v6895_v5 = vpop.eup %6894 }
0x36a0   :  { %v6897_v50 = vpop.eup %6896 }
0x36a1   :  { %v5337_v0 = vadd.f32 %v6891_v58, %v5336_v38 }
0x36a3   :  { %v5338_v21 = vadd.f32 %v6893_v19, %v5337_v0 }
0x36a5   :  { %v5339_v48 = vadd.f32 %v6895_v5, %v5338_v21 }
0x36a7   :  { %v5340_v29 = vadd.f32 %v6897_v50, %v5339_v48 }
0x36a9   :  { %6898 = vrcp.f32 %v5340_v29 }
0x36b6   :  { %v6899_v54 = vpop.eup %6898 }
0x36b7   :  { %v5343_v16 = vmul.f32 %v6899_v54, %v6885_v34  ;;  %v5342_v23 = vmul.f32 %v6899_v54, %v6883_v57  ;;  %v5344_v9 = vmul.f32 %v6899_v54, %v6887_v51  ;;  %v5345_v28 = vmul.f32 %v6899_v54, %v6889_v10 }
0x36b8   :  { %v5346_v31 = vmul.f32 %v6899_v54, %v6891_v58  ;;  %v5347_v53 = vmul.f32 %v6899_v54, %v6893_v19  ;;  %v5348_v36 = vmul.f32 %v6899_v54, %v6895_v5  ;;  %v5349_v12 = vmul.f32 %v6899_v54, %v6897_v50 }
0x36b9   :  { %5357 = vperm.xlu1 %6648, %v5343_v16   ;;  %5352 = vperm.xlu0 %6649, %v5342_v23   ;;  %v3946_v16 = vsub.f32 %v8122_v1, %v8131_v39 }
0x36bb   :  { %v3947_v23 = vmul.f32 1.442695, %v3946_v16 }
0x36bd   :  { %5362 = vperm.xlu1 %6648, %v5344_v9   ;;  %5367 = vperm.xlu0 %6649, %v5345_v28   ;;  %v4514_v9 = vsub.f32 %v8261_v62, %v8283_v52 }
0x36bf   :  { %v4515_v28 = vmul.f32 1.442695, %v4514_v9 }
0x36c1   :  { %5372 = vperm.xlu1 %6648, %v5346_v31   ;;  %5377 = vperm.xlu0 %6649, %v5347_v53  }
0x36c5   :  { %5382 = vperm.xlu1 %6648, %v5348_v36   ;;  %5387 = vperm.xlu0 %6649, %v5349_v12  }
0x36c9   :  { %5557 = vrot.lane.b32.xlu1 %v5546_v2, %s6951_s1 }
0x3734   :  { %v5358_v60 = vpop.permute.xlu1 %5357  ;;  %v5353_v59 = vpop.permute.xlu0 %5352 }
0x3735   :  { %v5391_v18 = vmul.f32 %v5358_v60, %v8006_v40  ;;  %v5390_v4 = vmul.f32 %v5353_v59, %v8008_v55 }
0x3737   :  { %v5398_v27 = vadd.f32 %v5391_v18, %v5390_v4 }
0x3738   :  { %v5363_v24 = vpop.permute.xlu1 %5362  ;;  %v5368_v15 = vpop.permute.xlu0 %5367 }
0x3739   :  { %v5392_v49 = vmul.f32 %v5363_v24, %v8012_v30 }
0x373a   :  { %v5181_v42 = vpop.f32.mrf.mxu1 }
0x373b   :  { %6619 = vmatmul.mubr.msk.f32.vlgmr.msra.gmra.mxu1 %vm97_vm0, %v5181_v42  ;;  %v5399_v22 = vadd.f32 %v5398_v27, %v5392_v49 }
0x373c   :  { %6633 = vmatpush3.msra.mxu1 %v6944_v26  ;;  %6640 = vmatprep.mubr.msk.f32.mxu1 %vm6950_vm1, %v8540_v6  ;;  %v6602_v47 = vpop.f32.mrf.mxu1  ;;  %v5373_v32 = vpop.permute.xlu1 %5372  ;;  %v5083_v26 = vsub.f32 %v8390_v17, %v8399_v44 }
0x373d   :  { %6634 = vmatprep.subr.mxu1 %v8540_v6  ;;  %v5394_v46 = vmul.f32 %v5373_v32, %v8023_v20  ;;  %v5378_v7 = vpop.permute.xlu0 %5377 }
0x373e   :  { %6635 = vmatpush3.msra.mxu1 %v6945_v63  ;;  %v5395_v3 = vmul.f32 %v5378_v7, %v8026_v33  ;;  %v5084_v47 = vmul.f32 1.442695, %v5083_v26 }
0x373f   :  { %6636 = vmatprep.subr.mxu1 %v8540_v6 }
0x3740   :  { %6637 = vmatpush3.msra.mxu1 %v6946_v61  ;;  %v5383_v45 = vpop.permute.xlu1 %5382  ;;  %v6948_v61 = vld [vmem:[%s8511_s22] ss:$0 sm:$0xff] }
0x3741   :  { %6638 = vmatprep.subr.mxu1 %v8540_v6  ;;  %v5393_v6 = vmul.f32 %v5368_v15, %v8018_v8  ;;  %v5396_v40 = vmul.f32 %v5383_v45, %v8032_v14  ;;  %v5388_v55 = vpop.permute.xlu0 %5387 }
0x3742   :  { %6639 = vmatpush3.msra.mxu1 %v6947_v25  ;;  %v5397_v30 = vmul.f32 %v5388_v55, %v8036_v43 }
0x3743   :  { %v5400_v11 = vadd.f32 %v5399_v22, %v5393_v6 }
0x3744   :  { %v5558_v19 = vpop.permute.xlu1 %5557 }
0x3745   :  { %v5401_v35 = vadd.f32 %v5400_v11, %v5394_v46 }
0x3747   :  { %v5402_v57 = vadd.f32 %v5401_v35, %v5395_v3 }
0x3749   :  { %v5403_v34 = vadd.f32 %v5402_v57, %v5396_v40 }
0x374b   :  { %v5404_v41 = vadd.f32 %v5403_v34, %v5397_v30 }
0x37fb   :  { %v5474_v51 = vpop.f32.mrf.mxu1 }
0x37fc   :  { %v5475_v13 = vadd.f32 %v5474_v51, %v5404_v41 }
0x37fd   :  { %v6620_v10 = vpop.f32.mrf.mxu1 }
0x37fe   :  { %v5478_v8 = vadd.f32 %v8349_v56, %v5475_v13 }
0x3800   :  { %v5549_v38 = vadd.f32 %v5546_v2, %v5478_v8 }
0x3802   :  { %v5788_v20 = vmul.f32 -1.442695, %v5549_v38 }
0x3804   :  { %6900 = vpow2.f32 %v5788_v20 }
0x3811   :  { %v6901_v58 = vpop.eup %6900 }
0x3812   :  { %v5553_v0 = vadd.f32 1.0, %v6901_v58 }
0x3814   :  { %6902 = vrcp.f32 %v5553_v0 }
0x3821   :  { %v6903_v33 = vpop.eup %6902 }
0x3822   :  { %v5560_v21 = vmul.f32 %v6903_v33, %v5558_v19  ;;  %v5567_v48 = vsub.f32 1.0, %v6903_v33  ;;  %v5573_v56 = vmul.f32 %v6903_v33, %v8355_v37 }
0x3824   :  { %5562 = vrot.lane.b32.xlu0 %v5560_v21, %s6951_s1 }
0x3896   :  { %v5563_v14 = vpop.permute.xlu0 %5562 }
0x3897   :  { %v5565_v5 = vadd.f32 %v5563_v14, %v5478_v8 }
0x3899   :  { %6904 = vtanh.f32 %v5565_v5 }
0x389a   :  { %6906 = vpow2.f32 %v3947_v23 }
0x389b   :  { %6908 = vpow2.f32 %v4515_v28 }
0x38a6   :  { %v6905_v43 = vpop.eup %6904 }
0x38a7   :  { %5569 = vrot.lane.b32.xlu1 %v6905_v43, %s6952_s28  ;;  %v6907_v31 = vpop.eup %6906 }
0x38a8   :  { %v6909_v53 = vpop.eup %6908 }
0x3919   :  { %v5570_v50 = vpop.permute.xlu1 %5569 }
0x391a   :  { %v5572_v29 = vmul.f32 %v5570_v50, %v5567_v48 }
0x391c   :  { %v5574_v54 = vadd.f32 %v5573_v56, %v5572_v29 }
0x391e   :  { %5576 = vrot.lane.b32.xlu0 %v5574_v54, %s6952_s28 }
0x393d   :  { %3949 = vadd.xlane.f32.xlu0 %v6907_v31 }
0x3941   :  { %4517 = vadd.xlane.f32.xlu0 %v6909_v53 }
0x3990   :  { %v5577_v36 = vpop.permute.xlu0 %5576 }
0x3991   :  { %6641 = vmatmul.mubr.msk.f32.vlgmr.msra.gmra.mxu1 %vm177_vm2, %v5577_v36 }
0x39c6   :  { %v3950_v37 = vpop.xlane.xlu0 %3949 }
0x39c7   :  { %6910 = vlog2.f32 %v3950_v37 }
0x39ca   :  { %v4518_v12 = vpop.xlane.xlu0 %4517 }
0x39cb   :  { %6912 = vlog2.f32 %v4518_v12 }
0x39cc   :  { %6914 = vpow2.f32 %v5084_v47 }
0x39d4   :  { %v6911_v2 = vpop.eup %6910 }
0x39d5   :  { %v3952_v1 = vmul.f32 0.6931472, %v6911_v2 }
0x39d7   :  { %v3953_v39 = vsub.f32 %v3946_v16, %v3952_v1 }
0x39d8   :  { %v6913_v42 = vpop.eup %6912 }
0x39d9   :  { %3954 = vst [vmem:[%s8512_s23] sm:$0xff] %v3953_v39  ;;  %v4520_v62 = vmul.f32 0.6931472, %v6913_v42  ;;  %v6915_v59 = vpop.eup %6914 }
0x39db   :  { %v4521_v52 = vsub.f32 %v4514_v9, %v4520_v62 }
0x39dd   :  { %5774 = vst [vmem:[%s8512_s23 + $0x8] sm:$0xff] %v4521_v52 }
0x3a51   :  { %v5646_v63 = vpop.f32.mrf.mxu1 }
0x3a52   :  { %v5647_v25 = vadd.f32 %v6948_v61, %v5646_v63 }
0x3a53   :  { %v6642_v60 = vpop.f32.mrf.mxu1 }
0x3a54   :  { %5650 = vmax.xlane.f32.xlu1 %v5647_v25 }
0x3a58   :  { %5086 = vadd.xlane.f32.xlu1 %v6915_v59 }
0x3add   :  { %v5651_v24 = vpop.xlane.xlu1 %5650 }
0x3ade   :  { %v5652_v18 = vsub.f32 %v5647_v25, %v5651_v24 }
0x3ae0   :  { %v5653_v4 = vmul.f32 1.442695, %v5652_v18 }
0x3ae1   :  { %v5087_v49 = vpop.xlane.xlu1 %5086 }
0x3ae2   :  { %6916 = vpow2.f32 %v5653_v4 }
0x3ae3   :  { %6918 = vlog2.f32 %v5087_v49 }
0x3aef   :  { %v6917_v27 = vpop.eup %6916 }
0x3af0   :  { %v6919_v17 = vpop.eup %6918  ;;  %5655 = vadd.xlane.f32.xlu0 %v6917_v27 }
0x3af1   :  { %v5089_v44 = vmul.f32 0.6931472, %v6919_v17 }
0x3af3   :  { %v5090_v15 = vsub.f32 %v5083_v26, %v5089_v44 }
0x3af5   :  { %5782 = vst [vmem:[%s8512_s23 + $0x10] sm:$0xff] %v5090_v15 }
0x3b79   :  { %v5656_v22 = vpop.xlane.xlu0 %5655 }
0x3b7a   :  { %6920 = vlog2.f32 %v5656_v22 }
0x3b87   :  { %v6921_v32 = vpop.eup %6920 }
0x3b88   :  { %v5658_v6 = vmul.f32 0.6931472, %v6921_v32 }
0x3b8a   :  { %v5659_v11 = vsub.f32 %v5652_v18, %v5658_v6 }
0x3b8c   :  { %5790 = vst [vmem:[%s8512_s23 + $0x18] sm:$0xff] %v5659_v11 }

</bundles_post_ra>
